<compile_context>
chip_gen: v5e
topology: v5e:2x2
jax: 0.10.0
libtpu: 0.0.40
codegen_flags: <defaults>
</compile_context>

<pallas_src>
import functools

import jax
import jax.numpy as jnp
from jax import lax
from jax.experimental import pallas as pl
from jax.experimental.pallas import tpu as pltpu


def quick_gelu(x):
    # QuickGELU: x * sigmoid(1.702 * x)
    return x * jax.nn.sigmoid(1.702 * x)


def _round_up(v, m):
    return -(-v // m) * m


# ----------------------------------------------------------------------------
# Kernel
# ----------------------------------------------------------------------------
def _adapter_kernel(*refs, W, pad_rows, use_sd, use_sc, use_su, mm_dtype,
                    fuse_conv):
    it = iter(refs)
    x_ref = next(it)                       # (M, Cin)   input rows (TB images)
    mask_ref = next(it)                    # (M, 8) f32 per-tap validity masks
    wd_ref = next(it)                      # (Cin, D)
    bd_ref = next(it)                      # (1, D)
    wt_ref = next(it)                      # (9*D, D)   conv taps, tap-major
    sd_ref = next(it) if use_sd else None  # (1, D)
    sc_ref = next(it) if use_sc else None  # (1, D)
    wu_ref = next(it)                      # (D, Cin)
    bu_ref = next(it)                      # (1, Cin)
    su_ref = next(it) if use_su else None  # (1, Cin)
    o_ref = next(it)                       # (M, Cin)
    xpad_ref = next(it)                    # VMEM scratch (M + 2*pad_rows, D)

    M = x_ref.shape[0]
    D = wd_ref.shape[1]

    # ---- adapter_down (+ optional diag) + QuickGELU (f32 accumulate) --------
    xd = jnp.dot(x_ref[...].astype(mm_dtype), wd_ref[...],
                 preferred_element_type=jnp.float32)
    xd = xd + bd_ref[...]
    if use_sd:
        xd = xd * sd_ref[...]
    xd = quick_gelu(xd)

    # ---- stage xd into a row-padded scratch: every 3x3 tap becomes a static,
    #      contiguous row-shifted slice.  Pad rows re-zeroed each step (the
    #      grid axis is "parallel"; a program_id==0-only init is unsafe on a
    #      dual-TC split, and the cost is negligible). ------------------------
    zero_pad = jnp.zeros((pad_rows, D), jnp.float32)
    xpad_ref[0:pad_rows, :] = zero_pad
    xpad_ref[pad_rows + M:pad_rows + M + pad_rows, :] = zero_pad
    xpad_ref[pad_rows:pad_rows + M, :] = xd

    masks = mask_ref[...]                  # (M, 8) f32, wrapper-precomputed

    pieces = []
    mcol = 0
    for dh in (-1, 0, 1):
        for dw in (-1, 0, 1):
            s = dh * W + dw
            if s == 0:
                piece = xd
            else:
                start = pad_rows + s
                piece = xpad_ref[start:start + M, :]
                # zero-padding semantics of conv2d + kill cross-image bleed
                piece = piece * masks[:, mcol:mcol + 1]
                mcol += 1
            pieces.append(piece)

    if fuse_conv:
        # im2col: one (M, 9D) x (9D, D) matmul — only used when D % 128 == 0
        # so the lane concat places whole 128-lane vregs (no XLU relayout).
        cols = jnp.concatenate(pieces, axis=1)
        xc = jnp.dot(cols.astype(mm_dtype), wt_ref[...],
                     preferred_element_type=jnp.float32)
    else:
        # per-tap accumulation path for small adapter dims (D < 128).
        xc = jnp.zeros((M, D), jnp.float32)
        for t, piece in enumerate(pieces):
            xc = xc + jnp.dot(piece.astype(mm_dtype),
                              wt_ref[t * D:(t + 1) * D, :],
                              preferred_element_type=jnp.float32)

    # ---- (optional diag) + QuickGELU + adapter_up (+ optional diag) ---------
    if use_sc:
        xc = xc * sc_ref[...]
    xc = quick_gelu(xc)
    # TODO(synk): nn.Dropout(0.1) is identity in eval mode; no RNG dropout applied.
    xu = jnp.dot(xc.astype(mm_dtype), wu_ref[...],
                 preferred_element_type=jnp.float32)
    xu = xu + bu_ref[...]
    if use_su:
        xu = xu * su_ref[...]
    o_ref[...] = xu.astype(o_ref.dtype)


# ----------------------------------------------------------------------------
# Tiling / VMEM policy (generation-aware)
# ----------------------------------------------------------------------------
def _vmem_config():
    cap = 64 * 1024 * 1024            # conservative fallback (v7x per-TC VMEM)
    try:
        info = pltpu.get_tpu_info()
        cap = int(getattr(info, "vmem_capacity_bytes", cap) or cap)
    except Exception:
        pass
    tile_budget = cap // 2            # per-step working-set budget
    vmem_limit = min((cap * 3) // 4, 100 * 1024 * 1024)
    return tile_budget, vmem_limit


def _pick_batch_tile(B, P, Cin, D, *, pad_rows, in_bytes, mm_bytes, out_bytes,
                     budget_bytes, min_grid=2):
    """Largest divisor TB of B fitting the VMEM budget, keeping >= min_grid steps."""
    Dl = _round_up(D, 128)                 # physical lane footprint of D-wide temps
    Cl = _round_up(Cin, 128)

    def est(tb):
        rows = tb * P
        io = 2 * rows * Cl * (in_bytes + out_bytes)       # double-buffered in/out blocks
        scratch = (rows + 2 * pad_rows) * Dl * 4          # shift-staging buffer
        temps = rows * (10 * Dl + Cl) * 4                 # 9 pieces + xd/xc + xu
        weights = 2 * (Cin * Dl + 9 * D * Dl + D * Cl + 4 * Dl + 2 * Cl) * 4
        return io + scratch + temps + weights

    cands = [tb for tb in range(1, B + 1)
             if B % tb == 0 and (tb == B or (tb * P) % 8 == 0)]
    max_tb = max(1, B // min_grid) if B >= min_grid else B
    fitting = [tb for tb in cands if tb <= max_tb and est(tb) <= budget_bytes]
    if fitting:
        return max(fitting)
    # relax the min-grid cap before giving up on the budget entirely
    fitting = [tb for tb in cands if est(tb) <= budget_bytes]
    # TODO(synk): for large H*W (swin stage 1, P=3136) additionally tile over H
    # with a +/-1-row halo instead of whole images per block.
    return max(fitting) if fitting else min(cands)


# ----------------------------------------------------------------------------
# Wrapper
# ----------------------------------------------------------------------------
def convpass_adapter_forward(x, params, diag_pos, *, mm_dtype=jnp.float32,
                             out_dtype=None, fuse_conv_matmul=None):
    assert diag_pos in ("after_down", "after_conv", "after_up", "after_down_conv")
    B, H, W, Cin = x.shape
    D = params["w_down_t"].shape[1]
    P = H * W
    pad_rows = max(8, _round_up(W + 1, 8))
    out_dtype = x.dtype if out_dtype is None else out_dtype

    use_sd = diag_pos in ("after_down", "after_down_conv")
    use_sc = diag_pos in ("after_conv", "after_down_conv")
    use_su = diag_pos == "after_up"

    # fused single-matmul im2col only when the 9 taps concatenate vreg-aligned.
    if fuse_conv_matmul is None:
        fuse_conv_matmul = (D % 128 == 0)

    # hypernet: conv weight = Linear(layer_embedding) -> OIHW (D, D, 3, 3)
    w_conv_flat = params["hyper_w"] @ params["layer_embedding"] + params["hyper_b"]
    w_conv = w_conv_flat.reshape(D, D, 3, 3)
    # (kh, kw, in, out) flattened tap-major -> (9*D, D)
    w_taps = jnp.transpose(w_conv, (2, 3, 1, 0)).reshape(9 * D, D).astype(mm_dtype)

    # Activations go to the kernel directly in mm_dtype (bf16 halves HBM reads);
    # no channel pad / output slice round trips through HBM.
    x2 = x.reshape(B * P, Cin).astype(mm_dtype)
    w_down = params["w_down_t"].astype(mm_dtype)
    b_down = params["b_down"].reshape(1, D)
    w_up = params["w_up_t"].astype(mm_dtype)
    b_up = params["b_up"].reshape(1, Cin)

    budget, vmem_limit = _vmem_config()
    TB = _pick_batch_tile(
        B, P, Cin, D, pad_rows=pad_rows,
        in_bytes=jnp.dtype(mm_dtype).itemsize,
        mm_bytes=jnp.dtype(mm_dtype).itemsize,
        out_bytes=jnp.dtype(out_dtype).itemsize,
        budget_bytes=budget)
    rows = TB * P

    # precomputed per-tap validity masks: one f32 column per non-center tap,
    # same loop order as the kernel (no in-kernel div/mod/compare/and).
    hh = jnp.repeat(jnp.arange(H, dtype=jnp.int32), W)
    ww = jnp.tile(jnp.arange(W, dtype=jnp.int32), H)
    cols = []
    for dh in (-1, 0, 1):
        for dw in (-1, 0, 1):
            if dh == 0 and dw == 0:
                continue
            valid = jnp.ones((P,), dtype=bool)
            if dh < 0:
                valid = valid & (hh >= 1)
            if dh > 0:
                valid = valid & (hh < H - 1)
            if dw < 0:
                valid = valid & (ww >= 1)
            if dw > 0:
                valid = valid & (ww < W - 1)
            cols.append(valid)
    masks = jnp.tile(jnp.stack(cols, axis=1).astype(jnp.float32), (TB, 1))

    kernel = functools.partial(
        _adapter_kernel, W=W, pad_rows=pad_rows,
        use_sd=use_sd, use_sc=use_sc, use_su=use_su,
        mm_dtype=mm_dtype, fuse_conv=fuse_conv_matmul)

    # inputs + shapes of grid-invariant operands (constant index_map)
    inputs = [x2, masks, w_down, b_down, w_taps]
    const_shapes = [(rows, 8), (Cin, D), (1, D), (9 * D, D)]
    if use_sd:
        inputs.append(params["scale_down"].reshape(1, D))
        const_shapes.append((1, D))
    if use_sc:
        inputs.append(params["scale_conv"].reshape(1, D))
        const_shapes.append((1, D))
    inputs += [w_up, b_up]
    const_shapes += [(D, Cin), (1, Cin)]
    if use_su:
        inputs.append(params["scale_up"].reshape(1, Cin))
        const_shapes.append((1, Cin))

    def run(single_buffer):
        def cspec(shape):
            if single_buffer and hasattr(pl, "Buffered"):
                # grid-invariant: never re-fetched, so single-buffer to save VMEM
                return pl.BlockSpec(shape, lambda i: (0, 0),
                                    pipeline_mode=pl.Buffered(1))
            return pl.BlockSpec(shape, lambda i: (0, 0))

        in_specs = ([pl.BlockSpec((rows, Cin), lambda i: (i, 0))]
                    + [cspec(s) for s in const_shapes])
        return pl.pallas_call(
            kernel,
            out_shape=jax.ShapeDtypeStruct((B * P, Cin), out_dtype),
            grid=(B // TB,),
            in_specs=in_specs,
            out_specs=pl.BlockSpec((rows, Cin), lambda i: (i, 0)),
            scratch_shapes=[pltpu.VMEM((rows + 2 * pad_rows, D), jnp.float32)],
            compiler_params=pltpu.CompilerParams(
                dimension_semantics=("parallel",),
                vmem_limit_bytes=vmem_limit),
        )(*inputs)

    try:
        out2 = run(single_buffer=True)
    except Exception:
        out2 = run(single_buffer=False)

    return out2.reshape(B, H, W, Cin)


# ----------------------------------------------------------------------------
# Pure-JAX reference mirroring the PyTorch forward (eval mode)
# ----------------------------------------------------------------------------
def reference_forward(x, params, diag_pos):
    hp = lax.Precision.HIGHEST
    D = params["w_down_t"].shape[1]
    w_conv_flat = params["hyper_w"] @ params["layer_embedding"] + params["hyper_b"]
    w_conv = w_conv_flat.reshape(D, D, 3, 3)                       # OIHW
    xd = jnp.matmul(x, params["w_down_t"], precision=hp) + params["b_down"]
    if diag_pos in ("after_down", "after_down_conv"):
        xd = xd * params["scale_down"]
    xp = quick_gelu(xd)
    xc = lax.conv_general_dilated(
        xp, jnp.transpose(w_conv, (2, 3, 1, 0)), (1, 1), "SAME",
        dimension_numbers=("NHWC", "HWIO", "NHWC"), precision=hp)
    if diag_pos in ("after_conv", "after_down_conv"):
        xc = xc * params["scale_conv"]
    xc = quick_gelu(xc)
    xu = jnp.matmul(xc, params["w_up_t"], precision=hp) + params["b_up"]
    if diag_pos == "after_up":
        xu = xu * params["scale_up"]
    return xu


def init_params(key, input_dim, dim, embed_dim):
    ks = jax.random.split(key, 8)
    # adapter_down: xavier_uniform weight (stored transposed), zero bias
    limit = (6.0 / (input_dim + dim)) ** 0.5
    w_down_t = jax.random.uniform(ks[0], (input_dim, dim), jnp.float32, -limit, limit)
    b_down = jnp.zeros((dim,), jnp.float32)
    # adapter_up: PyTorch inits this to zero; small random here so the synthetic
    # test exercises a non-trivial output path (deterministic).
    w_up_t = 0.02 * jax.random.normal(ks[1], (dim, input_dim), jnp.float32)
    b_up = jnp.zeros((input_dim,), jnp.float32)
    # conv hypernet: Linear(embed_dim -> dim*dim*3*3)
    hyper_w = 0.05 * jax.random.normal(ks[2], (dim * dim * 9, embed_dim), jnp.float32)
    hyper_b = 0.05 * jax.random.normal(ks[3], (dim * dim * 9,), jnp.float32)
    layer_embedding = jax.random.normal(ks[4], (embed_dim,), jnp.float32)
    # diag scales (module inits to ones; random here so the paths are exercised)
    scale_down = 1.0 + 0.1 * jax.random.normal(ks[5], (dim,), jnp.float32)
    scale_conv = 1.0 + 0.1 * jax.random.normal(ks[6], (dim,), jnp.float32)
    scale_up = 1.0 + 0.1 * jax.random.normal(ks[7], (input_dim,), jnp.float32)
    return dict(w_down_t=w_down_t, b_down=b_down, w_up_t=w_up_t, b_up=b_up,
                hyper_w=hyper_w, hyper_b=hyper_b, layer_embedding=layer_embedding,
                scale_down=scale_down, scale_conv=scale_conv, scale_up=scale_up)


if __name__ == "__main__":
    key = jax.random.PRNGKey(0)
    B, H, W, Cin, D, E = 2, 8, 8, 32, 16, 8
    kx, kp = jax.random.split(key)
    x = jax.random.normal(kx, (B, H, W, Cin), jnp.float32)
    params = init_params(kp, Cin, D, E)

    errs = {}
    shapes_ok = True
    for pos in ("after_down_conv", "after_conv", "after_up"):
        out = jax.block_until_ready(convpass_adapter_forward(x, params, pos))
        ref = reference_forward(x, params, pos)
        errs[pos] = float(jnp.max(jnp.abs(out - ref)))
        shapes_ok = shapes_ok and (out.shape == (B, H, W, Cin))

    # bf16 MXU inputs / bf16 activation DMA (f32 accumulation) — looser tolerance.
    out_bf = jax.block_until_ready(
        convpass_adapter_forward(x, params, "after_down_conv",
                                 mm_dtype=jnp.bfloat16))
    ref_dc = reference_forward(x, params, "after_down_conv")
    err_bf = float(jnp.max(jnp.abs(out_bf.astype(jnp.float32) - ref_dc)))

    f32_ok = all(e < 5e-3 for e in errs.values())
    ok = shapes_ok and f32_ok and err_bf < 5e-2
    if ok:
        print("KERNEL_OK")
    else:
        print(f"MISMATCH shapes_ok={shapes_ok} errs_f32={errs} err_bf16={err_bf:.3e}")
</pallas_src>

<mosaic_0001>
module attributes {stable_mosaic.version = 11 : i64} {
  func.func @_adapter_kernel(%arg0: i32, %arg1: memref<64x32xf32, #tpu.memory_space<vmem>>, %arg2: memref<64x8xf32, #tpu.memory_space<vmem>>, %arg3: memref<32x16xf32, #tpu.memory_space<vmem>>, %arg4: memref<1x16xf32, #tpu.memory_space<vmem>>, %arg5: memref<144x16xf32, #tpu.memory_space<vmem>>, %arg6: memref<1x16xf32, #tpu.memory_space<vmem>>, %arg7: memref<1x16xf32, #tpu.memory_space<vmem>>, %arg8: memref<16x32xf32, #tpu.memory_space<vmem>>, %arg9: memref<1x32xf32, #tpu.memory_space<vmem>>, %arg10: memref<64x32xf32, #tpu.memory_space<vmem>>, %arg11: memref<96x16xf32, #tpu.memory_space<vmem>>) attributes {dimension_semantics = [#tpu.dimension_semantics<parallel>], iteration_bounds = array<i64: 2>, scalar_prefetch = 0 : i64, scratch_operands = 1 : i64, tpu.core_type = #tpu.core_type<tc>, window_params = [{transform_indices = @transform_0, window_bounds = array<i64: 64, 32>}, {pipeline_mode = #tpu.pipeline_mode<synchronous>, transform_indices = @transform_1, window_bounds = array<i64: 64, 8>}, {pipeline_mode = #tpu.pipeline_mode<synchronous>, transform_indices = @transform_2, window_bounds = array<i64: 32, 16>}, {pipeline_mode = #tpu.pipeline_mode<synchronous>, transform_indices = @transform_3, window_bounds = array<i64: 1, 16>}, {pipeline_mode = #tpu.pipeline_mode<synchronous>, transform_indices = @transform_4, window_bounds = array<i64: 144, 16>}, {pipeline_mode = #tpu.pipeline_mode<synchronous>, transform_indices = @transform_5, window_bounds = array<i64: 1, 16>}, {pipeline_mode = #tpu.pipeline_mode<synchronous>, transform_indices = @transform_6, window_bounds = array<i64: 1, 16>}, {pipeline_mode = #tpu.pipeline_mode<synchronous>, transform_indices = @transform_7, window_bounds = array<i64: 16, 32>}, {pipeline_mode = #tpu.pipeline_mode<synchronous>, transform_indices = @transform_8, window_bounds = array<i64: 1, 32>}, {transform_indices = @transform_9, window_bounds = array<i64: 64, 32>}]} {
    %c0 = arith.constant 0 : index
    %c0_0 = arith.constant 0 : index
    %0 = vector.load %arg1[%c0, %c0_0] : memref<64x32xf32, #tpu.memory_space<vmem>>, vector<64x32xf32>
    %c0_1 = arith.constant 0 : index
    %c0_2 = arith.constant 0 : index
    %1 = vector.load %arg3[%c0_1, %c0_2] : memref<32x16xf32, #tpu.memory_space<vmem>>, vector<32x16xf32>
    %cst = arith.constant dense<0.000000e+00> : vector<64x16xf32>
    %2 = tpu.matmul %0, %1, %cst {dimension_numbers = #tpu.dot_dimension_numbers<[1], [0], [0], [1], [0, 0, 1, 1], [], []>} : vector<64x32xf32>, vector<32x16xf32>, vector<64x16xf32> -> vector<64x16xf32>
    %c0_3 = arith.constant 0 : index
    %c0_4 = arith.constant 0 : index
    %3 = vector.load %arg4[%c0_3, %c0_4] : memref<1x16xf32, #tpu.memory_space<vmem>>, vector<1x16xf32>
    %4 = vector.broadcast %3 : vector<1x16xf32> to vector<64x16xf32>
    %5 = arith.addf %2, %4 : vector<64x16xf32>
    %c0_5 = arith.constant 0 : index
    %c0_6 = arith.constant 0 : index
    %6 = vector.load %arg6[%c0_5, %c0_6] : memref<1x16xf32, #tpu.memory_space<vmem>>, vector<1x16xf32>
    %7 = vector.broadcast %6 : vector<1x16xf32> to vector<64x16xf32>
    %8 = arith.mulf %5, %7 : vector<64x16xf32>
    %cst_7 = arith.constant 1.702000e+00 : f32
    %9 = vector.broadcast %cst_7 : f32 to vector<64x16xf32>
    %10 = arith.mulf %9, %8 : vector<64x16xf32>
    %11 = arith.negf %10 : vector<64x16xf32>
    %12 = math.exp %11 : vector<64x16xf32>
    %cst_8 = arith.constant 1.000000e+00 : f32
    %13 = vector.broadcast %cst_8 : f32 to vector<64x16xf32>
    %14 = arith.addf %13, %12 : vector<64x16xf32>
    %15 = arith.divf %13, %14 : vector<64x16xf32>
    %16 = arith.mulf %8, %15 : vector<64x16xf32>
    %cst_9 = arith.constant 0.000000e+00 : f32
    %17 = vector.broadcast %cst_9 : f32 to vector<16x16xf32>
    %c0_10 = arith.constant 0 : index
    %c0_11 = arith.constant 0 : index
    %18 = vector.load %arg11[%c0_10, %c0_11] : memref<96x16xf32, #tpu.memory_space<vmem>>, vector<16x16xf32>
    tpu.vector_store %arg11[%c0_10, %c0_11], %17 {strides = array<i32>} : memref<96x16xf32, #tpu.memory_space<vmem>>, vector<16x16xf32>,
    %c80 = arith.constant 80 : index
    %c0_12 = arith.constant 0 : index
    %19 = vector.load %arg11[%c80, %c0_12] : memref<96x16xf32, #tpu.memory_space<vmem>>, vector<16x16xf32>
    tpu.vector_store %arg11[%c80, %c0_12], %17 {strides = array<i32>} : memref<96x16xf32, #tpu.memory_space<vmem>>, vector<16x16xf32>,
    %c16 = arith.constant 16 : index
    %c0_13 = arith.constant 0 : index
    %20 = vector.load %arg11[%c16, %c0_13] : memref<96x16xf32, #tpu.memory_space<vmem>>, vector<64x16xf32>
    tpu.vector_store %arg11[%c16, %c0_13], %16 {strides = array<i32>} : memref<96x16xf32, #tpu.memory_space<vmem>>, vector<64x16xf32>,
    %c0_14 = arith.constant 0 : index
    %c0_15 = arith.constant 0 : index
    %21 = vector.load %arg2[%c0_14, %c0_15] : memref<64x8xf32, #tpu.memory_space<vmem>>, vector<64x8xf32>
    %c7 = arith.constant 7 : index
    %c0_16 = arith.constant 0 : index
    %22 = vector.load %arg11[%c7, %c0_16] : memref<96x16xf32, #tpu.memory_space<vmem>>, vector<64x16xf32>
    %23 = vector.extract_strided_slice %21 {offsets = [0, 0], sizes = [64, 1], strides = [1, 1]} : vector<64x8xf32> to vector<64x1xf32>
    %24 = vector.broadcast %23 : vector<64x1xf32> to vector<64x16xf32>
    %25 = arith.mulf %22, %24 : vector<64x16xf32>
    %c8 = arith.constant 8 : index
    %c0_17 = arith.constant 0 : index
    %26 = vector.load %arg11[%c8, %c0_17] : memref<96x16xf32, #tpu.memory_space<vmem>>, vector<64x16xf32>
    %27 = vector.extract_strided_slice %21 {offsets = [0, 1], sizes = [64, 1], strides = [1, 1]} : vector<64x8xf32> to vector<64x1xf32>
    %28 = vector.broadcast %27 : vector<64x1xf32> to vector<64x16xf32>
    %29 = arith.mulf %26, %28 : vector<64x16xf32>
    %c9 = arith.constant 9 : index
    %c0_18 = arith.constant 0 : index
    %30 = vector.load %arg11[%c9, %c0_18] : memref<96x16xf32, #tpu.memory_space<vmem>>, vector<64x16xf32>
    %31 = vector.extract_strided_slice %21 {offsets = [0, 2], sizes = [64, 1], strides = [1, 1]} : vector<64x8xf32> to vector<64x1xf32>
    %32 = vector.broadcast %31 : vector<64x1xf32> to vector<64x16xf32>
    %33 = arith.mulf %30, %32 : vector<64x16xf32>
    %c15 = arith.constant 15 : index
    %c0_19 = arith.constant 0 : index
    %34 = vector.load %arg11[%c15, %c0_19] : memref<96x16xf32, #tpu.memory_space<vmem>>, vector<64x16xf32>
    %35 = vector.extract_strided_slice %21 {offsets = [0, 3], sizes = [64, 1], strides = [1, 1]} : vector<64x8xf32> to vector<64x1xf32>
    %36 = vector.broadcast %35 : vector<64x1xf32> to vector<64x16xf32>
    %37 = arith.mulf %34, %36 : vector<64x16xf32>
    %c17 = arith.constant 17 : index
    %c0_20 = arith.constant 0 : index
    %38 = vector.load %arg11[%c17, %c0_20] : memref<96x16xf32, #tpu.memory_space<vmem>>, vector<64x16xf32>
    %39 = vector.extract_strided_slice %21 {offsets = [0, 4], sizes = [64, 1], strides = [1, 1]} : vector<64x8xf32> to vector<64x1xf32>
    %40 = vector.broadcast %39 : vector<64x1xf32> to vector<64x16xf32>
    %41 = arith.mulf %38, %40 : vector<64x16xf32>
    %c23 = arith.constant 23 : index
    %c0_21 = arith.constant 0 : index
    %42 = vector.load %arg11[%c23, %c0_21] : memref<96x16xf32, #tpu.memory_space<vmem>>, vector<64x16xf32>
    %43 = vector.extract_strided_slice %21 {offsets = [0, 5], sizes = [64, 1], strides = [1, 1]} : vector<64x8xf32> to vector<64x1xf32>
    %44 = vector.broadcast %43 : vector<64x1xf32> to vector<64x16xf32>
    %45 = arith.mulf %42, %44 : vector<64x16xf32>
    %c24 = arith.constant 24 : index
    %c0_22 = arith.constant 0 : index
    %46 = vector.load %arg11[%c24, %c0_22] : memref<96x16xf32, #tpu.memory_space<vmem>>, vector<64x16xf32>
    %47 = vector.extract_strided_slice %21 {offsets = [0, 6], sizes = [64, 1], strides = [1, 1]} : vector<64x8xf32> to vector<64x1xf32>
    %48 = vector.broadcast %47 : vector<64x1xf32> to vector<64x16xf32>
    %49 = arith.mulf %46, %48 : vector<64x16xf32>
    %c25 = arith.constant 25 : index
    %c0_23 = arith.constant 0 : index
    %50 = vector.load %arg11[%c25, %c0_23] : memref<96x16xf32, #tpu.memory_space<vmem>>, vector<64x16xf32>
    %51 = vector.extract_strided_slice %21 {offsets = [0, 7], sizes = [64, 1], strides = [1, 1]} : vector<64x8xf32> to vector<64x1xf32>
    %52 = vector.broadcast %51 : vector<64x1xf32> to vector<64x16xf32>
    %53 = arith.mulf %50, %52 : vector<64x16xf32>
    %cst_24 = arith.constant 0.000000e+00 : f32
    %54 = vector.broadcast %cst_24 : f32 to vector<64x16xf32>
    %c0_25 = arith.constant 0 : index
    %c0_26 = arith.constant 0 : index
    %55 = vector.load %arg5[%c0_25, %c0_26] : memref<144x16xf32, #tpu.memory_space<vmem>>, vector<16x16xf32>
    %cst_27 = arith.constant dense<0.000000e+00> : vector<64x16xf32>
    %56 = tpu.matmul %25, %55, %cst_27 {dimension_numbers = #tpu.dot_dimension_numbers<[1], [0], [0], [1], [0, 0, 1, 1], [], []>} : vector<64x16xf32>, vector<16x16xf32>, vector<64x16xf32> -> vector<64x16xf32>
    %57 = arith.addf %54, %56 : vector<64x16xf32>
    %c16_28 = arith.constant 16 : index
    %c0_29 = arith.constant 0 : index
    %58 = vector.load %arg5[%c16_28, %c0_29] : memref<144x16xf32, #tpu.memory_space<vmem>>, vector<16x16xf32>
    %cst_30 = arith.constant dense<0.000000e+00> : vector<64x16xf32>
    %59 = tpu.matmul %29, %58, %cst_30 {dimension_numbers = #tpu.dot_dimension_numbers<[1], [0], [0], [1], [0, 0, 1, 1], [], []>} : vector<64x16xf32>, vector<16x16xf32>, vector<64x16xf32> -> vector<64x16xf32>
    %60 = arith.addf %57, %59 : vector<64x16xf32>
    %c32 = arith.constant 32 : index
    %c0_31 = arith.constant 0 : index
    %61 = vector.load %arg5[%c32, %c0_31] : memref<144x16xf32, #tpu.memory_space<vmem>>, vector<16x16xf32>
    %cst_32 = arith.constant dense<0.000000e+00> : vector<64x16xf32>
    %62 = tpu.matmul %33, %61, %cst_32 {dimension_numbers = #tpu.dot_dimension_numbers<[1], [0], [0], [1], [0, 0, 1, 1], [], []>} : vector<64x16xf32>, vector<16x16xf32>, vector<64x16xf32> -> vector<64x16xf32>
    %63 = arith.addf %60, %62 : vector<64x16xf32>
    %c48 = arith.constant 48 : index
    %c0_33 = arith.constant 0 : index
    %64 = vector.load %arg5[%c48, %c0_33] : memref<144x16xf32, #tpu.memory_space<vmem>>, vector<16x16xf32>
    %cst_34 = arith.constant dense<0.000000e+00> : vector<64x16xf32>
    %65 = tpu.matmul %37, %64, %cst_34 {dimension_numbers = #tpu.dot_dimension_numbers<[1], [0], [0], [1], [0, 0, 1, 1], [], []>} : vector<64x16xf32>, vector<16x16xf32>, vector<64x16xf32> -> vector<64x16xf32>
    %66 = arith.addf %63, %65 : vector<64x16xf32>
    %c64 = arith.constant 64 : index
    %c0_35 = arith.constant 0 : index
    %67 = vector.load %arg5[%c64, %c0_35] : memref<144x16xf32, #tpu.memory_space<vmem>>, vector<16x16xf32>
    %cst_36 = arith.constant dense<0.000000e+00> : vector<64x16xf32>
    %68 = tpu.matmul %16, %67, %cst_36 {dimension_numbers = #tpu.dot_dimension_numbers<[1], [0], [0], [1], [0, 0, 1, 1], [], []>} : vector<64x16xf32>, vector<16x16xf32>, vector<64x16xf32> -> vector<64x16xf32>
    %69 = arith.addf %66, %68 : vector<64x16xf32>
    %c80_37 = arith.constant 80 : index
    %c0_38 = arith.constant 0 : index
    %70 = vector.load %arg5[%c80_37, %c0_38] : memref<144x16xf32, #tpu.memory_space<vmem>>, vector<16x16xf32>
    %cst_39 = arith.constant dense<0.000000e+00> : vector<64x16xf32>
    %71 = tpu.matmul %41, %70, %cst_39 {dimension_numbers = #tpu.dot_dimension_numbers<[1], [0], [0], [1], [0, 0, 1, 1], [], []>} : vector<64x16xf32>, vector<16x16xf32>, vector<64x16xf32> -> vector<64x16xf32>
    %72 = arith.addf %69, %71 : vector<64x16xf32>
    %c96 = arith.constant 96 : index
    %c0_40 = arith.constant 0 : index
    %73 = vector.load %arg5[%c96, %c0_40] : memref<144x16xf32, #tpu.memory_space<vmem>>, vector<16x16xf32>
    %cst_41 = arith.constant dense<0.000000e+00> : vector<64x16xf32>
    %74 = tpu.matmul %45, %73, %cst_41 {dimension_numbers = #tpu.dot_dimension_numbers<[1], [0], [0], [1], [0, 0, 1, 1], [], []>} : vector<64x16xf32>, vector<16x16xf32>, vector<64x16xf32> -> vector<64x16xf32>
    %75 = arith.addf %72, %74 : vector<64x16xf32>
    %c112 = arith.constant 112 : index
    %c0_42 = arith.constant 0 : index
    %76 = vector.load %arg5[%c112, %c0_42] : memref<144x16xf32, #tpu.memory_space<vmem>>, vector<16x16xf32>
    %cst_43 = arith.constant dense<0.000000e+00> : vector<64x16xf32>
    %77 = tpu.matmul %49, %76, %cst_43 {dimension_numbers = #tpu.dot_dimension_numbers<[1], [0], [0], [1], [0, 0, 1, 1], [], []>} : vector<64x16xf32>, vector<16x16xf32>, vector<64x16xf32> -> vector<64x16xf32>
    %78 = arith.addf %75, %77 : vector<64x16xf32>
    %c128 = arith.constant 128 : index
    %c0_44 = arith.constant 0 : index
    %79 = vector.load %arg5[%c128, %c0_44] : memref<144x16xf32, #tpu.memory_space<vmem>>, vector<16x16xf32>
    %cst_45 = arith.constant dense<0.000000e+00> : vector<64x16xf32>
    %80 = tpu.matmul %53, %79, %cst_45 {dimension_numbers = #tpu.dot_dimension_numbers<[1], [0], [0], [1], [0, 0, 1, 1], [], []>} : vector<64x16xf32>, vector<16x16xf32>, vector<64x16xf32> -> vector<64x16xf32>
    %81 = arith.addf %78, %80 : vector<64x16xf32>
    %c0_46 = arith.constant 0 : index
    %c0_47 = arith.constant 0 : index
    %82 = vector.load %arg7[%c0_46, %c0_47] : memref<1x16xf32, #tpu.memory_space<vmem>>, vector<1x16xf32>
    %83 = vector.broadcast %82 : vector<1x16xf32> to vector<64x16xf32>
    %84 = arith.mulf %81, %83 : vector<64x16xf32>
    %cst_48 = arith.constant 1.702000e+00 : f32
    %85 = vector.broadcast %cst_48 : f32 to vector<64x16xf32>
    %86 = arith.mulf %85, %84 : vector<64x16xf32>
    %87 = arith.negf %86 : vector<64x16xf32>
    %88 = math.exp %87 : vector<64x16xf32>
    %cst_49 = arith.constant 1.000000e+00 : f32
    %89 = vector.broadcast %cst_49 : f32 to vector<64x16xf32>
    %90 = arith.addf %89, %88 : vector<64x16xf32>
    %91 = arith.divf %89, %90 : vector<64x16xf32>
    %92 = arith.mulf %84, %91 : vector<64x16xf32>
    %c0_50 = arith.constant 0 : index
    %c0_51 = arith.constant 0 : index
    %93 = vector.load %arg8[%c0_50, %c0_51] : memref<16x32xf32, #tpu.memory_space<vmem>>, vector<16x32xf32>
    %cst_52 = arith.constant dense<0.000000e+00> : vector<64x32xf32>
    %94 = tpu.matmul %92, %93, %cst_52 {dimension_numbers = #tpu.dot_dimension_numbers<[1], [0], [0], [1], [0, 0, 1, 1], [], []>} : vector<64x16xf32>, vector<16x32xf32>, vector<64x32xf32> -> vector<64x32xf32>
    %c0_53 = arith.constant 0 : index
    %c0_54 = arith.constant 0 : index
    %95 = vector.load %arg9[%c0_53, %c0_54] : memref<1x32xf32, #tpu.memory_space<vmem>>, vector<1x32xf32>
    %96 = vector.broadcast %95 : vector<1x32xf32> to vector<64x32xf32>
    %97 = arith.addf %94, %96 : vector<64x32xf32>
    %c0_55 = arith.constant 0 : index
    %c0_56 = arith.constant 0 : index
    %98 = vector.load %arg10[%c0_55, %c0_56] : memref<64x32xf32, #tpu.memory_space<vmem>>, vector<64x32xf32>
    tpu.vector_store %arg10[%c0_55, %c0_56], %97 {strides = array<i32>} : memref<64x32xf32, #tpu.memory_space<vmem>>, vector<64x32xf32>,
    return
  }
  func.func @transform_0(%arg0: i32) -> (i32, i32) {
    %c0_i32 = arith.constant 0 : i32
    %c0_i32_0 = arith.constant 0 : i32
    return %arg0, %c0_i32 : i32, i32
  }
  func.func @transform_1(%arg0: i32) -> (i32, i32) {
    %c0_i32 = arith.constant 0 : i32
    %c0_i32_0 = arith.constant 0 : i32
    %c0_i32_1 = arith.constant 0 : i32
    return %c0_i32, %c0_i32_0 : i32, i32
  }
  func.func @transform_2(%arg0: i32) -> (i32, i32) {
    %c0_i32 = arith.constant 0 : i32
    %c0_i32_0 = arith.constant 0 : i32
    %c0_i32_1 = arith.constant 0 : i32
    return %c0_i32, %c0_i32_0 : i32, i32
  }
  func.func @transform_3(%arg0: i32) -> (i32, i32) {
    %c0_i32 = arith.constant 0 : i32
    %c0_i32_0 = arith.constant 0 : i32
    %c0_i32_1 = arith.constant 0 : i32
    return %c0_i32, %c0_i32_0 : i32, i32
  }
  func.func @transform_4(%arg0: i32) -> (i32, i32) {
    %c0_i32 = arith.constant 0 : i32
    %c0_i32_0 = arith.constant 0 : i32
    %c0_i32_1 = arith.constant 0 : i32
    return %c0_i32, %c0_i32_0 : i32, i32
  }
  func.func @transform_5(%arg0: i32) -> (i32, i32) {
    %c0_i32 = arith.constant 0 : i32
    %c0_i32_0 = arith.constant 0 : i32
    %c0_i32_1 = arith.constant 0 : i32
    return %c0_i32, %c0_i32_0 : i32, i32
  }
  func.func @transform_6(%arg0: i32) -> (i32, i32) {
    %c0_i32 = arith.constant 0 : i32
    %c0_i32_0 = arith.constant 0 : i32
    %c0_i32_1 = arith.constant 0 : i32
    return %c0_i32, %c0_i32_0 : i32, i32
  }
  func.func @transform_7(%arg0: i32) -> (i32, i32) {
    %c0_i32 = arith.constant 0 : i32
    %c0_i32_0 = arith.constant 0 : i32
    %c0_i32_1 = arith.constant 0 : i32
    return %c0_i32, %c0_i32_0 : i32, i32
  }
  func.func @transform_8(%arg0: i32) -> (i32, i32) {
    %c0_i32 = arith.constant 0 : i32
    %c0_i32_0 = arith.constant 0 : i32
    %c0_i32_1 = arith.constant 0 : i32
    return %c0_i32, %c0_i32_0 : i32, i32
  }
  func.func @transform_9(%arg0: i32) -> (i32, i32) {
    %c0_i32 = arith.constant 0 : i32
    %c0_i32_0 = arith.constant 0 : i32
    return %arg0, %c0_i32 : i32, i32
  }
}

module attributes {stable_mosaic.version = 11 : i64} {
  func.func @_adapter_kernel(%arg0: i32, %arg1: memref<64x32xf32, #tpu.memory_space<vmem>>, %arg2: memref<64x8xf32, #tpu.memory_space<vmem>>, %arg3: memref<32x16xf32, #tpu.memory_space<vmem>>, %arg4: memref<1x16xf32, #tpu.memory_space<vmem>>, %arg5: memref<144x16xf32, #tpu.memory_space<vmem>>, %arg6: memref<1x16xf32, #tpu.memory_space<vmem>>, %arg7: memref<1x16xf32, #tpu.memory_space<vmem>>, %arg8: memref<16x32xf32, #tpu.memory_space<vmem>>, %arg9: memref<1x32xf32, #tpu.memory_space<vmem>>, %arg10: memref<64x32xf32, #tpu.memory_space<vmem>>, %arg11: memref<96x16xf32, #tpu.memory_space<vmem>>) attributes {dimension_semantics = [#tpu.dimension_semantics<parallel>], iteration_bounds = array<i64: 2>, scalar_prefetch = 0 : i64, scratch_operands = 1 : i64, tpu.core_type = #tpu.core_type<tc>, window_params = [{transform_indices = @transform_0, window_bounds = array<i64: 64, 32>}, {pipeline_mode = #tpu.pipeline_mode<synchronous>, transform_indices = @transform_1, window_bounds = array<i64: 64, 8>}, {pipeline_mode = #tpu.pipeline_mode<synchronous>, transform_indices = @transform_2, window_bounds = array<i64: 32, 16>}, {pipeline_mode = #tpu.pipeline_mode<synchronous>, transform_indices = @transform_3, window_bounds = array<i64: 1, 16>}, {pipeline_mode = #tpu.pipeline_mode<synchronous>, transform_indices = @transform_4, window_bounds = array<i64: 144, 16>}, {pipeline_mode = #tpu.pipeline_mode<synchronous>, transform_indices = @transform_5, window_bounds = array<i64: 1, 16>}, {pipeline_mode = #tpu.pipeline_mode<synchronous>, transform_indices = @transform_6, window_bounds = array<i64: 1, 16>}, {pipeline_mode = #tpu.pipeline_mode<synchronous>, transform_indices = @transform_7, window_bounds = array<i64: 16, 32>}, {pipeline_mode = #tpu.pipeline_mode<synchronous>, transform_indices = @transform_8, window_bounds = array<i64: 1, 32>}, {transform_indices = @transform_9, window_bounds = array<i64: 64, 32>}]} {
    %c0 = arith.constant 0 : index
    %c0_0 = arith.constant 0 : index
    %0 = vector.load %arg1[%c0, %c0_0] : memref<64x32xf32, #tpu.memory_space<vmem>>, vector<64x32xf32>
    %c0_1 = arith.constant 0 : index
    %c0_2 = arith.constant 0 : index
    %1 = vector.load %arg3[%c0_1, %c0_2] : memref<32x16xf32, #tpu.memory_space<vmem>>, vector<32x16xf32>
    %cst = arith.constant dense<0.000000e+00> : vector<64x16xf32>
    %2 = tpu.matmul %0, %1, %cst {dimension_numbers = #tpu.dot_dimension_numbers<[1], [0], [0], [1], [0, 0, 1, 1], [], []>} : vector<64x32xf32>, vector<32x16xf32>, vector<64x16xf32> -> vector<64x16xf32>
    %c0_3 = arith.constant 0 : index
    %c0_4 = arith.constant 0 : index
    %3 = vector.load %arg4[%c0_3, %c0_4] : memref<1x16xf32, #tpu.memory_space<vmem>>, vector<1x16xf32>
    %4 = vector.broadcast %3 : vector<1x16xf32> to vector<64x16xf32>
    %5 = arith.addf %2, %4 : vector<64x16xf32>
    %c0_5 = arith.constant 0 : index
    %c0_6 = arith.constant 0 : index
    %6 = vector.load %arg6[%c0_5, %c0_6] : memref<1x16xf32, #tpu.memory_space<vmem>>, vector<1x16xf32>
    %7 = vector.broadcast %6 : vector<1x16xf32> to vector<64x16xf32>
    %8 = arith.mulf %5, %7 : vector<64x16xf32>
    %cst_7 = arith.constant 1.702000e+00 : f32
    %9 = vector.broadcast %cst_7 : f32 to vector<64x16xf32>
    %10 = arith.mulf %9, %8 : vector<64x16xf32>
    %11 = arith.negf %10 : vector<64x16xf32>
    %12 = math.exp %11 : vector<64x16xf32>
    %cst_8 = arith.constant 1.000000e+00 : f32
    %13 = vector.broadcast %cst_8 : f32 to vector<64x16xf32>
    %14 = arith.addf %13, %12 : vector<64x16xf32>
    %15 = arith.divf %13, %14 : vector<64x16xf32>
    %16 = arith.mulf %8, %15 : vector<64x16xf32>
    %cst_9 = arith.constant 0.000000e+00 : f32
    %17 = vector.broadcast %cst_9 : f32 to vector<16x16xf32>
    %c0_10 = arith.constant 0 : index
    %c0_11 = arith.constant 0 : index
    %18 = vector.load %arg11[%c0_10, %c0_11] : memref<96x16xf32, #tpu.memory_space<vmem>>, vector<16x16xf32>
    tpu.vector_store %arg11[%c0_10, %c0_11], %17 {strides = array<i32>} : memref<96x16xf32, #tpu.memory_space<vmem>>, vector<16x16xf32>,
    %c80 = arith.constant 80 : index
    %c0_12 = arith.constant 0 : index
    %19 = vector.load %arg11[%c80, %c0_12] : memref<96x16xf32, #tpu.memory_space<vmem>>, vector<16x16xf32>
    tpu.vector_store %arg11[%c80, %c0_12], %17 {strides = array<i32>} : memref<96x16xf32, #tpu.memory_space<vmem>>, vector<16x16xf32>,
    %c16 = arith.constant 16 : index
    %c0_13 = arith.constant 0 : index
    %20 = vector.load %arg11[%c16, %c0_13] : memref<96x16xf32, #tpu.memory_space<vmem>>, vector<64x16xf32>
    tpu.vector_store %arg11[%c16, %c0_13], %16 {strides = array<i32>} : memref<96x16xf32, #tpu.memory_space<vmem>>, vector<64x16xf32>,
    %c0_14 = arith.constant 0 : index
    %c0_15 = arith.constant 0 : index
    %21 = vector.load %arg2[%c0_14, %c0_15] : memref<64x8xf32, #tpu.memory_space<vmem>>, vector<64x8xf32>
    %c7 = arith.constant 7 : index
    %c0_16 = arith.constant 0 : index
    %22 = vector.load %arg11[%c7, %c0_16] : memref<96x16xf32, #tpu.memory_space<vmem>>, vector<64x16xf32>
    %23 = vector.extract_strided_slice %21 {offsets = [0, 0], sizes = [64, 1], strides = [1, 1]} : vector<64x8xf32> to vector<64x1xf32>
    %24 = vector.broadcast %23 : vector<64x1xf32> to vector<64x16xf32>
    %25 = arith.mulf %22, %24 : vector<64x16xf32>
    %c8 = arith.constant 8 : index
    %c0_17 = arith.constant 0 : index
    %26 = vector.load %arg11[%c8, %c0_17] : memref<96x16xf32, #tpu.memory_space<vmem>>, vector<64x16xf32>
    %27 = vector.extract_strided_slice %21 {offsets = [0, 1], sizes = [64, 1], strides = [1, 1]} : vector<64x8xf32> to vector<64x1xf32>
    %28 = vector.broadcast %27 : vector<64x1xf32> to vector<64x16xf32>
    %29 = arith.mulf %26, %28 : vector<64x16xf32>
    %c9 = arith.constant 9 : index
    %c0_18 = arith.constant 0 : index
    %30 = vector.load %arg11[%c9, %c0_18] : memref<96x16xf32, #tpu.memory_space<vmem>>, vector<64x16xf32>
    %31 = vector.extract_strided_slice %21 {offsets = [0, 2], sizes = [64, 1], strides = [1, 1]} : vector<64x8xf32> to vector<64x1xf32>
    %32 = vector.broadcast %31 : vector<64x1xf32> to vector<64x16xf32>
    %33 = arith.mulf %30, %32 : vector<64x16xf32>
    %c15 = arith.constant 15 : index
    %c0_19 = arith.constant 0 : index
    %34 = vector.load %arg11[%c15, %c0_19] : memref<96x16xf32, #tpu.memory_space<vmem>>, vector<64x16xf32>
    %35 = vector.extract_strided_slice %21 {offsets = [0, 3], sizes = [64, 1], strides = [1, 1]} : vector<64x8xf32> to vector<64x1xf32>
    %36 = vector.broadcast %35 : vector<64x1xf32> to vector<64x16xf32>
    %37 = arith.mulf %34, %36 : vector<64x16xf32>
    %c17 = arith.constant 17 : index
    %c0_20 = arith.constant 0 : index
    %38 = vector.load %arg11[%c17, %c0_20] : memref<96x16xf32, #tpu.memory_space<vmem>>, vector<64x16xf32>
    %39 = vector.extract_strided_slice %21 {offsets = [0, 4], sizes = [64, 1], strides = [1, 1]} : vector<64x8xf32> to vector<64x1xf32>
    %40 = vector.broadcast %39 : vector<64x1xf32> to vector<64x16xf32>
    %41 = arith.mulf %38, %40 : vector<64x16xf32>
    %c23 = arith.constant 23 : index
    %c0_21 = arith.constant 0 : index
    %42 = vector.load %arg11[%c23, %c0_21] : memref<96x16xf32, #tpu.memory_space<vmem>>, vector<64x16xf32>
    %43 = vector.extract_strided_slice %21 {offsets = [0, 5], sizes = [64, 1], strides = [1, 1]} : vector<64x8xf32> to vector<64x1xf32>
    %44 = vector.broadcast %43 : vector<64x1xf32> to vector<64x16xf32>
    %45 = arith.mulf %42, %44 : vector<64x16xf32>
    %c24 = arith.constant 24 : index
    %c0_22 = arith.constant 0 : index
    %46 = vector.load %arg11[%c24, %c0_22] : memref<96x16xf32, #tpu.memory_space<vmem>>, vector<64x16xf32>
    %47 = vector.extract_strided_slice %21 {offsets = [0, 6], sizes = [64, 1], strides = [1, 1]} : vector<64x8xf32> to vector<64x1xf32>
    %48 = vector.broadcast %47 : vector<64x1xf32> to vector<64x16xf32>
    %49 = arith.mulf %46, %48 : vector<64x16xf32>
    %c25 = arith.constant 25 : index
    %c0_23 = arith.constant 0 : index
    %50 = vector.load %arg11[%c25, %c0_23] : memref<96x16xf32, #tpu.memory_space<vmem>>, vector<64x16xf32>
    %51 = vector.extract_strided_slice %21 {offsets = [0, 7], sizes = [64, 1], strides = [1, 1]} : vector<64x8xf32> to vector<64x1xf32>
    %52 = vector.broadcast %51 : vector<64x1xf32> to vector<64x16xf32>
    %53 = arith.mulf %50, %52 : vector<64x16xf32>
    %cst_24 = arith.constant 0.000000e+00 : f32
    %54 = vector.broadcast %cst_24 : f32 to vector<64x16xf32>
    %c0_25 = arith.constant 0 : index
    %c0_26 = arith.constant 0 : index
    %55 = vector.load %arg5[%c0_25, %c0_26] : memref<144x16xf32, #tpu.memory_space<vmem>>, vector<16x16xf32>
    %cst_27 = arith.constant dense<0.000000e+00> : vector<64x16xf32>
    %56 = tpu.matmul %25, %55, %cst_27 {dimension_numbers = #tpu.dot_dimension_numbers<[1], [0], [0], [1], [0, 0, 1, 1], [], []>} : vector<64x16xf32>, vector<16x16xf32>, vector<64x16xf32> -> vector<64x16xf32>
    %57 = arith.addf %54, %56 : vector<64x16xf32>
    %c16_28 = arith.constant 16 : index
    %c0_29 = arith.constant 0 : index
    %58 = vector.load %arg5[%c16_28, %c0_29] : memref<144x16xf32, #tpu.memory_space<vmem>>, vector<16x16xf32>
    %cst_30 = arith.constant dense<0.000000e+00> : vector<64x16xf32>
    %59 = tpu.matmul %29, %58, %cst_30 {dimension_numbers = #tpu.dot_dimension_numbers<[1], [0], [0], [1], [0, 0, 1, 1], [], []>} : vector<64x16xf32>, vector<16x16xf32>, vector<64x16xf32> -> vector<64x16xf32>
    %60 = arith.addf %57, %59 : vector<64x16xf32>
    %c32 = arith.constant 32 : index
    %c0_31 = arith.constant 0 : index
    %61 = vector.load %arg5[%c32, %c0_31] : memref<144x16xf32, #tpu.memory_space<vmem>>, vector<16x16xf32>
    %cst_32 = arith.constant dense<0.000000e+00> : vector<64x16xf32>
    %62 = tpu.matmul %33, %61, %cst_32 {dimension_numbers = #tpu.dot_dimension_numbers<[1], [0], [0], [1], [0, 0, 1, 1], [], []>} : vector<64x16xf32>, vector<16x16xf32>, vector<64x16xf32> -> vector<64x16xf32>
    %63 = arith.addf %60, %62 : vector<64x16xf32>
    %c48 = arith.constant 48 : index
    %c0_33 = arith.constant 0 : index
    %64 = vector.load %arg5[%c48, %c0_33] : memref<144x16xf32, #tpu.memory_space<vmem>>, vector<16x16xf32>
    %cst_34 = arith.constant dense<0.000000e+00> : vector<64x16xf32>
    %65 = tpu.matmul %37, %64, %cst_34 {dimension_numbers = #tpu.dot_dimension_numbers<[1], [0], [0], [1], [0, 0, 1, 1], [], []>} : vector<64x16xf32>, vector<16x16xf32>, vector<64x16xf32> -> vector<64x16xf32>
    %66 = arith.addf %63, %65 : vector<64x16xf32>
    %c64 = arith.constant 64 : index
    %c0_35 = arith.constant 0 : index
    %67 = vector.load %arg5[%c64, %c0_35] : memref<144x16xf32, #tpu.memory_space<vmem>>, vector<16x16xf32>
    %cst_36 = arith.constant dense<0.000000e+00> : vector<64x16xf32>
    %68 = tpu.matmul %16, %67, %cst_36 {dimension_numbers = #tpu.dot_dimension_numbers<[1], [0], [0], [1], [0, 0, 1, 1], [], []>} : vector<64x16xf32>, vector<16x16xf32>, vector<64x16xf32> -> vector<64x16xf32>
    %69 = arith.addf %66, %68 : vector<64x16xf32>
    %c80_37 = arith.constant 80 : index
    %c0_38 = arith.constant 0 : index
    %70 = vector.load %arg5[%c80_37, %c0_38] : memref<144x16xf32, #tpu.memory_space<vmem>>, vector<16x16xf32>
    %cst_39 = arith.constant dense<0.000000e+00> : vector<64x16xf32>
    %71 = tpu.matmul %41, %70, %cst_39 {dimension_numbers = #tpu.dot_dimension_numbers<[1], [0], [0], [1], [0, 0, 1, 1], [], []>} : vector<64x16xf32>, vector<16x16xf32>, vector<64x16xf32> -> vector<64x16xf32>
    %72 = arith.addf %69, %71 : vector<64x16xf32>
    %c96 = arith.constant 96 : index
    %c0_40 = arith.constant 0 : index
    %73 = vector.load %arg5[%c96, %c0_40] : memref<144x16xf32, #tpu.memory_space<vmem>>, vector<16x16xf32>
    %cst_41 = arith.constant dense<0.000000e+00> : vector<64x16xf32>
    %74 = tpu.matmul %45, %73, %cst_41 {dimension_numbers = #tpu.dot_dimension_numbers<[1], [0], [0], [1], [0, 0, 1, 1], [], []>} : vector<64x16xf32>, vector<16x16xf32>, vector<64x16xf32> -> vector<64x16xf32>
    %75 = arith.addf %72, %74 : vector<64x16xf32>
    %c112 = arith.constant 112 : index
    %c0_42 = arith.constant 0 : index
    %76 = vector.load %arg5[%c112, %c0_42] : memref<144x16xf32, #tpu.memory_space<vmem>>, vector<16x16xf32>
    %cst_43 = arith.constant dense<0.000000e+00> : vector<64x16xf32>
    %77 = tpu.matmul %49, %76, %cst_43 {dimension_numbers = #tpu.dot_dimension_numbers<[1], [0], [0], [1], [0, 0, 1, 1], [], []>} : vector<64x16xf32>, vector<16x16xf32>, vector<64x16xf32> -> vector<64x16xf32>
    %78 = arith.addf %75, %77 : vector<64x16xf32>
    %c128 = arith.constant 128 : index
    %c0_44 = arith.constant 0 : index
    %79 = vector.load %arg5[%c128, %c0_44] : memref<144x16xf32, #tpu.memory_space<vmem>>, vector<16x16xf32>
    %cst_45 = arith.constant dense<0.000000e+00> : vector<64x16xf32>
    %80 = tpu.matmul %53, %79, %cst_45 {dimension_numbers = #tpu.dot_dimension_numbers<[1], [0], [0], [1], [0, 0, 1, 1], [], []>} : vector<64x16xf32>, vector<16x16xf32>, vector<64x16xf32> -> vector<64x16xf32>
    %81 = arith.addf %78, %80 : vector<64x16xf32>
    %c0_46 = arith.constant 0 : index
    %c0_47 = arith.constant 0 : index
    %82 = vector.load %arg7[%c0_46, %c0_47] : memref<1x16xf32, #tpu.memory_space<vmem>>, vector<1x16xf32>
    %83 = vector.broadcast %82 : vector<1x16xf32> to vector<64x16xf32>
    %84 = arith.mulf %81, %83 : vector<64x16xf32>
    %cst_48 = arith.constant 1.702000e+00 : f32
    %85 = vector.broadcast %cst_48 : f32 to vector<64x16xf32>
    %86 = arith.mulf %85, %84 : vector<64x16xf32>
    %87 = arith.negf %86 : vector<64x16xf32>
    %88 = math.exp %87 : vector<64x16xf32>
    %cst_49 = arith.constant 1.000000e+00 : f32
    %89 = vector.broadcast %cst_49 : f32 to vector<64x16xf32>
    %90 = arith.addf %89, %88 : vector<64x16xf32>
    %91 = arith.divf %89, %90 : vector<64x16xf32>
    %92 = arith.mulf %84, %91 : vector<64x16xf32>
    %c0_50 = arith.constant 0 : index
    %c0_51 = arith.constant 0 : index
    %93 = vector.load %arg8[%c0_50, %c0_51] : memref<16x32xf32, #tpu.memory_space<vmem>>, vector<16x32xf32>
    %cst_52 = arith.constant dense<0.000000e+00> : vector<64x32xf32>
    %94 = tpu.matmul %92, %93, %cst_52 {dimension_numbers = #tpu.dot_dimension_numbers<[1], [0], [0], [1], [0, 0, 1, 1], [], []>} : vector<64x16xf32>, vector<16x32xf32>, vector<64x32xf32> -> vector<64x32xf32>
    %c0_53 = arith.constant 0 : index
    %c0_54 = arith.constant 0 : index
    %95 = vector.load %arg9[%c0_53, %c0_54] : memref<1x32xf32, #tpu.memory_space<vmem>>, vector<1x32xf32>
    %96 = vector.broadcast %95 : vector<1x32xf32> to vector<64x32xf32>
    %97 = arith.addf %94, %96 : vector<64x32xf32>
    %c0_55 = arith.constant 0 : index
    %c0_56 = arith.constant 0 : index
    %98 = vector.load %arg10[%c0_55, %c0_56] : memref<64x32xf32, #tpu.memory_space<vmem>>, vector<64x32xf32>
    tpu.vector_store %arg10[%c0_55, %c0_56], %97 {strides = array<i32>} : memref<64x32xf32, #tpu.memory_space<vmem>>, vector<64x32xf32>,
    return
  }
  func.func @transform_0(%arg0: i32) -> (i32, i32) {
    %c0_i32 = arith.constant 0 : i32
    %c0_i32_0 = arith.constant 0 : i32
    return %arg0, %c0_i32 : i32, i32
  }
  func.func @transform_1(%arg0: i32) -> (i32, i32) {
    %c0_i32 = arith.constant 0 : i32
    %c0_i32_0 = arith.constant 0 : i32
    %c0_i32_1 = arith.constant 0 : i32
    return %c0_i32, %c0_i32_0 : i32, i32
  }
  func.func @transform_2(%arg0: i32) -> (i32, i32) {
    %c0_i32 = arith.constant 0 : i32
    %c0_i32_0 = arith.constant 0 : i32
    %c0_i32_1 = arith.constant 0 : i32
    return %c0_i32, %c0_i32_0 : i32, i32
  }
  func.func @transform_3(%arg0: i32) -> (i32, i32) {
    %c0_i32 = arith.constant 0 : i32
    %c0_i32_0 = arith.constant 0 : i32
    %c0_i32_1 = arith.constant 0 : i32
    return %c0_i32, %c0_i32_0 : i32, i32
  }
  func.func @transform_4(%arg0: i32) -> (i32, i32) {
    %c0_i32 = arith.constant 0 : i32
    %c0_i32_0 = arith.constant 0 : i32
    %c0_i32_1 = arith.constant 0 : i32
    return %c0_i32, %c0_i32_0 : i32, i32
  }
  func.func @transform_5(%arg0: i32) -> (i32, i32) {
    %c0_i32 = arith.constant 0 : i32
    %c0_i32_0 = arith.constant 0 : i32
    %c0_i32_1 = arith.constant 0 : i32
    return %c0_i32, %c0_i32_0 : i32, i32
  }
  func.func @transform_6(%arg0: i32) -> (i32, i32) {
    %c0_i32 = arith.constant 0 : i32
    %c0_i32_0 = arith.constant 0 : i32
    %c0_i32_1 = arith.constant 0 : i32
    return %c0_i32, %c0_i32_0 : i32, i32
  }
  func.func @transform_7(%arg0: i32) -> (i32, i32) {
    %c0_i32 = arith.constant 0 : i32
    %c0_i32_0 = arith.constant 0 : i32
    %c0_i32_1 = arith.constant 0 : i32
    return %c0_i32, %c0_i32_0 : i32, i32
  }
  func.func @transform_8(%arg0: i32) -> (i32, i32) {
    %c0_i32 = arith.constant 0 : i32
    %c0_i32_0 = arith.constant 0 : i32
    %c0_i32_1 = arith.constant 0 : i32
    return %c0_i32, %c0_i32_0 : i32, i32
  }
  func.func @transform_9(%arg0: i32) -> (i32, i32) {
    %c0_i32 = arith.constant 0 : i32
    %c0_i32_0 = arith.constant 0 : i32
    return %arg0, %c0_i32 : i32, i32
  }
}

</mosaic_0001>

<bundles_post_ra>
// kernel: tpu_custom_call.1
= control target key start
LH: loop header
LB: loop body
LE: loop exit
PB: predicated region body
PF: predicated region fallthrough
CT: control target
= control target key end

     0   :  { %s2312_s30 = smov 0   ;;  %s3168_s0 = inlined_call_operand.vmem [shape: f32[128,32], index: 0, kind: input, shape index: {}]   ;;  %s3169_s1 = inlined_call_operand.vmem [shape: f32[64,8], index: 1, kind: input, shape index: {}]   ;;  %s3170_s2 = inlined_call_operand.vmem [shape: f32[32,16], index: 2, kind: input, shape index: {}]   ;;  %s3171_s3 = inlined_call_operand.vmem [shape: f32[1,16], index: 3, kind: input, shape index: {}]   ;;  %s3172_s4 = inlined_call_operand.vmem [shape: f32[144,16], index: 4, kind: input, shape index: {}]   ;;  %s3173_s5 = inlined_call_operand.vmem [shape: f32[1,16], index: 5, kind: input, shape index: {}]   ;;  %s3174_s6 = inlined_call_operand.vmem [shape: f32[1,16], index: 6, kind: input, shape index: {}]   ;;  %s3175_s7 = inlined_call_operand.vmem [shape: f32[16,32], index: 7, kind: input, shape index: {}]   ;;  %s3176_s8 = inlined_call_operand.vmem [shape: f32[1,32], index: 8, kind: input, shape index: {}]   ;;  %s3177_s9 = inlined_call_operand.vmem [shape: f32[128,32], index: 9, kind: output, shape index: {}]  }
   0x1 LB: > { %s1985_s10 = sadd.s32 4294967295, %s2251_s30   ;;  %p1989_p0 = scmp.ge.s32.totalorder %s2251_s30, 1  ;;  %s2251_s30 = sphi %s2312_s30, %s19_s30  }
   0x2   : > { %p288_p1 = scmp.lt.s32.totalorder %s2251_s30, 3 }
   0x4   : > { %p289_p2 = pnand %p1989_p0, %p288_p1 }
   0x5   : > { %s1990_s17 = sshll.u32 (!%p289_p2), %s1985_s10, 3 }
   0x6   : > { %292 = sbr.rel (%p289_p2) target bundleno = 675 (0x2a3), region = 56  ;;  %p325_p3 = scmp.lt.s32.totalorder (!%p289_p2), %s1990_s17, 15 }
   0xb   : > { %v347_v0 = vld [vmem:[%s3170_s2 + $0x18] sm:$0xff]  ;;  %v2331_v2 = vld [vmem:[%s3169_s1 + $0x10] sm:$0xff]  ;;  %v2253_v3 = vmov 0   ;;  %v2341_v5 = vld [vmem:[%s3169_s1 + $0x8] sm:$0xff]  ;;  %s3181_s17 = smov (!%p325_p3, %s1990_s17), 15  ;;  %vm352_vm0 = vcmask 261120  }
   0xc   : > { %v2326_v1 = vld [vmem:[%s3169_s1 + $0x18] sm:$0xff]  ;;  %2127 = vset.pattern.permute.xlu2 %v2253_v3  ;;  %2125 = vset.pattern.permute.xlu1 %v2253_v3  ;;  %v346_v4 = vld [vmem:[%s3170_s2 + $0x10] sm:$0xff]  ;;  %v345_v6 = vld [vmem:[%s3170_s2 + $0x8] sm:$0xff]  ;;  %s1991_s26 = sshll.u32 %s3181_s17, 3  ;;  %v2254_v9 = vmov 1   ;;  %v2255_v18 = vmov 3  }
   0xd   : > { %389 = vmatpush.msra.mxu0 %v347_v0  ;;  %644 = vperm.xlu2 %2127, %v2326_v1   ;;  %v344_v7 = vld [vmem:[%s3170_s2] sm:$0xff]  ;;  %s2361_s29 = scalar_lea.vmem %s3168_s0, %s1991_s26  ;;  %v2382_v12 = vld [vmem:[%s3169_s1 + $0x28] sm:$0xff]  ;;  %v2393_v14 = vld [vmem:[%s3169_s1 + $0x30] sm:$0xff]  ;;  %v2256_v20 = vmov 2   ;;  %v2257_v24 = vmov 7   ;;  %v2258_v25 = vmov 4   ;;  %s334_s16 = scalar_lea.vmem %s3177_s9, %s1991_s26 }
   0xe   : > { %639 = vperm.xlu1 %2125, %v2331_v2   ;;  %2123 = vset.pattern.permute.xlu0 %v2253_v3  ;;  %v336_v8 = vld [vmem:[%s2361_s29] sm:$0xff]  ;;  %v337_v10 = vld [vmem:[%s2361_s29 + $0x8] sm:$0xff]  ;;  %v338_v13 = vld [vmem:[%s2361_s29 + $0x10] sm:$0xff]  ;;  %v2259_v26 = vmov 5   ;;  %v2260_v27 = vmov 6   ;;  %vm598_vm1 = vcmask 130048  }
   0xf   : > { %390 = vmatpush.msra.mxu0 %v346_v4  ;;  %634 = vperm.xlu0 %2123, %v2341_v5   ;;  %v2375_v11 = vld [vmem:[%s3169_s1 + $0x20] sm:$0xff]  ;;  %v2400_v15 = vld [vmem:[%s3169_s1 + $0x38] sm:$0xff]  ;;  %v341_v21 = vld [vmem:[%s2361_s29 + $0x28] sm:$0xff]  ;;  %v2261_v43 = vmov 0.0  }
  0x10   : > { %v339_v16 = vld [vmem:[%s2361_s29 + $0x18] sm:$0xff]  ;;  %v340_v17 = vld [vmem:[%s2361_s29 + $0x20] sm:$0xff]  ;;  %v342_v22 = vld [vmem:[%s2361_s29 + $0x30] sm:$0xff]  ;;  %600 = vst.msk [vmem:[#allocation2 + $0x8] sm:$0xff] %vm598_vm1, %v2261_v43 }
  0x11   : > { %391 = vmatpush.msra.mxu0 %v345_v6  ;;  %v2416_v19 = vld [vmem:[%s3169_s1] sm:$0xff]  ;;  %v343_v23 = vld [vmem:[%s2361_s29 + $0x38] sm:$0xff]  ;;  %599 = vst.msk [vmem:[#allocation2] sm:$0xff] %vm598_vm1, %v2261_v43  ;;  %v1012_v54 = vld [vmem:[%s3172_s4 + $0x8] sm:$0xff] }
  0x12   : > { %v2485_v35 = vld [vmem:[%s3171_s3] ss:$0 sm:$0xff]  ;;  %601 = vst.msk [vmem:[#allocation2 + $0x50] sm:$0xff] %vm598_vm1, %v2261_v43  ;;  %v1014_v53 = vld [vmem:[%s3172_s4 + $0x18] sm:$0xff]  ;;  %v1013_v59 = vld [vmem:[%s3172_s4 + $0x10] sm:$0xff]  ;;  %2102 = vmatpush.msra.mxu2 %v1012_v54 }
  0x13   : > { %392 = vmatpush.msra.mxu0 %v344_v7  ;;  %v2493_v36 = vld [vmem:[%s3173_s5] ss:$0 sm:$0xff]  ;;  %602 = vst.msk [vmem:[#allocation2 + $0x58] sm:$0xff] %vm598_vm1, %v2261_v43  ;;  %2100 = vmatpush.msra.mxu1 %v1014_v53  ;;  %v2551_v4 = vld [vmem:[%s3172_s4 + $0x28] sm:$0xff] }
  0x14   : > { %1994 = vmatmul.msk.f32.vlgmr.msra.gmra.mxu0 %vm352_vm0, %v336_v8  ;;  %v1011_v60 = vld [vmem:[%s3172_s4] sm:$0xff]  ;;  %2104 = vmatpush.msra.mxu3 %v2551_v4 }
  0x15   : > { %2128 = vset.pattern.permute.xlu2 %v2254_v9  ;;  %1053 = vmatpush.msrb.mxu0 %v1014_v53 }
  0x16   : > { %2126 = vset.pattern.permute.xlu1 %v2254_v9  ;;  %696 = vperm.xlu2 %2128, %v2326_v1  }
  0x17   : > { %692 = vperm.xlu1 %2126, %v2331_v2   ;;  %2124 = vset.pattern.permute.xlu0 %v2254_v9 }
  0x18   : > { %688 = vperm.xlu0 %2124, %v2341_v5   ;;  %2101 = vmatpush.msra.mxu1 %v1013_v59 }
  0x19   : > { %2103 = vmatpush.msra.mxu2 %v1011_v60  ;;  %1054 = vmatpush.msrb.mxu0 %v1013_v59 }
  0x1b   : > { %1118 = vmatpush.msra.mxu0 %v1012_v54 }
  0x1c   : > { %1995 = vmatmul.msk.f32.gmra.mxu0 %vm352_vm0, %v337_v10  ;;  %v2563_v10 = vld [vmem:[%s3172_s4 + $0x20] sm:$0xff] }
  0x1d   : > { %1119 = vmatpush.msra.mxu0 %v1011_v60  ;;  %2105 = vmatpush.msra.mxu3 %v2563_v10 }
  0x1e   : > { %700 = vperm.xlu2 %2128, %v2375_v11  }
  0x1f   : > { %2129 = vset.pattern.permute.xlu1 %v2253_v3 }
  0x20   : > { %649 = vperm.xlu1 %2129, %v2375_v11   ;;  %2130 = vset.pattern.permute.xlu0 %v2253_v3 }
  0x21   : > { %654 = vperm.xlu0 %2130, %v2382_v12  }
  0x24   : > { %1996 = vmatmul.msk.f32.gmra.mxu0 %vm352_vm0, %v338_v13 }
  0x26   : > { %2132 = vset.pattern.permute.xlu2 %v2253_v3 }
  0x27   : > { %659 = vperm.xlu2 %2132, %v2393_v14  }
  0x28   : > { %2131 = vset.pattern.permute.xlu1 %v2254_v9 }
  0x29   : > { %704 = vperm.xlu1 %2131, %v2382_v12   ;;  %2133 = vset.pattern.permute.xlu0 %v2254_v9 }
  0x2a   : > { %712 = vperm.xlu0 %2133, %v2400_v15  }
  0x2c   : > { %1997 = vmatmul.msk.f32.gmra.mxu0 %vm352_vm0, %v339_v16 }
  0x2f   : > { %664 = vperm.xlu2 %2132, %v2400_v15  }
  0x31   : > { %708 = vperm.xlu1 %2131, %v2393_v14  }
  0x32   : > { %2138 = vset.pattern.permute.xlu0 %v2255_v18 }
  0x33   : > { %796 = vperm.xlu0 %2138, %v2375_v11  }
  0x34   : > { %1998 = vmatmul.msk.f32.gmra.mxu0 %vm352_vm0, %v340_v17 }
  0x37   : > { %2135 = vset.pattern.permute.xlu2 %v2255_v18 }
  0x38   : > { %780 = vperm.xlu2 %2135, %v2416_v19  }
  0x39   : > { %2134 = vset.pattern.permute.xlu1 %v2256_v20 }
  0x3a   : > { %736 = vperm.xlu1 %2134, %v2341_v5  }
  0x3b   : > { %2139 = vset.pattern.permute.xlu0 %v2256_v20 }
  0x3c   : > { %1999 = vmatmul.msk.f32.gmra.mxu0 %vm352_vm0, %v341_v21  ;;  %744 = vperm.xlu0 %2139, %v2326_v1  }
  0x40   : > { %784 = vperm.xlu2 %2135, %v2341_v5  }
  0x42   : > { %740 = vperm.xlu1 %2134, %v2331_v2  }
  0x44   : > { %2000 = vmatmul.msk.f32.gmra.mxu0 %vm352_vm0, %v342_v22  ;;  %760 = vperm.xlu0 %2139, %v2400_v15  }
  0x48   : > { %2137 = vset.pattern.permute.xlu2 %v2256_v20 }
  0x49   : > { %748 = vperm.xlu2 %2137, %v2375_v11  }
  0x4a   : > { %2136 = vset.pattern.permute.xlu1 %v2255_v18 }
  0x4b   : > { %788 = vperm.xlu1 %2136, %v2331_v2  }
  0x4c   : > { %2001 = vmatmul.msk.f32.gmra.mxu0 %vm352_vm0, %v343_v23  ;;  %2146 = vset.pattern.permute.xlu0 %v2257_v24 }
  0x4d   : > { %972 = vperm.xlu0 %2146, %v2416_v19  }
  0x51   : > { %752 = vperm.xlu2 %2137, %v2382_v12  }
  0x53   : > { %792 = vperm.xlu1 %2136, %v2326_v1  }
  0x55   : > { %2150 = vset.pattern.permute.xlu0 %v2258_v25 }
  0x56   : > { %836 = vperm.xlu0 %2150, %v2331_v2  }
  0x59   : > { %756 = vperm.xlu2 %2137, %v2393_v14  }
  0x5b   : > { %2140 = vset.pattern.permute.xlu1 %v2254_v9 }
  0x5c   : > { %684 = vperm.xlu1 %2140, %v2416_v19  }
  0x5e   : > { %2155 = vset.pattern.permute.xlu0 %v2259_v26 }
  0x5f   : > { %884 = vperm.xlu0 %2155, %v2331_v2  }
  0x61   : > { %2142 = vset.pattern.permute.xlu2 %v2253_v3 }
  0x62   : > { %629 = vperm.xlu2 %2142, %v2416_v19  }
  0x64   : > { %2141 = vset.pattern.permute.xlu1 %v2255_v18 }
  0x65   : > { %800 = vperm.xlu1 %2141, %v2382_v12  }
  0x67   : > { %2160 = vset.pattern.permute.xlu0 %v2260_v27  ;;  %v2447_v28 = vpop.permute.xlu2 %644 }
  0x68   : > { %936 = vperm.xlu0 %2160, %v2326_v1  }
  0x6a   : > { %2143 = vset.pattern.permute.xlu2 %v2256_v20 }
  0x6b   : > { %732 = vperm.xlu2 %2143, %v2416_v19  }
  0x6d   : > { %804 = vperm.xlu1 %2141, %v2393_v14  }
  0x70   : > { %v2452_v29 = vpop.permute.xlu2 %696  ;;  %2165 = vset.pattern.permute.xlu0 %v2257_v24 }
  0x71   : > { %992 = vperm.xlu0 %2165, %v2382_v12  }
  0x73   : > { %2145 = vset.pattern.permute.xlu2 %v2255_v18 }
  0x74   : > { %808 = vperm.xlu2 %2145, %v2400_v15  }
  0x75   : > { %2144 = vset.pattern.permute.xlu1 %v2258_v25 }
  0x76   : > { %828 = vperm.xlu1 %2144, %v2416_v19  }
  0x78   : > { %v2459_v30 = vpop.permute.xlu2 %700 }
  0x79   : > { %2170 = vset.pattern.permute.xlu0 %v2258_v25 }
  0x7a   : > { %856 = vperm.xlu0 %2170, %v2400_v15  }
  0x7c   : > { %2147 = vset.pattern.permute.xlu2 %v2259_v26 }
  0x7d   : > { %876 = vperm.xlu2 %2147, %v2416_v19  }
  0x7e   : > { %832 = vperm.xlu1 %2144, %v2341_v5  }
  0x80   : > { %v2466_v31 = vpop.permute.xlu1 %639 }
  0x81   : > { %v2468_v32 = vpop.permute.xlu2 %659  ;;  %v2530_v57 = vpop.permute.xlu0 %634 }
  0x82   : > { %2175 = vset.pattern.permute.xlu0 %v2260_v27 }
  0x83   : > { %952 = vperm.xlu0 %2175, %v2400_v15  }
  0x85   : > { %2149 = vset.pattern.permute.xlu2 %v2257_v24 }
  0x86   : > { %2148 = vset.pattern.permute.xlu1 %v2260_v27  ;;  %976 = vperm.xlu2 %2149, %v2341_v5  }
  0x87   : > { %924 = vperm.xlu1 %2148, %v2416_v19  }
  0x89   : > { %v2476_v33 = vpop.permute.xlu2 %664  ;;  %v2478_v34 = vpop.permute.xlu1 %692 }
  0x8a   : > { %v2575_v19 = vpop.permute.xlu0 %688 }
  0x8b   : > { %2176 = vset.pattern.permute.xlu0 %v2257_v24 }
  0x8e   : > { %2152 = vset.pattern.permute.xlu2 %v2260_v27 }
  0x8f   : > { %2151 = vset.pattern.permute.xlu1 %v2259_v26  ;;  %928 = vperm.xlu2 %2152, %v2341_v5  }
  0x90   : > { %880 = vperm.xlu1 %2151, %v2341_v5  }
  0x91   : > { %v394_v37 = vpop.f32.mrf.mxu0 }
  0x92   : > { %v395_v38 = vadd.f32 %v2485_v35, %v394_v37  ;;  %v2496_v39 = vpop.permute.xlu1 %649  ;;  %v2498_v40 = vpop.permute.xlu2 %780 }
  0x94   : > { %v2501_v41 = vmul.f32 %v2493_v36, %v395_v38 }
  0x96   : > { %v2002_v42 = vmul.f32 -1.702, %v2501_v41 }
  0x97   : > { %2154 = vset.pattern.permute.xlu2 %v2258_v25 }
  0x98   : > { %v446_v44 = vmul.f32 1.442695, %v2002_v42  ;;  %2153 = vset.pattern.permute.xlu1 %v2257_v24  ;;  %840 = vperm.xlu2 %2154, %v2326_v1  }
  0x99   : > { %980 = vperm.xlu1 %2153, %v2331_v2   ;;  %v397_v45 = vpop.f32.mrf.mxu0 }
  0x9a   : > { %2181 = vpow2.f32 %v446_v44  ;;  %v398_v46 = vadd.f32 %v2485_v35, %v397_v45  ;;  %v2513_v47 = vpop.permute.xlu2 %784 }
  0x9b   : > { %v2515_v48 = vpop.permute.xlu1 %704 }
  0x9c   : > { %v2518_v49 = vmul.f32 %v2493_v36, %v398_v46 }
  0x9e   : > { %v2003_v50 = vmul.f32 -1.702, %v2518_v49 }
  0xa0   : > { %v2182_v51 = vpop.eup %2181  ;;  %v448_v52 = vmul.f32 1.442695, %v2003_v50  ;;  %2157 = vset.pattern.permute.xlu2 %v2257_v24 }
  0xa1   : > { %v462_v55 = vadd.f32 1.0, %v2182_v51  ;;  %2156 = vset.pattern.permute.xlu1 %v2260_v27  ;;  %v400_v56 = vpop.f32.mrf.mxu0  ;;  %984 = vperm.xlu2 %2157, %v2326_v1  }
  0xa2   : > { %2183 = vpow2.f32 %v448_v52  ;;  %v401_v58 = vadd.f32 %v2485_v35, %v400_v56  ;;  %932 = vperm.xlu1 %2156, %v2331_v2  }
  0xa3   : > { %2185 = vrcp.f32 %v462_v55  ;;  %v2540_v61 = vpop.permute.xlu1 %708  ;;  %v2542_v62 = vpop.permute.xlu2 %748  ;;  %v479_v21 = vand.u32 2147483647, %v462_v55  ;;  %vm475_vm3 = vweird.f32 %v462_v55 }
  0xa4   : > { %v2545_v63 = vmul.f32 %v2493_v36, %v401_v58 }
  0xa5   : > { %vm480_vm5 = vcmp.eq.f32.partialorder %v479_v21, 8.507059e+37 }
  0xa6   : > { %v2004_v0 = vmul.f32 -1.702, %v2545_v63 }
  0xa8   : > { %v2184_v2 = vpop.eup %2183  ;;  %v450_v3 = vmul.f32 1.442695, %v2004_v0 }
  0xa9   : > { %v2186_v5 = vpop.eup %2185  ;;  %v2553_v6 = vadd.f32 1.0, %v2184_v2  ;;  %v403_v7 = vpop.f32.mrf.mxu0  ;;  %2159 = vset.pattern.permute.xlu2 %v2259_v26 }
  0xaa   : > { %v471_v8 = vmul.f32 %v2186_v5, %v462_v55  ;;  %2187 = vpow2.f32 %v450_v3  ;;  %v404_v9 = vadd.f32 %v2485_v35, %v403_v7  ;;  %2158 = vset.pattern.permute.xlu1 %v2258_v25  ;;  %888 = vperm.xlu2 %2159, %v2326_v1   ;;  %v481_v1 = vand.u32 2147483648, %v462_v55 }
  0xab   : > { %2189 = vrcp.f32 %v2553_v6  ;;  %844 = vperm.xlu1 %2158, %v2375_v11   ;;  %v2567_v13 = vpop.permute.xlu2 %752  ;;  %vm476_vm2 = vweird.f32 %v2186_v5  ;;  %v496_v58 = vand.u32 2147483648, %v2553_v6  ;;  %v494_v60 = vand.u32 2147483647, %v2553_v6 }
  0xac   : > { %v472_v16 = vsub.f32 1.0, %v471_v8  ;;  %v2571_v17 = vmul.f32 %v2493_v36, %v404_v9  ;;  %v2573_v18 = vpop.permute.xlu1 %736  ;;  %vm477_vm4 = vmor %vm475_vm3, %vm476_vm2  ;;  %v482_v43 = vor.u32 1.1754944e-38, %v481_v1  ;;  %vm490_vm7 = vweird.f32 %v2553_v6 }
  0xad   : > { %v497_v8 = vor.u32 1.1754944e-38, %v496_v58  ;;  %vm495_vm9 = vcmp.eq.f32.partialorder %v494_v60, 8.507059e+37 }
  0xae   : > { %v473_v20 = vmul.f32 %v2186_v5, %v472_v16  ;;  %v2005_v22 = vmul.f32 -1.702, %v2571_v17 }
  0xb0   : > { %v2188_v23 = vpop.eup %2187  ;;  %v474_v37 = vadd.f32 %v2186_v5, %v473_v20  ;;  %v452_v38 = vmul.f32 1.442695, %v2005_v22 }
  0xb1   : > { %v2190_v42 = vpop.eup %2189  ;;  %v2578_v44 = vadd.f32 1.0, %v2188_v23  ;;  %v406_v45 = vpop.f32.mrf.mxu0 }
  0xb2   : > { %v478_v46 = vsel %vm477_vm4, %v2186_v5, %v474_v37  ;;  %v486_v50 = vmul.f32 %v2190_v42, %v2553_v6  ;;  %2191 = vpow2.f32 %v452_v38  ;;  %2162 = vset.pattern.permute.xlu2 %v2258_v25  ;;  %v407_v55 = vadd.f32 %v2485_v35, %v406_v45 }
  0xb3   : > { %v483_v51 = vsel %vm480_vm5, %v482_v43, %v478_v46  ;;  %2193 = vrcp.f32 %v2578_v44  ;;  %2161 = vset.pattern.permute.xlu1 %v2257_v24  ;;  %848 = vperm.xlu2 %2162, %v2382_v12   ;;  %v2585_v52 = vpop.permute.xlu2 %756  ;;  %vm491_vm6 = vweird.f32 %v2190_v42  ;;  %v511_v43 = vand.u32 2147483648, %v2578_v44 }
  0xb4   : > { %v2588_v53 = vmul.f32 %v483_v51, %v2501_v41  ;;  %v487_v54 = vsub.f32 1.0, %v486_v50  ;;  %988 = vperm.xlu1 %2161, %v2375_v11   ;;  %v2592_v56 = vpop.permute.xlu1 %740  ;;  %v2599_v0 = vmul.f32 %v2493_v36, %v407_v55  ;;  %v2601_v41 = vpop.permute.xlu0 %654  ;;  %vm492_vm8 = vmor %vm490_vm7, %vm491_vm6  ;;  %v509_v51 = vand.u32 2147483647, %v2578_v44 }
  0xb5   : > { %vm505_vm11 = vweird.f32 %v2578_v44 }
  0xb6   : > { %603 = vst.msk [vmem:[#allocation2 + $0x10] sm:$0xff] %vm598_vm1, %v2588_v53  ;;  %v488_v59 = vmul.f32 %v2190_v42, %v487_v54  ;;  %v2006_v5 = vmul.f32 -1.702, %v2599_v0  ;;  %vm510_vm13 = vcmp.eq.f32.partialorder %v509_v51, 8.507059e+37 }
  0xb8   : > { %v2192_v2 = vpop.eup %2191  ;;  %v489_v3 = vadd.f32 %v2190_v42, %v488_v59  ;;  %v454_v21 = vmul.f32 1.442695, %v2006_v5 }
  0xb9   : > { %v2194_v7 = vpop.eup %2193  ;;  %v2605_v9 = vadd.f32 1.0, %v2192_v2  ;;  %v409_v16 = vpop.f32.mrf.mxu0 }
  0xba   : > { %v493_v1 = vsel %vm492_vm8, %v2190_v42, %v489_v3  ;;  %v501_v20 = vmul.f32 %v2194_v7, %v2578_v44  ;;  %v410_v45 = vadd.f32 %v2485_v35, %v409_v16  ;;  %vm506_vm10 = vweird.f32 %v2194_v7  ;;  %v1296_v44 = vld [vmem:[%s3172_s4 + $0x48] sm:$0xff] }
  0xbb   : > { %v498_v22 = vsel %vm495_vm9, %v497_v8, %v493_v1  ;;  %2195 = vrcp.f32 %v2605_v9  ;;  %2164 = vset.pattern.permute.xlu2 %v2260_v27  ;;  %vm507_vm12 = vmor %vm505_vm11, %vm506_vm10  ;;  %1335 = vmatpush.msrb.mxu2 %v1296_v44  ;;  %vm520_vm15 = vweird.f32 %v2605_v9 }
  0xbc   : > { %v2611_v6 = vmul.f32 %v498_v22, %v2518_v49  ;;  %v502_v23 = vsub.f32 1.0, %v501_v20  ;;  %2197 = vpow2.f32 %v454_v21  ;;  %2163 = vset.pattern.permute.xlu1 %v2259_v26  ;;  %940 = vperm.xlu2 %2164, %v2375_v11   ;;  %v2615_v37 = vpop.permute.xlu2 %629  ;;  %v2629_v54 = vmul.f32 %v2493_v36, %v410_v45  ;;  %v2635_v59 = vpop.permute.xlu0 %712 }
  0xbd   : > { %v676_v38 = vld [vmem:[#allocation2 + $0x10] sm:$0xff]  ;;  %892 = vperm.xlu1 %2163, %v2375_v11   ;;  %v2622_v46 = vpop.permute.xlu1 %788 }
  0xbe   : > { %v2617_v42 = vld [vmem:[#allocation2 + $0xf] sm:$0xff]  ;;  %v716_v49 = vmul.f32 %v2575_v19, %v676_v38  ;;  %604 = vst.msk [vmem:[#allocation2 + $0x18] sm:$0xff] %vm598_vm1, %v2611_v6  ;;  %v503_v50 = vmul.f32 %v2194_v7, %v502_v23  ;;  %v512_v19 = vor.u32 1.1754944e-38, %v511_v43  ;;  %v2007_v60 = vmul.f32 -1.702, %v2629_v54 }
  0xbf   : > { %v668_v55 = vmul.f32 %v2617_v42, %v2530_v57  ;;  %v524_v38 = vand.u32 2147483647, %v2605_v9  ;;  %v526_v43 = vand.u32 2147483648, %v2605_v9 }
  0xc0   : > { %v504_v58 = vadd.f32 %v2194_v7, %v503_v50  ;;  %2011 = vmatmul.msk.f32.vlgmr.msra.gmra.mxu1 %vm598_vm1, %v716_v49  ;;  %v456_v20 = vmul.f32 1.442695, %v2007_v60 }
  0xc1   : > { %v2196_v11 = vpop.eup %2195  ;;  %2019 = vmatmul.msk.f32.vlgmr.msra.gmra.mxu2 %vm598_vm1, %v668_v55  ;;  %v412_v2 = vpop.f32.mrf.mxu0  ;;  %vm525_vm3 = vcmp.eq.f32.partialorder %v524_v38, 8.507059e+37 }
  0xc2   : > { %v2198_v3 = vpop.eup %2197  ;;  %v508_v5 = vsel %vm507_vm12, %v2194_v7, %v504_v58  ;;  %v516_v57 = vmul.f32 %v2196_v11, %v2605_v9  ;;  %v413_v8 = vadd.f32 %v2485_v35, %v412_v2  ;;  %vm521_vm14 = vweird.f32 %v2196_v11  ;;  %v1221_v58 = vld [vmem:[%s3172_s4 + $0x38] sm:$0xff] }
  0xc3   : > { %v513_v16 = vsel %vm510_vm13, %v512_v19, %v508_v5  ;;  %v2644_v1 = vadd.f32 1.0, %v2198_v3  ;;  %1260 = vmatpush.msrb.mxu1 %v1221_v58  ;;  %vm522_vm2 = vmor %vm520_vm15, %vm521_vm14  ;;  %v527_v2 = vor.u32 1.1754944e-38, %v526_v43  ;;  %v675_v43 = vld [vmem:[#allocation2 + $0x8] sm:$0xff] }
  0xc4   : > { %v2647_v21 = vmul.f32 %v513_v16, %v2545_v63  ;;  %v517_v22 = vsub.f32 1.0, %v516_v57  ;;  %v2650_v7 = vmul.f32 %v2493_v36, %v413_v8  ;;  %2167 = vset.pattern.permute.xlu2 %v2259_v26 }
  0xc5   : > { %v2653_v23 = vld [vmem:[#allocation2 + $0x17] sm:$0xff]  ;;  %2199 = vrcp.f32 %v2644_v1  ;;  %2166 = vset.pattern.permute.xlu1 %v2258_v25  ;;  %v2661_v63 = vpop.permute.xlu1 %792  ;;  %896 = vperm.xlu2 %2167, %v2382_v12   ;;  %v2671_v55 = vpop.permute.xlu2 %732  ;;  %v539_v58 = vand.u32 2147483647, %v2644_v1  ;;  %vm535_vm5 = vweird.f32 %v2644_v1 }
  0xc6   : > { %v2657_v45 = vld [vmem:[#allocation2 + $0x11] sm:$0xff]  ;;  %605 = vst.msk [vmem:[#allocation2 + $0x20] sm:$0xff] %vm598_vm1, %v2647_v21  ;;  %v518_v50 = vmul.f32 %v2196_v11, %v517_v22  ;;  %2201 = vpow2.f32 %v456_v20  ;;  %852 = vperm.xlu1 %2166, %v2393_v14   ;;  %v2008_v25 = vmul.f32 -1.702, %v2650_v7 }
  0xc7   : > { %v2664_v49 = vld [vmem:[#allocation2 + $0x18] sm:$0xff]  ;;  %v764_v51 = vmul.f32 %v2573_v18, %v2657_v45  ;;  %v669_v18 = vmul.f32 %v2653_v23, %v2466_v31  ;;  %vm540_vm7 = vcmp.eq.f32.partialorder %v539_v58, 8.507059e+37 }
  0xc8   : > { %v519_v19 = vadd.f32 %v2196_v11, %v518_v50  ;;  %v717_v60 = vmul.f32 %v2478_v34, %v2664_v49  ;;  %v458_v3 = vmul.f32 1.442695, %v2008_v25  ;;  %v2686_v34 = vpop.permute.xlu0 %796 }
  0xc9   : > { %2027 = vmatmul.msk.f32.vlgmr.msra.gmra.mxu3 %vm598_vm1, %v764_v51  ;;  %v415_v5 = vpop.f32.mrf.mxu0  ;;  %2020 = vmatmul.msk.f32.gmra.mxu2 %vm598_vm1, %v669_v18 }
  0xca   : > { %v523_v57 = vsel %vm522_vm2, %v2196_v11, %v519_v19  ;;  %2012 = vmatmul.msk.f32.gmra.mxu1 %vm598_vm1, %v717_v60  ;;  %v416_v9 = vadd.f32 %v2485_v35, %v415_v5  ;;  %2203 = vpow2.f32 %v458_v3  ;;  %v541_v19 = vand.u32 2147483648, %v2644_v1 }
  0xcb   : > { %v2200_v44 = vpop.eup %2199  ;;  %v528_v8 = vsel %vm525_vm3, %v527_v2, %v523_v57 }
  0xcc   : > { %v2202_v31 = vpop.eup %2201  ;;  %v2689_v16 = vmul.f32 %v528_v8, %v2571_v17  ;;  %v531_v20 = vmul.f32 %v2200_v44, %v2644_v1  ;;  %v2693_v11 = vmul.f32 %v2493_v36, %v416_v9  ;;  %vm536_vm4 = vweird.f32 %v2200_v44 }
  0xcd   : > { %v2695_v22 = vld [vmem:[#allocation2 + $0x19] sm:$0xff]  ;;  %v2697_v38 = vadd.f32 1.0, %v2202_v31  ;;  %2169 = vset.pattern.permute.xlu2 %v2257_v24  ;;  %vm537_vm6 = vmor %vm535_vm5, %vm536_vm4  ;;  %v542_v8 = vor.u32 1.1754944e-38, %v541_v19 }
  0xce   : > { %606 = vst.msk [vmem:[#allocation2 + $0x28] sm:$0xff] %vm598_vm1, %v2689_v16  ;;  %v532_v35 = vsub.f32 1.0, %v531_v20  ;;  %v765_v17 = vmul.f32 %v2592_v56, %v2695_v22  ;;  %v2704_v50 = vld [vmem:[#allocation2 + $0x1f] sm:$0xff]  ;;  %2168 = vset.pattern.permute.xlu1 %v2260_v27  ;;  %v685_v36 = vpop.permute.xlu1 %684  ;;  %v2707_v51 = vpop.permute.xlu2 %808  ;;  %996 = vperm.xlu2 %2169, %v2393_v14   ;;  %v2009_v60 = vmul.f32 -1.702, %v2693_v11 }
  0xcf   : > { %v2709_v25 = vld [vmem:[#allocation2 + $0x20] sm:$0xff]  ;;  %2205 = vrcp.f32 %v2697_v38  ;;  %944 = vperm.xlu1 %2168, %v2382_v12   ;;  %v715_v18 = vmul.f32 %v685_v36, %v675_v43  ;;  %v670_v5 = vmul.f32 %v2704_v50, %v2447_v28  ;;  %vm550_vm9 = vweird.f32 %v2697_v38 }
  0xd0   : > { %v533_v56 = vmul.f32 %v2200_v44, %v532_v35  ;;  %v718_v2 = vmul.f32 %v2452_v29, %v2709_v25  ;;  %v2204_v3 = vpop.eup %2203  ;;  %v460_v12 = vmul.f32 1.442695, %v2009_v60  ;;  %v619_v29 = vld [vmem:[#allocation2 + $0x7] sm:$0xff]  ;;  %v745_v20 = vpop.permute.xlu0 %744 }
  0xd1   : > { %2028 = vmatmul.msk.f32.gmra.mxu3 %vm598_vm1, %v765_v17  ;;  %v2723_v9 = vadd.f32 1.0, %v2204_v3  ;;  %2010 = vmatmul.msk.f32.vlgmr.msrb.gmra.mxu0 %vm598_vm1, %v715_v18  ;;  %v1295_v60 = vld [vmem:[%s3172_s4 + $0x40] sm:$0xff]  ;;  %v1220_v18 = vld [vmem:[%s3172_s4 + $0x30] sm:$0xff]  ;;  %v554_v3 = vand.u32 2147483647, %v2697_v38 }
  0xd2   : > { %v534_v57 = vadd.f32 %v2200_v44, %v533_v56  ;;  %2013 = vmatmul.msk.f32.gmra.mxu1 %vm598_vm1, %v718_v2  ;;  %2021 = vmatmul.msk.f32.gmra.mxu2 %vm598_vm1, %v670_v5 }
  0xd3   : > { %1185 = vmatpush.msrb.mxu0 %v2551_v4  ;;  %2207 = vrcp.f32 %v2723_v9  ;;  %v667_v4 = vmul.f32 %v2615_v37, %v619_v29  ;;  %v556_v37 = vand.u32 2147483648, %v2697_v38  ;;  %1336 = vmatpush.msrb.mxu2 %v1295_v60  ;;  %vm555_vm11 = vcmp.eq.f32.partialorder %v554_v3, 8.507059e+37 }
  0xd4   : > { %v538_v31 = vsel %vm537_vm6, %v2200_v44, %v534_v57  ;;  %2209 = vpow2.f32 %v460_v12  ;;  %v1445_v57 = vld [vmem:[%s3172_s4 + $0x60] sm:$0xff]  ;;  %1261 = vmatpush.msrb.mxu1 %v1220_v18  ;;  %v569_v60 = vand.u32 2147483647, %v2723_v9  ;;  %vm565_vm13 = vweird.f32 %v2723_v9 }
  0xd5   : > { %v2206_v28 = vpop.eup %2205  ;;  %v543_v1 = vsel %vm540_vm7, %v542_v8, %v538_v31  ;;  %v2731_v43 = vld [vmem:[#allocation2 + $0x21] sm:$0xff]  ;;  %1186 = vmatpush.msrb.mxu0 %v2563_v10 }
  0xd6   : > { %v2735_v35 = vmul.f32 %v543_v1, %v2599_v0  ;;  %v766_v17 = vmul.f32 %v745_v20, %v2731_v43  ;;  %v546_v36 = vmul.f32 %v2206_v28, %v2697_v38  ;;  %v2740_v44 = vld [vmem:[#allocation2 + $0x27] sm:$0xff]  ;;  %2172 = vset.pattern.permute.xlu2 %v2260_v27  ;;  %vm551_vm8 = vweird.f32 %v2206_v28  ;;  %v1371_v20 = vld [vmem:[%s3172_s4 + $0x58] sm:$0xff] }
  0xd7   : > { %v2742_v58 = vld [vmem:[#allocation2 + $0x28] sm:$0xff]  ;;  %2171 = vset.pattern.permute.xlu1 %v2259_v26  ;;  %v2746_v19 = vpop.permute.xlu1 %800  ;;  %v2748_v10 = vpop.permute.xlu2 %876  ;;  %948 = vperm.xlu2 %2172, %v2393_v14   ;;  %v671_v27 = vmul.f32 %v2740_v44, %v2496_v39  ;;  %vm2782_vm10 = vmor %vm550_vm9, %vm551_vm8  ;;  %v557_v38 = vor.u32 1.1754944e-38, %v556_v37  ;;  %v1370_v37 = vld [vmem:[%s3172_s4 + $0x50] sm:$0xff]  ;;  %vm570_vm15 = vcmp.eq.f32.partialorder %v569_v60, 8.507059e+37 }
  0xd8   : > { %607 = vst.msk [vmem:[#allocation2 + $0x30] sm:$0xff] %vm598_vm1, %v2735_v35  ;;  %v547_v0 = vsub.f32 1.0, %v546_v36  ;;  %900 = vperm.xlu1 %2171, %v2393_v14   ;;  %v719_v56 = vmul.f32 %v2459_v30, %v2742_v58  ;;  %v1446_v14 = vld [vmem:[%s3172_s4 + $0x68] sm:$0xff]  ;;  %1410 = vmatpush.msrb.mxu3 %v1371_v20 }
  0xd9   : > { %2029 = vmatmul.msk.f32.gmra.mxu3 %vm598_vm1, %v766_v17  ;;  %v2769_v2 = vpop.eup %2207  ;;  %2018 = vmatmul.msk.f32.vlgmr.msra.gmra.mxu0 %vm598_vm1, %v667_v4  ;;  %v1596_v1 = vld [vmem:[%s3172_s4 + $0x88] sm:$0xff]  ;;  %v1521_v17 = vld [vmem:[%s3172_s4 + $0x78] sm:$0xff]  ;;  %v571_v4 = vand.u32 2147483648, %v2723_v9 }
  0xda   : > { %v548_v30 = vmul.f32 %v2206_v28, %v547_v0  ;;  %v2210_v39 = vpop.eup %2209  ;;  %v561_v5 = vmul.f32 %v2769_v2, %v2723_v9  ;;  %2014 = vmatmul.msk.f32.gmra.mxu1 %vm598_vm1, %v719_v56  ;;  %2022 = vmatmul.msk.f32.gmra.mxu2 %vm598_vm1, %v671_v27  ;;  %v723_v0 = vld [vmem:[#allocation2 + $0x9] sm:$0xff]  ;;  %vm566_vm12 = vweird.f32 %v2769_v2 }
  0xdb   : > { %v2786_v29 = vadd.f32 1.0, %v2210_v39  ;;  %1485 = vmatpush.msra.mxu0 %v1446_v14  ;;  %1635 = vmatpush.msra.mxu2 %v1596_v1  ;;  %v763_v39 = vmul.f32 %v2671_v55, %v723_v0  ;;  %vm567_vm14 = vmor %vm565_vm13, %vm566_vm12  ;;  %v761_v0 = vpop.permute.xlu0 %760 }
  0xdc   : > { %v549_v12 = vadd.f32 %v2206_v28, %v548_v30  ;;  %v562_v31 = vsub.f32 1.0, %v561_v5  ;;  %1560 = vmatpush.msra.mxu1 %v1521_v17  ;;  %1411 = vmatpush.msrb.mxu3 %v1370_v37 }
  0xdd   : > { %2211 = vrcp.f32 %v2786_v29  ;;  %1486 = vmatpush.msra.mxu0 %v1445_v57  ;;  %v586_v9 = vand.u32 2147483648, %v2786_v29  ;;  %vm580_vm2 = vweird.f32 %v2786_v29 }
  0xde   : > { %v553_v36 = vsel %vm2782_vm10, %v2206_v28, %v549_v12  ;;  %v563_v27 = vmul.f32 %v2769_v2, %v562_v31  ;;  %v907_v31 = vmul.f32 %v2748_v10, %v2653_v23 }
  0xdf   : > { %v558_v56 = vsel %vm555_vm11, %v557_v38, %v553_v36  ;;  %v2807_v28 = vld [vmem:[#allocation2 + $0x30] sm:$0xff]  ;;  %v2809_v18 = vpop.permute.xlu1 %804  ;;  %2174 = vset.pattern.permute.xlu2 %v2259_v26  ;;  %v584_v38 = vand.u32 2147483647, %v2786_v29  ;;  %v587_v37 = vor.u32 1.1754944e-38, %v586_v9 }
  0xe0   : > { %v2811_v14 = vld [vmem:[#allocation2 + $0x2f] sm:$0xff]  ;;  %v2816_v3 = vmul.f32 %v558_v56, %v2629_v54  ;;  %v720_v5 = vmul.f32 %v2807_v28, %v2515_v48  ;;  %v977_v57 = vpop.permute.xlu2 %976  ;;  %2173 = vset.pattern.permute.xlu1 %v2257_v24  ;;  %v564_v12 = vadd.f32 %v2769_v2, %v563_v27  ;;  %904 = vperm.xlu2 %2174, %v2400_v15   ;;  %v572_v24 = vor.u32 1.1754944e-38, %v571_v4 }
  0xe1   : > { %v2813_v30 = vld [vmem:[#allocation2 + $0x29] sm:$0xff]  ;;  %v672_v8 = vmul.f32 %v2601_v41, %v2811_v14  ;;  %1000 = vperm.xlu1 %2173, %v2400_v15   ;;  %v2836_v26 = vmul.f32 %v977_v57, %v2731_v43  ;;  %2026 = vmatmul.msk.f32.vlgmr.msrb.gmra.mxu0 %vm598_vm1, %v763_v39  ;;  %vm585_vm5 = vcmp.eq.f32.partialorder %v584_v38, 8.507059e+37 }
  0xe2   : > { %v767_v54 = vmul.f32 %v2542_v62, %v2813_v30  ;;  %608 = vst.msk [vmem:[#allocation2 + $0x38] sm:$0xff] %vm598_vm1, %v2816_v3  ;;  %v568_v48 = vsel %vm567_vm14, %v2769_v2, %v564_v12  ;;  %2015 = vmatmul.msk.f32.gmra.mxu1 %vm598_vm1, %v720_v5  ;;  %v1520_v9 = vld [vmem:[%s3172_s4 + $0x70] sm:$0xff] }
  0xe3   : > { %2023 = vmatmul.msk.f32.gmra.mxu2 %vm598_vm1, %v672_v8  ;;  %v2212_v15 = vpop.eup %2211  ;;  %v573_v62 = vsel %vm570_vm15, %v572_v24, %v568_v48  ;;  %v2890_v48 = vpop.permute.xlu0 %972  ;;  %1561 = vmatpush.msra.mxu1 %v1520_v9 }
  0xe4   : > { %2030 = vmatmul.msk.f32.gmra.mxu3 %vm598_vm1, %v767_v54  ;;  %v2844_v41 = vmul.f32 %v573_v62, %v2650_v7  ;;  %v576_v55 = vmul.f32 %v2212_v15, %v2786_v29  ;;  %vm581_vm3 = vweird.f32 %v2212_v15 }
  0xe5   : > { %vm582_vm4 = vmor %vm580_vm2, %vm581_vm3 }
  0xe6   : > { %609 = vst.msk [vmem:[#allocation2 + $0x40] sm:$0xff] %vm598_vm1, %v2844_v41  ;;  %v577_v2 = vsub.f32 1.0, %v576_v55  ;;  %v1595_v55 = vld [vmem:[%s3172_s4 + $0x80] sm:$0xff] }
  0xe7   : > { %1636 = vmatpush.msra.mxu2 %v1595_v55 }
  0xe8   : > { %v829_v1 = vpop.permute.xlu1 %828  ;;  %v578_v20 = vmul.f32 %v2212_v15, %v577_v2 }
  0xe9   : > { %v2854_v7 = vld [vmem:[#allocation2 + $0x37] sm:$0xff]  ;;  %v929_v4 = vpop.permute.xlu2 %928  ;;  %2058 = vmatmul.msk.f32.vlgmr.msra.gmra.mxu0 %vm598_vm1, %v907_v31  ;;  %v859_v2 = vmul.f32 %v829_v1, %v2657_v45  ;;  %v814_v1 = vmul.f32 %v2661_v63, %v2740_v44 }
  0xea   : > { %v2856_v17 = vld [vmem:[#allocation2 + $0x38] sm:$0xff]  ;;  %v673_v29 = vmul.f32 %v2854_v7, %v2468_v32  ;;  %v579_v27 = vadd.f32 %v2212_v15, %v578_v20  ;;  %v2868_v60 = vmul.f32 %v929_v4, %v2709_v25  ;;  %v813_v20 = vmul.f32 %v2622_v46, %v2704_v50 }
  0xeb   : > { %v2858_v36 = vld [vmem:[#allocation2 + $0x31] sm:$0xff]  ;;  %v721_v56 = vmul.f32 %v2540_v61, %v2856_v17 }
  0xec   : > { %v768_v10 = vmul.f32 %v2567_v13, %v2858_v36  ;;  %2024 = vmatmul.msk.f32.gmra.mxu2 %vm598_vm1, %v673_v29  ;;  %v583_v39 = vsel %vm582_vm4, %v2212_v15, %v579_v27  ;;  %v811_v15 = vmul.f32 %v2498_v40, %v2617_v42  ;;  %v837_v40 = vpop.permute.xlu0 %836  ;;  %v812_v42 = vmul.f32 %v2513_v47, %v2653_v23 }
  0xed   : > { %2016 = vmatmul.msk.f32.gmra.mxu1 %vm598_vm1, %v721_v56  ;;  %v588_v61 = vsel %vm585_vm5, %v587_v37, %v583_v39  ;;  %v2873_v5 = vld [vmem:[#allocation2 + $0x3f] sm:$0xff]  ;;  %v861_v46 = vmul.f32 %v837_v40, %v2731_v43 }
  0xee   : > { %2031 = vmatmul.msk.f32.gmra.mxu3 %vm598_vm1, %v768_v10  ;;  %v2875_v32 = vld [vmem:[#allocation2 + $0x40] sm:$0xff]  ;;  %v2880_v57 = vmul.f32 %v588_v61, %v2693_v11  ;;  %v674_v8 = vmul.f32 %v2873_v5, %v2476_v33  ;;  %v1003_v61 = vmul.f32 %v2890_v48, %v2695_v22 }
  0xef   : > { %v2877_v13 = vld [vmem:[#allocation2 + $0x39] sm:$0xff]  ;;  %v722_v25 = vmul.f32 %v2635_v59, %v2875_v32 }
  0xf0   : > { %v833_v12 = vpop.permute.xlu1 %832  ;;  %610 = vst.msk [vmem:[#allocation2 + $0x48] sm:$0xff] %vm598_vm1, %v2880_v57  ;;  %v769_v54 = vmul.f32 %v2585_v52, %v2877_v13 }
  0xf1   : > { %v860_v23 = vmul.f32 %v833_v12, %v2695_v22 }
  0xf2   : > { %v841_v24 = vpop.permute.xlu2 %840 }
  0xf4   : > { %2025 = vmatmul.msk.f32.gmra.mxu2 %vm598_vm1, %v674_v8  ;;  %v885_v31 = vpop.permute.xlu0 %884 }
  0xf5   : > { %2017 = vmatmul.msk.f32.gmra.mxu1 %vm598_vm1, %v722_v25  ;;  %v909_v47 = vmul.f32 %v885_v31, %v2740_v44  ;;  %v816_v44 = vmul.f32 %v2746_v19, %v2854_v7 }
  0xf6   : > { %2032 = vmatmul.msk.f32.gmra.mxu3 %vm598_vm1, %v769_v54 }
  0xf7   : > { %v2895_v11 = vld [vmem:[#allocation2 + $0x41] sm:$0xff]  ;;  %v826_v12 = vld [vmem:[#allocation2 + $0x49] sm:$0xff] }
  0xf8   : > { %v770_v59 = vmul.f32 %v2895_v11, %v761_v0  ;;  %v862_v0 = vmul.f32 %v841_v24, %v2813_v30  ;;  %v874_v40 = vld [vmem:[#allocation2 + $0x4f] sm:$0xff] }
  0xf9   : > { %v2898_v33 = vpop.permute.xlu1 %924 }
  0xfb   : > { %v985_v62 = vpop.permute.xlu2 %984 }
  0xfc   : > { %2042 = vmatmul.msk.f32.vlgmr.msrb.gmra.mxu2 %vm598_vm1, %v2588_v53  ;;  %v2906_v52 = vmul.f32 %v985_v62, %v2858_v36  ;;  %v937_v19 = vpop.permute.xlu0 %936 }
  0xfd   : > { %2034 = vmatmul.msk.f32.vlgmr.msrb.gmra.mxu1 %vm598_vm1, %v811_v15  ;;  %v958_v9 = vmul.f32 %v937_v19, %v2807_v28 }
  0xfe   : > { %2033 = vmatmul.msk.f32.gmra.mxu3 %vm598_vm1, %v770_v59 }
 0x102   : > { %v881_v53 = vpop.permute.xlu1 %880 }
 0x103   : > { %v908_v38 = vmul.f32 %v881_v53, %v2704_v50 }
 0x104   : > { %2043 = vmatmul.msk.f32.gmra.mxu2 %vm598_vm1, %v2611_v6  ;;  %v889_v6 = vpop.permute.xlu2 %888 }
 0x105   : > { %2035 = vmatmul.msk.f32.gmra.mxu1 %vm598_vm1, %v812_v42  ;;  %2059 = vmatmul.msk.f32.gmra.mxu0 %vm598_vm1, %v908_v38  ;;  %v910_v50 = vmul.f32 %v889_v6, %v2811_v14 }
 0x106   : > { %2050 = vmatmul.msk.f32.vlgmr.msrb.gmra.mxu3 %vm598_vm1, %v859_v2 }
 0x10b   : > { %v2928_v45 = vpop.permute.xlu1 %980 }
 0x10c   : > { %2044 = vmatmul.msk.f32.gmra.mxu2 %vm598_vm1, %v2647_v21  ;;  %v815_v21 = vmul.f32 %v2686_v34, %v2811_v14  ;;  %v1005_v48 = vmul.f32 %v2928_v45, %v2813_v30 }
 0x10d   : > { %2036 = vmatmul.msk.f32.gmra.mxu1 %vm598_vm1, %v813_v20  ;;  %2060 = vmatmul.msk.f32.gmra.mxu0 %vm598_vm1, %v909_v47  ;;  %v849_v43 = vpop.permute.xlu2 %848 }
 0x10e   : > { %2051 = vmatmul.msk.f32.gmra.mxu3 %vm598_vm1, %v860_v23  ;;  %v864_v37 = vmul.f32 %v849_v43, %v2877_v13 }
 0x114   : > { %2045 = vmatmul.msk.f32.gmra.mxu2 %vm598_vm1, %v2689_v16  ;;  %v933_v4 = vpop.permute.xlu1 %932 }
 0x115   : > { %2037 = vmatmul.msk.f32.gmra.mxu1 %vm598_vm1, %v814_v1  ;;  %2061 = vmatmul.msk.f32.gmra.mxu0 %vm598_vm1, %v910_v50  ;;  %v957_v59 = vmul.f32 %v933_v4, %v2742_v58 }
 0x116   : > { %2052 = vmatmul.msk.f32.gmra.mxu3 %vm598_vm1, %v861_v46  ;;  %v941_v14 = vpop.permute.xlu2 %940 }
 0x117   : > { %v959_v2 = vmul.f32 %v941_v14, %v2856_v17 }
 0x11c   : > { %2046 = vmatmul.msk.f32.gmra.mxu2 %vm598_vm1, %v2735_v35  ;;  %v817_v35 = vmul.f32 %v2809_v18, %v2873_v5  ;;  %v993_v18 = vpop.permute.xlu0 %992 }
 0x11d   : > { %2038 = vmatmul.msk.f32.gmra.mxu1 %vm598_vm1, %v815_v21  ;;  %v845_v63 = vpop.permute.xlu1 %844 }
 0x11e   : > { %2053 = vmatmul.msk.f32.gmra.mxu3 %vm598_vm1, %v862_v0  ;;  %v863_v16 = vmul.f32 %v845_v63, %v2858_v36  ;;  %v778_v36 = vld [vmem:[#allocation2 + $0x47] sm:$0xff] }
 0x11f   : > { %v818_v29 = vmul.f32 %v2707_v51, %v778_v36  ;;  %v897_v10 = vpop.permute.xlu2 %896  ;;  %v955_v51 = vmul.f32 %v2898_v33, %v2664_v49 }
 0x124   : > { %2047 = vmatmul.msk.f32.gmra.mxu2 %vm598_vm1, %v2816_v3 }
 0x125   : > { %2039 = vmatmul.msk.f32.gmra.mxu1 %vm598_vm1, %v816_v44 }
 0x126   : > { %2054 = vmatmul.msk.f32.gmra.mxu3 %vm598_vm1, %v863_v16  ;;  %v989_v34 = vpop.permute.xlu1 %988 }
 0x127   : > { %v1007_v38 = vmul.f32 %v989_v34, %v2877_v13  ;;  %v921_v13 = vld [vmem:[#allocation2 + $0x48] sm:$0xff] }
 0x12c   : > { %2048 = vmatmul.msk.f32.gmra.mxu2 %vm598_vm1, %v2844_v41  ;;  %v912_v41 = vmul.f32 %v897_v10, %v2873_v5  ;;  %v857_v5 = vpop.permute.xlu0 %856 }
 0x12d   : > { %2040 = vmatmul.msk.f32.gmra.mxu1 %vm598_vm1, %v817_v35  ;;  %v866_v25 = vmul.f32 %v857_v5, %v826_v12 }
 0x12e   : > { %2055 = vmatmul.msk.f32.gmra.mxu3 %vm598_vm1, %v864_v37 }
 0x12f   : > { %v893_v56 = vpop.permute.xlu1 %892 }
 0x130   : > { %v911_v3 = vmul.f32 %v893_v56, %v2854_v7  ;;  %v997_v7 = vpop.permute.xlu2 %996  ;;  %v1851_v56 = vld [vmem:[%s3175_s7 + $0x8] sm:$0xff] }
 0x131   : > { %v1009_v1 = vmul.f32 %v997_v7, %v826_v12  ;;  %1894 = vmatpush.msra.mxu3 %v1851_v56 }
 0x132   : > { %2062 = vmatmul.msk.f32.gmra.mxu0 %vm598_vm1, %v911_v3 }
 0x134   : > { %2049 = vmatmul.msk.f32.gmra.mxu2 %vm598_vm1, %v2880_v57  ;;  %v953_v50 = vpop.permute.xlu0 %952 }
 0x135   : > { %2041 = vmatmul.msk.f32.gmra.mxu1 %vm598_vm1, %v818_v29 }
 0x138   : > { %v853_v27 = vpop.permute.xlu1 %852  ;;  %v949_v54 = vpop.permute.xlu2 %948 }
 0x139   : > { %v865_v39 = vmul.f32 %v2895_v11, %v853_v27  ;;  %v961_v46 = vmul.f32 %v949_v54, %v921_v13 }
 0x13a   : > { %2063 = vmatmul.msk.f32.gmra.mxu0 %vm598_vm1, %v912_v41 }
 0x13b   : > { %2056 = vmatmul.msk.f32.gmra.mxu3 %vm598_vm1, %v865_v39 }
 0x13c   : > { %2074 = vmatmul.msk.f32.vlgmr.msra.gmra.mxu2 %vm598_vm1, %v1003_v61 }
 0x13d   : > { %2066 = vmatmul.msk.f32.vlgmr.msra.gmra.mxu1 %vm598_vm1, %v955_v51  ;;  %v1059_v57 = vpop.f32.mrf.mxu1 }
 0x140   : > { %v905_v55 = vpop.permute.xlu2 %904 }
 0x141   : > { %v945_v8 = vpop.permute.xlu1 %944  ;;  %v914_v42 = vmul.f32 %v905_v55, %v874_v40 }
 0x142   : > { %v960_v47 = vmul.f32 %v945_v8, %v2875_v32  ;;  %v970_v32 = vld [vmem:[#allocation2 + $0x51] sm:$0xff] }
 0x143   : > { %2057 = vmatmul.msk.f32.gmra.mxu3 %vm598_vm1, %v866_v25 }
 0x144   : > { %2075 = vmatmul.msk.f32.gmra.mxu2 %vm598_vm1, %v2836_v26  ;;  %v1124_v49 = vpop.f32.mrf.mxu2 }
 0x145   : > { %2067 = vmatmul.msk.f32.gmra.mxu1 %vm598_vm1, %v2868_v60  ;;  %v2986_v22 = vadd.f32 %v1124_v49, %v1059_v57 }
 0x147   : > { %v1062_v24 = vpop.f32.mrf.mxu1 }
 0x14a   : > { %v901_v33 = vpop.permute.xlu1 %900 }
 0x14b   : > { %v913_v15 = vmul.f32 %v901_v33, %v778_v36 }
 0x14c   : > { %2076 = vmatmul.msk.f32.gmra.mxu2 %vm598_vm1, %v1005_v48  ;;  %v1127_v60 = vpop.f32.mrf.mxu2  ;;  %v1191_v23 = vpop.f32.mrf.mxu3 }
 0x14d   : > { %2068 = vmatmul.msk.f32.gmra.mxu1 %vm598_vm1, %v957_v59  ;;  %2064 = vmatmul.msk.f32.gmra.mxu0 %vm598_vm1, %v913_v15  ;;  %v2994_v26 = vadd.f32 %v1127_v60, %v1062_v24 }
 0x14e   : > { %v1056_v39 = vpop.f32.mrf.mxu0 }
 0x14f   : > { %v1065_v62 = vpop.f32.mrf.mxu1 }
 0x153   : > { %v1001_v4 = vpop.permute.xlu1 %1000 }
 0x154   : > { %2077 = vmatmul.msk.f32.gmra.mxu2 %vm598_vm1, %v2906_v52  ;;  %v1008_v52 = vmul.f32 %v993_v18, %v2895_v11  ;;  %v922_v11 = vld [vmem:[#allocation2 + $0x50] sm:$0xff]  ;;  %v1194_v21 = vpop.f32.mrf.mxu3  ;;  %v1010_v16 = vmul.f32 %v1001_v4, %v970_v32 }
 0x155   : > { %2069 = vmatmul.msk.f32.gmra.mxu1 %vm598_vm1, %v958_v9  ;;  %2065 = vmatmul.msk.f32.gmra.mxu0 %vm598_vm1, %v914_v42  ;;  %v1130_v58 = vpop.f32.mrf.mxu2  ;;  %v962_v43 = vmul.f32 %v953_v50, %v922_v11  ;;  %v1214_v50 = vadd.f32 %v1194_v21, %v2994_v26 }
 0x156   : > { %v3001_v30 = vadd.f32 %v1130_v58, %v1065_v62  ;;  %v1121_v57 = vpop.f32.mrf.mxu0 }
 0x157   : > { %v1068_v53 = vpop.f32.mrf.mxu1  ;;  %v1122_v48 = vadd.f32 %v1121_v57, %v1056_v39 }
 0x15c   : > { %2078 = vmatmul.msk.f32.gmra.mxu2 %vm598_vm1, %v1007_v38  ;;  %v3023_v35 = vpop.f32.mrf.mxu3 }
 0x15d   : > { %2070 = vmatmul.msk.f32.gmra.mxu1 %vm598_vm1, %v959_v2  ;;  %v1133_v28 = vpop.f32.mrf.mxu2  ;;  %v1213_v2 = vadd.f32 %v1191_v23, %v2986_v22  ;;  %v1850_v22 = vld [vmem:[%s3175_s7] sm:$0xff] }
 0x15e   : > { %v3007_v31 = vadd.f32 %v1133_v28, %v1068_v53  ;;  %v1188_v8 = vpop.f32.mrf.mxu0  ;;  %1895 = vmatpush.msra.mxu3 %v1850_v22 }
 0x15f   : > { %v1071_v20 = vpop.f32.mrf.mxu1  ;;  %v1212_v60 = vadd.f32 %v1188_v8, %v1122_v48 }
 0x164   : > { %2079 = vmatmul.msk.f32.gmra.mxu2 %vm598_vm1, %v1008_v52 }
 0x165   : > { %2071 = vmatmul.msk.f32.gmra.mxu1 %vm598_vm1, %v960_v47  ;;  %v3056_v47 = vld [vmem:[%s3174_s6] ss:$0 sm:$0xff] }
 0x166   : > { %v1136_v17 = vpop.f32.mrf.mxu2  ;;  %v1488_v33 = vpop.f32.mrf.mxu0 }
 0x167   : > { %v3013_v45 = vadd.f32 %v1136_v17, %v1071_v20  ;;  %v3028_v3 = vpop.f32.mrf.mxu3 }
 0x16a   : > { %v1074_v6 = vpop.f32.mrf.mxu1 }
 0x16c   : > { %2080 = vmatmul.msk.f32.gmra.mxu2 %vm598_vm1, %v1009_v1 }
 0x16d   : > { %2072 = vmatmul.msk.f32.gmra.mxu1 %vm598_vm1, %v961_v46 }
 0x16f   : > { %v1139_v0 = vpop.f32.mrf.mxu2 }
 0x170   : > { %v3017_v63 = vadd.f32 %v1139_v0, %v1074_v6 }
 0x171   : > { %v3030_v18 = vpop.f32.mrf.mxu3 }
 0x172   : > { %v1077_v44 = vpop.f32.mrf.mxu1 }
 0x174   : > { %2081 = vmatmul.msk.f32.gmra.mxu2 %vm598_vm1, %v1010_v16 }
 0x175   : > { %2073 = vmatmul.msk.f32.gmra.mxu1 %vm598_vm1, %v962_v43 }
 0x177   : > { %v1142_v34 = vpop.f32.mrf.mxu2 }
 0x178   : > { %v3021_v14 = vadd.f32 %v1142_v34, %v1077_v44 }
 0x179   : > { %v3032_v61 = vpop.f32.mrf.mxu3 }
 0x17a   : > { %v1263_v37 = vpop.f32.mrf.mxu1 }
 0x17b   : > { %v1287_v62 = vadd.f32 %v1263_v37, %v1212_v60 }
 0x17f   : > { %v1338_v19 = vpop.f32.mrf.mxu2 }
 0x180   : > { %v1362_v9 = vadd.f32 %v1338_v19, %v1287_v62 }
 0x181   : > { %v3038_v12 = vpop.f32.mrf.mxu3 }
 0x182   : > { %v1266_v36 = vpop.f32.mrf.mxu1  ;;  %v1491_v58 = vpop.f32.mrf.mxu0 }
 0x183   : > { %v1288_v38 = vadd.f32 %v1266_v36, %v1213_v2  ;;  %v1215_v36 = vadd.f32 %v3023_v35, %v3001_v30 }
 0x187   : > { %v1341_v29 = vpop.f32.mrf.mxu2 }
 0x188   : > { %v1363_v20 = vadd.f32 %v1341_v29, %v1288_v38 }
 0x189   : > { %v1413_v24 = vpop.f32.mrf.mxu3 }
 0x18a   : > { %v1269_v10 = vpop.f32.mrf.mxu1  ;;  %v1437_v42 = vadd.f32 %v1413_v24, %v1362_v9  ;;  %v1494_v23 = vpop.f32.mrf.mxu0 }
 0x18b   : > { %v1289_v4 = vadd.f32 %v1269_v10, %v1214_v50 }
 0x18c   : > { %v1512_v28 = vadd.f32 %v1488_v33, %v1437_v42 }
 0x18f   : > { %v1344_v41 = vpop.f32.mrf.mxu2 }
 0x190   : > { %v1364_v43 = vadd.f32 %v1344_v41, %v1289_v4 }
 0x191   : > { %v1416_v55 = vpop.f32.mrf.mxu3 }
 0x192   : > { %v1272_v27 = vpop.f32.mrf.mxu1  ;;  %v1438_v6 = vadd.f32 %v1416_v55, %v1363_v20  ;;  %v1497_v57 = vpop.f32.mrf.mxu0 }
 0x193   : > { %v1290_v29 = vadd.f32 %v1272_v27, %v1215_v36  ;;  %v1216_v27 = vadd.f32 %v3028_v3, %v3007_v31 }
 0x194   : > { %v1513_v0 = vadd.f32 %v1491_v58, %v1438_v6 }
 0x197   : > { %v1347_v51 = vpop.f32.mrf.mxu2 }
 0x198   : > { %v1365_v8 = vadd.f32 %v1347_v51, %v1290_v29 }
 0x199   : > { %v1419_v17 = vpop.f32.mrf.mxu3 }
 0x19a   : > { %v3034_v7 = vpop.f32.mrf.mxu1  ;;  %v1439_v37 = vadd.f32 %v1419_v17, %v1364_v43 }
 0x19b   : > { %v1291_v2 = vadd.f32 %v3034_v7, %v1216_v27  ;;  %v1217_v7 = vadd.f32 %v3030_v18, %v3013_v45 }
 0x19c   : > { %v1514_v39 = vadd.f32 %v1494_v23, %v1439_v37 }
 0x19f   : > { %v3036_v5 = vpop.f32.mrf.mxu2 }
 0x1a1   : > { %v1422_v21 = vpop.f32.mrf.mxu3 }
 0x1a2   : > { %v3040_v25 = vpop.f32.mrf.mxu1  ;;  %v1440_v62 = vadd.f32 %v1422_v21, %v1365_v8 }
 0x1a4   : > { %v1515_v58 = vadd.f32 %v1497_v57, %v1440_v62 }
 0x1a7   : > { %v3042_v49 = vpop.f32.mrf.mxu2 }
 0x1a9   : > { %v1425_v35 = vpop.f32.mrf.mxu3 }
 0x1aa   : > { %v3044_v54 = vpop.f32.mrf.mxu1 }
 0x1af   : > { %v3046_v59 = vpop.f32.mrf.mxu2  ;;  %v1500_v51 = vpop.f32.mrf.mxu0 }
 0x1b1   : > { %v1428_v43 = vpop.f32.mrf.mxu3 }
 0x1b2   : > { %v3048_v15 = vpop.f32.mrf.mxu1 }
 0x1b7   : > { %v3050_v40 = vpop.f32.mrf.mxu2 }
 0x1ba   : > { %v1563_v53 = vpop.f32.mrf.mxu1 }
 0x1bb   : > { %v1587_v52 = vadd.f32 %v1563_v53, %v1512_v28 }
 0x1bf   : > { %v1638_v13 = vpop.f32.mrf.mxu2 }
 0x1c0   : > { %v1662_v1 = vadd.f32 %v1638_v13, %v1587_v52  ;;  %v1366_v13 = vadd.f32 %v3036_v5, %v1291_v2 }
 0x1c2   : > { %v1566_v46 = vpop.f32.mrf.mxu1  ;;  %v3060_v11 = vmul.f32 %v3056_v47, %v1662_v1  ;;  %v1441_v3 = vadd.f32 %v1425_v35, %v1366_v13  ;;  %v1431_v35 = vpop.f32.mrf.mxu3 }
 0x1c3   : > { %v1588_v44 = vadd.f32 %v1566_v46, %v1513_v0  ;;  %v1292_v0 = vadd.f32 %v3040_v25, %v1217_v7 }
 0x1c4   : > { %v2082_v32 = vmul.f32 -1.702, %v3060_v11  ;;  %v1516_v4 = vadd.f32 %v1500_v51, %v1441_v3  ;;  %v1219_v3 = vadd.f32 %v3038_v12, %v3021_v14 }
 0x1c5   : > { %v1367_v21 = vadd.f32 %v3042_v49, %v1292_v0 }
 0x1c6   : > { %v1698_v16 = vmul.f32 1.442695, %v2082_v32 }
 0x1c7   : > { %v1641_v34 = vpop.f32.mrf.mxu2 }
 0x1c8   : > { %2213 = vpow2.f32 %v1698_v16  ;;  %v1663_v26 = vadd.f32 %v1641_v34, %v1588_v44 }
 0x1ca   : > { %v1569_v19 = vpop.f32.mrf.mxu1  ;;  %v3069_v56 = vmul.f32 %v3056_v47, %v1663_v26 }
 0x1cb   : > { %v1589_v48 = vadd.f32 %v1569_v19, %v1514_v39  ;;  %v1503_v19 = vpop.f32.mrf.mxu0 }
 0x1cc   : > { %v2083_v10 = vmul.f32 -1.702, %v3069_v56 }
 0x1ce   : > { %v2214_v41 = vpop.eup %2213  ;;  %v1700_v24 = vmul.f32 1.442695, %v2083_v10 }
 0x1cf   : > { %v1714_v33 = vadd.f32 1.0, %v2214_v41  ;;  %v1644_v60 = vpop.f32.mrf.mxu2  ;;  %v1442_v41 = vadd.f32 %v1428_v43, %v1367_v21 }
 0x1d0   : > { %2215 = vpow2.f32 %v1700_v24  ;;  %v1664_v55 = vadd.f32 %v1644_v60, %v1589_v48  ;;  %v1218_v48 = vadd.f32 %v3032_v61, %v3017_v63 }
 0x1d1   : > { %2217 = vrcp.f32 %v1714_v33  ;;  %v1731_v22 = vand.u32 2147483647, %v1714_v33  ;;  %v1733_v23 = vand.u32 2147483648, %v1714_v33  ;;  %vm1727_vm7 = vweird.f32 %v1714_v33 }
 0x1d2   : > { %v1572_v9 = vpop.f32.mrf.mxu1  ;;  %v3073_v30 = vmul.f32 %v3056_v47, %v1664_v55  ;;  %v1517_v62 = vadd.f32 %v1503_v19, %v1442_v41 }
 0x1d3   : > { %v1590_v28 = vadd.f32 %v1572_v9, %v1515_v58  ;;  %vm1732_vm9 = vcmp.eq.f32.partialorder %v1731_v22, 8.507059e+37  ;;  %v1734_v45 = vor.u32 1.1754944e-38, %v1733_v23 }
 0x1d4   : > { %v2084_v42 = vmul.f32 -1.702, %v3073_v30 }
 0x1d6   : > { %v2216_v53 = vpop.eup %2215  ;;  %v1702_v38 = vmul.f32 1.442695, %v2084_v42 }
 0x1d7   : > { %v2218_v20 = vpop.eup %2217  ;;  %v3079_v52 = vadd.f32 1.0, %v2216_v53  ;;  %v1647_v17 = vpop.f32.mrf.mxu2 }
 0x1d8   : > { %v1723_v6 = vmul.f32 %v2218_v20, %v1714_v33  ;;  %2219 = vpow2.f32 %v1702_v38  ;;  %v1665_v1 = vadd.f32 %v1647_v17, %v1590_v28  ;;  %vm1728_vm6 = vweird.f32 %v2218_v20  ;;  %v1506_v53 = vpop.f32.mrf.mxu0 }
 0x1d9   : > { %2221 = vrcp.f32 %v3079_v52  ;;  %vm1729_vm8 = vmor %vm1727_vm7, %vm1728_vm6  ;;  %v1746_v33 = vand.u32 2147483647, %v3079_v52  ;;  %v1748_v60 = vand.u32 2147483648, %v3079_v52  ;;  %vm1742_vm11 = vweird.f32 %v3079_v52 }
 0x1da   : > { %v1575_v31 = vpop.f32.mrf.mxu1  ;;  %v1724_v46 = vsub.f32 1.0, %v1723_v6  ;;  %v3084_v50 = vmul.f32 %v3056_v47, %v1665_v1 }
 0x1db   : > { %v1591_v37 = vadd.f32 %v1575_v31, %v1516_v4  ;;  %vm1747_vm13 = vcmp.eq.f32.partialorder %v1746_v33, 8.507059e+37  ;;  %v1749_v28 = vor.u32 1.1754944e-38, %v1748_v60 }
 0x1dc   : > { %v1725_v32 = vmul.f32 %v2218_v20, %v1724_v46  ;;  %v2085_v5 = vmul.f32 -1.702, %v3084_v50 }
 0x1de   : > { %v2220_v16 = vpop.eup %2219  ;;  %v1726_v44 = vadd.f32 %v2218_v20, %v1725_v32  ;;  %v1704_v34 = vmul.f32 1.442695, %v2085_v5  ;;  %v1294_v32 = vadd.f32 %v3048_v15, %v1219_v3 }
 0x1df   : > { %v2222_v26 = vpop.eup %2221  ;;  %v3091_v18 = vadd.f32 1.0, %v2220_v16  ;;  %v1650_v36 = vpop.f32.mrf.mxu2 }
 0x1e0   : > { %v1730_v29 = vsel %vm1729_vm8, %v2218_v20, %v1726_v44  ;;  %2223 = vpow2.f32 %v1704_v34  ;;  %v1666_v10 = vadd.f32 %v1650_v36, %v1591_v37  ;;  %v1738_v25 = vmul.f32 %v2222_v26, %v3079_v52  ;;  %v1434_v16 = vpop.f32.mrf.mxu3  ;;  %v1509_v19 = vpop.f32.mrf.mxu0 }
 0x1e1   : > { %v1735_v39 = vsel %vm1732_vm9, %v1734_v45, %v1730_v29  ;;  %2225 = vrcp.f32 %v3091_v18  ;;  %vm1743_vm10 = vweird.f32 %v2222_v26  ;;  %v1761_v46 = vand.u32 2147483647, %v3091_v18 }
 0x1e2   : > { %v1578_v57 = vpop.f32.mrf.mxu1  ;;  %v1842_v8 = vmul.f32 %v1735_v39, %v3060_v11  ;;  %v3097_v49 = vmul.f32 %v3056_v47, %v1666_v10  ;;  %v1739_v24 = vsub.f32 1.0, %v1738_v25  ;;  %v1293_v11 = vadd.f32 %v3044_v54, %v1218_v48  ;;  %vm1744_vm12 = vmor %vm1742_vm11, %vm1743_vm10 }
 0x1e3   : > { %v1592_v58 = vadd.f32 %v1578_v57, %v1517_v62  ;;  %v1763_v7 = vand.u32 2147483648, %v3091_v18  ;;  %vm1757_vm15 = vweird.f32 %v3091_v18  ;;  %v1369_v12 = vadd.f32 %v3050_v40, %v1294_v32 }
 0x1e4   : > { %v2086_v55 = vmul.f32 -1.702, %v3097_v49  ;;  %2090 = vmatmul.msk.f32.vlgmr.msra.gmra.mxu3 %vm598_vm1, %v1842_v8  ;;  %v1740_v9 = vmul.f32 %v2222_v26, %v1739_v24  ;;  %v1368_v61 = vadd.f32 %v3046_v59, %v1293_v11  ;;  %vm1762_vm3 = vcmp.eq.f32.partialorder %v1761_v46, 8.507059e+37 }
 0x1e5   : > { %v1764_v37 = vor.u32 1.1754944e-38, %v1763_v7  ;;  %v1444_v36 = vadd.f32 %v1434_v16, %v1369_v12 }
 0x1e6   : > { %v2224_v27 = vpop.eup %2223  ;;  %v1706_v42 = vmul.f32 1.442695, %v2086_v55  ;;  %v1741_v51 = vadd.f32 %v2222_v26, %v1740_v9  ;;  %v1443_v52 = vadd.f32 %v1431_v35, %v1368_v61 }
 0x1e7   : > { %v2226_v63 = vpop.eup %2225  ;;  %v3108_v2 = vadd.f32 1.0, %v2224_v27  ;;  %v1653_v38 = vpop.f32.mrf.mxu2  ;;  %v1519_v57 = vadd.f32 %v1509_v19, %v1444_v36 }
 0x1e8   : > { %2227 = vpow2.f32 %v1706_v42  ;;  %v1667_v20 = vadd.f32 %v1653_v38, %v1592_v58  ;;  %v1745_v54 = vsel %vm1744_vm12, %v2222_v26, %v1741_v51  ;;  %v1753_v17 = vmul.f32 %v2226_v63, %v3091_v18 }
 0x1e9   : > { %2229 = vrcp.f32 %v3108_v2  ;;  %v1750_v6 = vsel %vm1747_vm13, %v1749_v28, %v1745_v54  ;;  %v1518_v22 = vadd.f32 %v1506_v53, %v1443_v52  ;;  %vm1758_vm14 = vweird.f32 %v2226_v63 }
 0x1ea   : > { %v1581_v13 = vpop.f32.mrf.mxu1  ;;  %v3113_v1 = vmul.f32 %v3056_v47, %v1667_v20  ;;  %v1843_v59 = vmul.f32 %v1750_v6, %v3069_v56  ;;  %v1754_v31 = vsub.f32 1.0, %v1753_v17  ;;  %vm1759_vm2 = vmor %vm1757_vm15, %vm1758_vm14  ;;  %v1776_v25 = vand.u32 2147483647, %v3108_v2 }
 0x1eb   : > { %v1593_v56 = vadd.f32 %v1581_v13, %v1518_v22  ;;  %v1778_v39 = vand.u32 2147483648, %v3108_v2  ;;  %vm1772_vm5 = vweird.f32 %v3108_v2 }
 0x1ec   : > { %v2087_v23 = vmul.f32 -1.702, %v3113_v1  ;;  %2091 = vmatmul.msk.f32.gmra.mxu3 %vm598_vm1, %v1843_v59  ;;  %v1755_v4 = vmul.f32 %v2226_v63, %v1754_v31  ;;  %vm1777_vm7 = vcmp.eq.f32.partialorder %v1776_v25, 8.507059e+37 }
 0x1ed   : > { %v1779_v9 = vor.u32 1.1754944e-38, %v1778_v39 }
 0x1ee   : > { %v2228_v5 = vpop.eup %2227  ;;  %v1708_v0 = vmul.f32 1.442695, %v2087_v23  ;;  %v1756_v43 = vadd.f32 %v2226_v63, %v1755_v4 }
 0x1ef   : > { %v2230_v14 = vpop.eup %2229  ;;  %v1718_v44 = vadd.f32 1.0, %v2228_v5  ;;  %v1656_v34 = vpop.f32.mrf.mxu2 }
 0x1f0   : > { %2231 = vpow2.f32 %v1708_v0  ;;  %v1668_v26 = vadd.f32 %v1656_v34, %v1593_v56  ;;  %v1760_v21 = vsel %vm1759_vm2, %v2226_v63, %v1756_v43  ;;  %v1768_v15 = vmul.f32 %v2230_v14, %v3108_v2 }
 0x1f1   : > { %2233 = vrcp.f32 %v1718_v44  ;;  %v1765_v45 = vsel %vm1762_vm3, %v1764_v37, %v1760_v21  ;;  %vm1773_vm4 = vweird.f32 %v2230_v14  ;;  %v1793_v61 = vand.u32 2147483648, %v1718_v44 }
 0x1f2   : > { %v3127_v18 = vmul.f32 %v3056_v47, %v1668_v26  ;;  %v1844_v40 = vmul.f32 %v1765_v45, %v3073_v30  ;;  %v1769_v29 = vsub.f32 1.0, %v1768_v15  ;;  %v1584_v10 = vpop.f32.mrf.mxu1  ;;  %vm1774_vm6 = vmor %vm1772_vm5, %vm1773_vm4  ;;  %v1791_v38 = vand.u32 2147483647, %v1718_v44 }
 0x1f3   : > { %v1594_v33 = vadd.f32 %v1584_v10, %v1519_v57  ;;  %vm1787_vm9 = vweird.f32 %v1718_v44 }
 0x1f4   : > { %v2088_v41 = vmul.f32 -1.702, %v3127_v18  ;;  %2092 = vmatmul.msk.f32.gmra.mxu3 %vm598_vm1, %v1844_v40  ;;  %v1770_v8 = vmul.f32 %v2230_v14, %v1769_v29  ;;  %vm1792_vm11 = vcmp.eq.f32.partialorder %v1791_v38, 8.507059e+37 }
 0x1f6   : > { %v2232_v24 = vpop.eup %2231  ;;  %v1710_v48 = vmul.f32 1.442695, %v2088_v41  ;;  %v1771_v60 = vadd.f32 %v2230_v14, %v1770_v8 }
 0x1f7   : > { %v2234_v30 = vpop.eup %2233  ;;  %v1719_v62 = vadd.f32 1.0, %v2232_v24  ;;  %v1659_v55 = vpop.f32.mrf.mxu2 }
 0x1f8   : > { %2235 = vpow2.f32 %v1710_v48  ;;  %v1669_v11 = vadd.f32 %v1659_v55, %v1594_v33  ;;  %v1775_v35 = vsel %vm1774_vm6, %v2230_v14, %v1771_v60  ;;  %v1783_v27 = vmul.f32 %v2234_v30, %v1718_v44 }
 0x1f9   : > { %2237 = vrcp.f32 %v1719_v62  ;;  %v1780_v42 = vsel %vm1777_vm7, %v1779_v9, %v1775_v35  ;;  %vm1788_vm8 = vweird.f32 %v2234_v30  ;;  %v1808_v3 = vand.u32 2147483648, %v1719_v62 }
 0x1fa   : > { %v3136_v58 = vmul.f32 %v3056_v47, %v1669_v11  ;;  %v1845_v51 = vmul.f32 %v1780_v42, %v3084_v50  ;;  %v1784_v63 = vsub.f32 1.0, %v1783_v27  ;;  %vm1789_vm10 = vmor %vm1787_vm9, %vm1788_vm8  ;;  %v1794_v47 = vor.u32 1.1754944e-38, %v1793_v61 }
 0x1fb   : > { %v1806_v7 = vand.u32 2147483647, %v1719_v62  ;;  %vm1802_vm13 = vweird.f32 %v1719_v62  ;;  %v1809_v5 = vor.u32 1.1754944e-38, %v1808_v3 }
 0x1fc   : > { %v2089_v53 = vmul.f32 -1.702, %v3136_v58  ;;  %2093 = vmatmul.msk.f32.gmra.mxu3 %vm598_vm1, %v1845_v51  ;;  %v1785_v2 = vmul.f32 %v2234_v30, %v1784_v63 }
 0x1fd   : > { %vm1807_vm15 = vcmp.eq.f32.partialorder %v1806_v7, 8.507059e+37 }
 0x1fe   : > { %v2236_v28 = vpop.eup %2235  ;;  %v1712_v20 = vmul.f32 1.442695, %v2089_v53  ;;  %v1786_v54 = vadd.f32 %v2234_v30, %v1785_v2 }
 0x1ff   : > { %v2238_v17 = vpop.eup %2237  ;;  %v1720_v13 = vadd.f32 1.0, %v2236_v28 }
 0x200   : > { %2239 = vpow2.f32 %v1712_v20  ;;  %v1790_v6 = vsel %vm1789_vm10, %v2234_v30, %v1786_v54  ;;  %v1798_v50 = vmul.f32 %v2238_v17, %v1719_v62  ;;  %vm1803_vm12 = vweird.f32 %v2238_v17 }
 0x201   : > { %2241 = vrcp.f32 %v1720_v13  ;;  %v1795_v52 = vsel %vm1792_vm11, %v1794_v47, %v1790_v6  ;;  %vm1804_vm14 = vmor %vm1802_vm13, %vm1803_vm12  ;;  %v1823_v12 = vand.u32 2147483648, %v1720_v13  ;;  %v1821_v44 = vand.u32 2147483647, %v1720_v13 }
 0x202   : > { %v1846_v59 = vmul.f32 %v1795_v52, %v3097_v49  ;;  %v1799_v31 = vsub.f32 1.0, %v1798_v50  ;;  %vm1817_vm3 = vweird.f32 %v1720_v13 }
 0x203   : > { %v1824_v26 = vor.u32 1.1754944e-38, %v1823_v12  ;;  %vm1822_vm5 = vcmp.eq.f32.partialorder %v1821_v44, 8.507059e+37 }
 0x204   : > { %2094 = vmatmul.msk.f32.gmra.mxu3 %vm598_vm1, %v1846_v59  ;;  %v1800_v46 = vmul.f32 %v2238_v17, %v1799_v31 }
 0x206   : > { %v2240_v22 = vpop.eup %2239  ;;  %v1801_v23 = vadd.f32 %v2238_v17, %v1800_v46 }
 0x207   : > { %v2242_v4 = vpop.eup %2241  ;;  %v1721_v32 = vadd.f32 1.0, %v2240_v22 }
 0x208   : > { %v1805_v0 = vsel %vm1804_vm14, %v2238_v17, %v1801_v23  ;;  %v1813_v56 = vmul.f32 %v2242_v4, %v1720_v13  ;;  %vm1818_vm2 = vweird.f32 %v2242_v4 }
 0x209   : > { %2243 = vrcp.f32 %v1721_v32  ;;  %v1810_v43 = vsel %vm1807_vm15, %v1809_v5, %v1805_v0  ;;  %vm1819_vm4 = vmor %vm1817_vm3, %vm1818_vm2  ;;  %v1836_v29 = vand.u32 2147483647, %v1721_v32  ;;  %vm1832_vm7 = vweird.f32 %v1721_v32 }
 0x20a   : > { %v1847_v49 = vmul.f32 %v1810_v43, %v3113_v1  ;;  %v1814_v14 = vsub.f32 1.0, %v1813_v56  ;;  %v1838_v1 = vand.u32 2147483648, %v1721_v32 }
 0x20b   : > { %vm1837_vm9 = vcmp.eq.f32.partialorder %v1836_v29, 8.507059e+37 }
 0x20c   : > { %2095 = vmatmul.msk.f32.gmra.mxu3 %vm598_vm1, %v1847_v49  ;;  %v1815_v16 = vmul.f32 %v2242_v4, %v1814_v14  ;;  %v1839_v25 = vor.u32 1.1754944e-38, %v1838_v1 }
 0x20e   : > { %v1816_v34 = vadd.f32 %v2242_v4, %v1815_v16 }
 0x20f   : > { %v2244_v37 = vpop.eup %2243 }
 0x210   : > { %v1820_v21 = vsel %vm1819_vm4, %v2242_v4, %v1816_v34  ;;  %v1828_v15 = vmul.f32 %v2244_v37, %v1721_v32  ;;  %vm1833_vm6 = vweird.f32 %v2244_v37 }
 0x211   : > { %v1825_v19 = vsel %vm1822_vm5, %v1824_v26, %v1820_v21  ;;  %vm1834_vm8 = vmor %vm1832_vm7, %vm1833_vm6 }
 0x212   : > { %v1848_v45 = vmul.f32 %v1825_v19, %v3127_v18  ;;  %v1829_v36 = vsub.f32 1.0, %v1828_v15  ;;  %v2180_v18 = vld [vmem:[%s3176_s8] ss:$0 sm:$0xff] }
 0x214   : > { %2096 = vmatmul.msk.f32.gmra.mxu3 %vm598_vm1, %v1848_v45  ;;  %v1830_v40 = vmul.f32 %v2244_v37, %v1829_v36 }
 0x216   : > { %v1831_v10 = vadd.f32 %v2244_v37, %v1830_v40 }
 0x218   : > { %v1835_v39 = vsel %vm1834_vm8, %v2244_v37, %v1831_v10 }
 0x219   : > { %v1840_v57 = vsel %vm1837_vm9, %v1839_v25, %v1835_v39 }
 0x21a   : > { %v1849_v41 = vmul.f32 %v1840_v57, %v3136_v58 }
 0x21c   : > { %2097 = vmatmul.msk.f32.gmra.mxu3 %vm598_vm1, %v1849_v41 }
 0x267   : > { %v1897_v8 = vpop.f32.mrf.mxu3 }
 0x268   : > { %v1898_v24 = vadd.f32 %v2180_v18, %v1897_v8 }
 0x26a   : > { %1921 = vst.msk [vmem:[%s334_s16] sm:$0xff] %vm352_vm0, %v1898_v24 }
 0x26f   : > { %v1900_v48 = vpop.f32.mrf.mxu3 }
 0x270   : > { %v1901_v33 = vadd.f32 %v2180_v18, %v1900_v48 }
 0x272   : > { %1922 = vst.msk [vmem:[%s334_s16 + $0x8] sm:$0xff] %vm352_vm0, %v1901_v33 }
 0x277   : > { %v1903_v60 = vpop.f32.mrf.mxu3 }
 0x278   : > { %v1904_v30 = vadd.f32 %v2180_v18, %v1903_v60 }
 0x27a   : > { %1923 = vst.msk [vmem:[%s334_s16 + $0x10] sm:$0xff] %vm352_vm0, %v1904_v30 }
 0x27f   : > { %v1906_v62 = vpop.f32.mrf.mxu3 }
 0x280   : > { %v1907_v55 = vadd.f32 %v2180_v18, %v1906_v62 }
 0x282   : > { %1924 = vst.msk [vmem:[%s334_s16 + $0x18] sm:$0xff] %vm352_vm0, %v1907_v55 }
 0x287   : > { %v1909_v9 = vpop.f32.mrf.mxu3 }
 0x288   : > { %v1910_v11 = vadd.f32 %v2180_v18, %v1909_v9 }
 0x28a   : > { %1925 = vst.msk [vmem:[%s334_s16 + $0x20] sm:$0xff] %vm352_vm0, %v1910_v11 }
 0x28f   : > { %v1912_v35 = vpop.f32.mrf.mxu3 }
 0x290   : > { %v1913_v27 = vadd.f32 %v2180_v18, %v1912_v35 }
 0x292   : > { %1926 = vst.msk [vmem:[%s334_s16 + $0x28] sm:$0xff] %vm352_vm0, %v1913_v27 }
 0x297   : > { %v1915_v42 = vpop.f32.mrf.mxu3 }
 0x298   : > { %v1916_v58 = vadd.f32 %v2180_v18, %v1915_v42 }
 0x29a   : > { %1927 = vst.msk [vmem:[%s334_s16 + $0x30] sm:$0xff] %vm352_vm0, %v1916_v58 }
 0x29f   : > { %v1918_v51 = vpop.f32.mrf.mxu3 }
 0x2a0   : > { %v1919_v63 = vadd.f32 %v2180_v18, %v1918_v51 }
 0x2a2   : > { %1928 = vst.msk [vmem:[%s334_s16 + $0x38] sm:$0xff] %vm352_vm0, %v1919_v63 }
 0x2a3 PF: > { %s19_s30 = sadd.s32 1, %s2251_s30  }
 0x2a4   : > { %p16_p4 = scmp.ge.s32.totalorder %s19_s30, 4  }
 0x2a6   :  { %18 = sbr.rel (!%p16_p4) target bundleno = 1 (0x1), region = 86 }

// kernel: tpu_custom_call.1
= control target key start
LH: loop header
LB: loop body
LE: loop exit
PB: predicated region body
PF: predicated region fallthrough
CT: control target
= control target key end

     0   :  { %s2312_s30 = smov 0   ;;  %s3168_s0 = inlined_call_operand.vmem [shape: f32[128,32], index: 0, kind: input, shape index: {}]   ;;  %s3169_s1 = inlined_call_operand.vmem [shape: f32[64,8], index: 1, kind: input, shape index: {}]   ;;  %s3170_s2 = inlined_call_operand.vmem [shape: f32[32,16], index: 2, kind: input, shape index: {}]   ;;  %s3171_s3 = inlined_call_operand.vmem [shape: f32[1,16], index: 3, kind: input, shape index: {}]   ;;  %s3172_s4 = inlined_call_operand.vmem [shape: f32[144,16], index: 4, kind: input, shape index: {}]   ;;  %s3173_s5 = inlined_call_operand.vmem [shape: f32[1,16], index: 5, kind: input, shape index: {}]   ;;  %s3174_s6 = inlined_call_operand.vmem [shape: f32[1,16], index: 6, kind: input, shape index: {}]   ;;  %s3175_s7 = inlined_call_operand.vmem [shape: f32[16,32], index: 7, kind: input, shape index: {}]   ;;  %s3176_s8 = inlined_call_operand.vmem [shape: f32[1,32], index: 8, kind: input, shape index: {}]   ;;  %s3177_s9 = inlined_call_operand.vmem [shape: f32[128,32], index: 9, kind: output, shape index: {}]  }
   0x1 LB: > { %s1985_s10 = sadd.s32 4294967295, %s2251_s30   ;;  %p1989_p0 = scmp.ge.s32.totalorder %s2251_s30, 1  ;;  %s2251_s30 = sphi %s2312_s30, %s19_s30  }
   0x2   : > { %p288_p1 = scmp.lt.s32.totalorder %s2251_s30, 3 }
   0x4   : > { %p289_p2 = pnand %p1989_p0, %p288_p1 }
   0x5   : > { %s1990_s17 = sshll.u32 (!%p289_p2), %s1985_s10, 3 }
   0x6   : > { %292 = sbr.rel (%p289_p2) target bundleno = 675 (0x2a3), region = 56  ;;  %p325_p3 = scmp.lt.s32.totalorder (!%p289_p2), %s1990_s17, 15 }
   0xb   : > { %v347_v0 = vld [vmem:[%s3170_s2 + $0x18] sm:$0xff]  ;;  %v2331_v2 = vld [vmem:[%s3169_s1 + $0x10] sm:$0xff]  ;;  %v2253_v3 = vmov 0   ;;  %v2341_v5 = vld [vmem:[%s3169_s1 + $0x8] sm:$0xff]  ;;  %s3181_s17 = smov (!%p325_p3, %s1990_s17), 15  ;;  %vm352_vm0 = vcmask 261120  }
   0xc   : > { %v2326_v1 = vld [vmem:[%s3169_s1 + $0x18] sm:$0xff]  ;;  %2127 = vset.pattern.permute.xlu2 %v2253_v3  ;;  %2125 = vset.pattern.permute.xlu1 %v2253_v3  ;;  %v346_v4 = vld [vmem:[%s3170_s2 + $0x10] sm:$0xff]  ;;  %v345_v6 = vld [vmem:[%s3170_s2 + $0x8] sm:$0xff]  ;;  %s1991_s26 = sshll.u32 %s3181_s17, 3  ;;  %v2254_v9 = vmov 1   ;;  %v2255_v18 = vmov 3  }
   0xd   : > { %389 = vmatpush.msra.mxu0 %v347_v0  ;;  %644 = vperm.xlu2 %2127, %v2326_v1   ;;  %v344_v7 = vld [vmem:[%s3170_s2] sm:$0xff]  ;;  %s2361_s29 = scalar_lea.vmem %s3168_s0, %s1991_s26  ;;  %v2382_v12 = vld [vmem:[%s3169_s1 + $0x28] sm:$0xff]  ;;  %v2393_v14 = vld [vmem:[%s3169_s1 + $0x30] sm:$0xff]  ;;  %v2256_v20 = vmov 2   ;;  %v2257_v24 = vmov 7   ;;  %v2258_v25 = vmov 4   ;;  %s334_s16 = scalar_lea.vmem %s3177_s9, %s1991_s26 }
   0xe   : > { %639 = vperm.xlu1 %2125, %v2331_v2   ;;  %2123 = vset.pattern.permute.xlu0 %v2253_v3  ;;  %v336_v8 = vld [vmem:[%s2361_s29] sm:$0xff]  ;;  %v337_v10 = vld [vmem:[%s2361_s29 + $0x8] sm:$0xff]  ;;  %v338_v13 = vld [vmem:[%s2361_s29 + $0x10] sm:$0xff]  ;;  %v2259_v26 = vmov 5   ;;  %v2260_v27 = vmov 6   ;;  %vm598_vm1 = vcmask 130048  }
   0xf   : > { %390 = vmatpush.msra.mxu0 %v346_v4  ;;  %634 = vperm.xlu0 %2123, %v2341_v5   ;;  %v2375_v11 = vld [vmem:[%s3169_s1 + $0x20] sm:$0xff]  ;;  %v2400_v15 = vld [vmem:[%s3169_s1 + $0x38] sm:$0xff]  ;;  %v341_v21 = vld [vmem:[%s2361_s29 + $0x28] sm:$0xff]  ;;  %v2261_v43 = vmov 0.0  }
  0x10   : > { %v339_v16 = vld [vmem:[%s2361_s29 + $0x18] sm:$0xff]  ;;  %v340_v17 = vld [vmem:[%s2361_s29 + $0x20] sm:$0xff]  ;;  %v342_v22 = vld [vmem:[%s2361_s29 + $0x30] sm:$0xff]  ;;  %600 = vst.msk [vmem:[#allocation2 + $0x8] sm:$0xff] %vm598_vm1, %v2261_v43 }
  0x11   : > { %391 = vmatpush.msra.mxu0 %v345_v6  ;;  %v2416_v19 = vld [vmem:[%s3169_s1] sm:$0xff]  ;;  %v343_v23 = vld [vmem:[%s2361_s29 + $0x38] sm:$0xff]  ;;  %599 = vst.msk [vmem:[#allocation2] sm:$0xff] %vm598_vm1, %v2261_v43  ;;  %v1012_v54 = vld [vmem:[%s3172_s4 + $0x8] sm:$0xff] }
  0x12   : > { %v2485_v35 = vld [vmem:[%s3171_s3] ss:$0 sm:$0xff]  ;;  %601 = vst.msk [vmem:[#allocation2 + $0x50] sm:$0xff] %vm598_vm1, %v2261_v43  ;;  %v1014_v53 = vld [vmem:[%s3172_s4 + $0x18] sm:$0xff]  ;;  %v1013_v59 = vld [vmem:[%s3172_s4 + $0x10] sm:$0xff]  ;;  %2102 = vmatpush.msra.mxu2 %v1012_v54 }
  0x13   : > { %392 = vmatpush.msra.mxu0 %v344_v7  ;;  %v2493_v36 = vld [vmem:[%s3173_s5] ss:$0 sm:$0xff]  ;;  %602 = vst.msk [vmem:[#allocation2 + $0x58] sm:$0xff] %vm598_vm1, %v2261_v43  ;;  %2100 = vmatpush.msra.mxu1 %v1014_v53  ;;  %v2551_v4 = vld [vmem:[%s3172_s4 + $0x28] sm:$0xff] }
  0x14   : > { %1994 = vmatmul.msk.f32.vlgmr.msra.gmra.mxu0 %vm352_vm0, %v336_v8  ;;  %v1011_v60 = vld [vmem:[%s3172_s4] sm:$0xff]  ;;  %2104 = vmatpush.msra.mxu3 %v2551_v4 }
  0x15   : > { %2128 = vset.pattern.permute.xlu2 %v2254_v9  ;;  %1053 = vmatpush.msrb.mxu0 %v1014_v53 }
  0x16   : > { %2126 = vset.pattern.permute.xlu1 %v2254_v9  ;;  %696 = vperm.xlu2 %2128, %v2326_v1  }
  0x17   : > { %692 = vperm.xlu1 %2126, %v2331_v2   ;;  %2124 = vset.pattern.permute.xlu0 %v2254_v9 }
  0x18   : > { %688 = vperm.xlu0 %2124, %v2341_v5   ;;  %2101 = vmatpush.msra.mxu1 %v1013_v59 }
  0x19   : > { %2103 = vmatpush.msra.mxu2 %v1011_v60  ;;  %1054 = vmatpush.msrb.mxu0 %v1013_v59 }
  0x1b   : > { %1118 = vmatpush.msra.mxu0 %v1012_v54 }
  0x1c   : > { %1995 = vmatmul.msk.f32.gmra.mxu0 %vm352_vm0, %v337_v10  ;;  %v2563_v10 = vld [vmem:[%s3172_s4 + $0x20] sm:$0xff] }
  0x1d   : > { %1119 = vmatpush.msra.mxu0 %v1011_v60  ;;  %2105 = vmatpush.msra.mxu3 %v2563_v10 }
  0x1e   : > { %700 = vperm.xlu2 %2128, %v2375_v11  }
  0x1f   : > { %2129 = vset.pattern.permute.xlu1 %v2253_v3 }
  0x20   : > { %649 = vperm.xlu1 %2129, %v2375_v11   ;;  %2130 = vset.pattern.permute.xlu0 %v2253_v3 }
  0x21   : > { %654 = vperm.xlu0 %2130, %v2382_v12  }
  0x24   : > { %1996 = vmatmul.msk.f32.gmra.mxu0 %vm352_vm0, %v338_v13 }
  0x26   : > { %2132 = vset.pattern.permute.xlu2 %v2253_v3 }
  0x27   : > { %659 = vperm.xlu2 %2132, %v2393_v14  }
  0x28   : > { %2131 = vset.pattern.permute.xlu1 %v2254_v9 }
  0x29   : > { %704 = vperm.xlu1 %2131, %v2382_v12   ;;  %2133 = vset.pattern.permute.xlu0 %v2254_v9 }
  0x2a   : > { %712 = vperm.xlu0 %2133, %v2400_v15  }
  0x2c   : > { %1997 = vmatmul.msk.f32.gmra.mxu0 %vm352_vm0, %v339_v16 }
  0x2f   : > { %664 = vperm.xlu2 %2132, %v2400_v15  }
  0x31   : > { %708 = vperm.xlu1 %2131, %v2393_v14  }
  0x32   : > { %2138 = vset.pattern.permute.xlu0 %v2255_v18 }
  0x33   : > { %796 = vperm.xlu0 %2138, %v2375_v11  }
  0x34   : > { %1998 = vmatmul.msk.f32.gmra.mxu0 %vm352_vm0, %v340_v17 }
  0x37   : > { %2135 = vset.pattern.permute.xlu2 %v2255_v18 }
  0x38   : > { %780 = vperm.xlu2 %2135, %v2416_v19  }
  0x39   : > { %2134 = vset.pattern.permute.xlu1 %v2256_v20 }
  0x3a   : > { %736 = vperm.xlu1 %2134, %v2341_v5  }
  0x3b   : > { %2139 = vset.pattern.permute.xlu0 %v2256_v20 }
  0x3c   : > { %1999 = vmatmul.msk.f32.gmra.mxu0 %vm352_vm0, %v341_v21  ;;  %744 = vperm.xlu0 %2139, %v2326_v1  }
  0x40   : > { %784 = vperm.xlu2 %2135, %v2341_v5  }
  0x42   : > { %740 = vperm.xlu1 %2134, %v2331_v2  }
  0x44   : > { %2000 = vmatmul.msk.f32.gmra.mxu0 %vm352_vm0, %v342_v22  ;;  %760 = vperm.xlu0 %2139, %v2400_v15  }
  0x48   : > { %2137 = vset.pattern.permute.xlu2 %v2256_v20 }
  0x49   : > { %748 = vperm.xlu2 %2137, %v2375_v11  }
  0x4a   : > { %2136 = vset.pattern.permute.xlu1 %v2255_v18 }
  0x4b   : > { %788 = vperm.xlu1 %2136, %v2331_v2  }
  0x4c   : > { %2001 = vmatmul.msk.f32.gmra.mxu0 %vm352_vm0, %v343_v23  ;;  %2146 = vset.pattern.permute.xlu0 %v2257_v24 }
  0x4d   : > { %972 = vperm.xlu0 %2146, %v2416_v19  }
  0x51   : > { %752 = vperm.xlu2 %2137, %v2382_v12  }
  0x53   : > { %792 = vperm.xlu1 %2136, %v2326_v1  }
  0x55   : > { %2150 = vset.pattern.permute.xlu0 %v2258_v25 }
  0x56   : > { %836 = vperm.xlu0 %2150, %v2331_v2  }
  0x59   : > { %756 = vperm.xlu2 %2137, %v2393_v14  }
  0x5b   : > { %2140 = vset.pattern.permute.xlu1 %v2254_v9 }
  0x5c   : > { %684 = vperm.xlu1 %2140, %v2416_v19  }
  0x5e   : > { %2155 = vset.pattern.permute.xlu0 %v2259_v26 }
  0x5f   : > { %884 = vperm.xlu0 %2155, %v2331_v2  }
  0x61   : > { %2142 = vset.pattern.permute.xlu2 %v2253_v3 }
  0x62   : > { %629 = vperm.xlu2 %2142, %v2416_v19  }
  0x64   : > { %2141 = vset.pattern.permute.xlu1 %v2255_v18 }
  0x65   : > { %800 = vperm.xlu1 %2141, %v2382_v12  }
  0x67   : > { %2160 = vset.pattern.permute.xlu0 %v2260_v27  ;;  %v2447_v28 = vpop.permute.xlu2 %644 }
  0x68   : > { %936 = vperm.xlu0 %2160, %v2326_v1  }
  0x6a   : > { %2143 = vset.pattern.permute.xlu2 %v2256_v20 }
  0x6b   : > { %732 = vperm.xlu2 %2143, %v2416_v19  }
  0x6d   : > { %804 = vperm.xlu1 %2141, %v2393_v14  }
  0x70   : > { %v2452_v29 = vpop.permute.xlu2 %696  ;;  %2165 = vset.pattern.permute.xlu0 %v2257_v24 }
  0x71   : > { %992 = vperm.xlu0 %2165, %v2382_v12  }
  0x73   : > { %2145 = vset.pattern.permute.xlu2 %v2255_v18 }
  0x74   : > { %808 = vperm.xlu2 %2145, %v2400_v15  }
  0x75   : > { %2144 = vset.pattern.permute.xlu1 %v2258_v25 }
  0x76   : > { %828 = vperm.xlu1 %2144, %v2416_v19  }
  0x78   : > { %v2459_v30 = vpop.permute.xlu2 %700 }
  0x79   : > { %2170 = vset.pattern.permute.xlu0 %v2258_v25 }
  0x7a   : > { %856 = vperm.xlu0 %2170, %v2400_v15  }
  0x7c   : > { %2147 = vset.pattern.permute.xlu2 %v2259_v26 }
  0x7d   : > { %876 = vperm.xlu2 %2147, %v2416_v19  }
  0x7e   : > { %832 = vperm.xlu1 %2144, %v2341_v5  }
  0x80   : > { %v2466_v31 = vpop.permute.xlu1 %639 }
  0x81   : > { %v2468_v32 = vpop.permute.xlu2 %659  ;;  %v2530_v57 = vpop.permute.xlu0 %634 }
  0x82   : > { %2175 = vset.pattern.permute.xlu0 %v2260_v27 }
  0x83   : > { %952 = vperm.xlu0 %2175, %v2400_v15  }
  0x85   : > { %2149 = vset.pattern.permute.xlu2 %v2257_v24 }
  0x86   : > { %2148 = vset.pattern.permute.xlu1 %v2260_v27  ;;  %976 = vperm.xlu2 %2149, %v2341_v5  }
  0x87   : > { %924 = vperm.xlu1 %2148, %v2416_v19  }
  0x89   : > { %v2476_v33 = vpop.permute.xlu2 %664  ;;  %v2478_v34 = vpop.permute.xlu1 %692 }
  0x8a   : > { %v2575_v19 = vpop.permute.xlu0 %688 }
  0x8b   : > { %2176 = vset.pattern.permute.xlu0 %v2257_v24 }
  0x8e   : > { %2152 = vset.pattern.permute.xlu2 %v2260_v27 }
  0x8f   : > { %2151 = vset.pattern.permute.xlu1 %v2259_v26  ;;  %928 = vperm.xlu2 %2152, %v2341_v5  }
  0x90   : > { %880 = vperm.xlu1 %2151, %v2341_v5  }
  0x91   : > { %v394_v37 = vpop.f32.mrf.mxu0 }
  0x92   : > { %v395_v38 = vadd.f32 %v2485_v35, %v394_v37  ;;  %v2496_v39 = vpop.permute.xlu1 %649  ;;  %v2498_v40 = vpop.permute.xlu2 %780 }
  0x94   : > { %v2501_v41 = vmul.f32 %v2493_v36, %v395_v38 }
  0x96   : > { %v2002_v42 = vmul.f32 -1.702, %v2501_v41 }
  0x97   : > { %2154 = vset.pattern.permute.xlu2 %v2258_v25 }
  0x98   : > { %v446_v44 = vmul.f32 1.442695, %v2002_v42  ;;  %2153 = vset.pattern.permute.xlu1 %v2257_v24  ;;  %840 = vperm.xlu2 %2154, %v2326_v1  }
  0x99   : > { %980 = vperm.xlu1 %2153, %v2331_v2   ;;  %v397_v45 = vpop.f32.mrf.mxu0 }
  0x9a   : > { %2181 = vpow2.f32 %v446_v44  ;;  %v398_v46 = vadd.f32 %v2485_v35, %v397_v45  ;;  %v2513_v47 = vpop.permute.xlu2 %784 }
  0x9b   : > { %v2515_v48 = vpop.permute.xlu1 %704 }
  0x9c   : > { %v2518_v49 = vmul.f32 %v2493_v36, %v398_v46 }
  0x9e   : > { %v2003_v50 = vmul.f32 -1.702, %v2518_v49 }
  0xa0   : > { %v2182_v51 = vpop.eup %2181  ;;  %v448_v52 = vmul.f32 1.442695, %v2003_v50  ;;  %2157 = vset.pattern.permute.xlu2 %v2257_v24 }
  0xa1   : > { %v462_v55 = vadd.f32 1.0, %v2182_v51  ;;  %2156 = vset.pattern.permute.xlu1 %v2260_v27  ;;  %v400_v56 = vpop.f32.mrf.mxu0  ;;  %984 = vperm.xlu2 %2157, %v2326_v1  }
  0xa2   : > { %2183 = vpow2.f32 %v448_v52  ;;  %v401_v58 = vadd.f32 %v2485_v35, %v400_v56  ;;  %932 = vperm.xlu1 %2156, %v2331_v2  }
  0xa3   : > { %2185 = vrcp.f32 %v462_v55  ;;  %v2540_v61 = vpop.permute.xlu1 %708  ;;  %v2542_v62 = vpop.permute.xlu2 %748  ;;  %v479_v21 = vand.u32 2147483647, %v462_v55  ;;  %vm475_vm3 = vweird.f32 %v462_v55 }
  0xa4   : > { %v2545_v63 = vmul.f32 %v2493_v36, %v401_v58 }
  0xa5   : > { %vm480_vm5 = vcmp.eq.f32.partialorder %v479_v21, 8.507059e+37 }
  0xa6   : > { %v2004_v0 = vmul.f32 -1.702, %v2545_v63 }
  0xa8   : > { %v2184_v2 = vpop.eup %2183  ;;  %v450_v3 = vmul.f32 1.442695, %v2004_v0 }
  0xa9   : > { %v2186_v5 = vpop.eup %2185  ;;  %v2553_v6 = vadd.f32 1.0, %v2184_v2  ;;  %v403_v7 = vpop.f32.mrf.mxu0  ;;  %2159 = vset.pattern.permute.xlu2 %v2259_v26 }
  0xaa   : > { %v471_v8 = vmul.f32 %v2186_v5, %v462_v55  ;;  %2187 = vpow2.f32 %v450_v3  ;;  %v404_v9 = vadd.f32 %v2485_v35, %v403_v7  ;;  %2158 = vset.pattern.permute.xlu1 %v2258_v25  ;;  %888 = vperm.xlu2 %2159, %v2326_v1   ;;  %v481_v1 = vand.u32 2147483648, %v462_v55 }
  0xab   : > { %2189 = vrcp.f32 %v2553_v6  ;;  %844 = vperm.xlu1 %2158, %v2375_v11   ;;  %v2567_v13 = vpop.permute.xlu2 %752  ;;  %vm476_vm2 = vweird.f32 %v2186_v5  ;;  %v496_v58 = vand.u32 2147483648, %v2553_v6  ;;  %v494_v60 = vand.u32 2147483647, %v2553_v6 }
  0xac   : > { %v472_v16 = vsub.f32 1.0, %v471_v8  ;;  %v2571_v17 = vmul.f32 %v2493_v36, %v404_v9  ;;  %v2573_v18 = vpop.permute.xlu1 %736  ;;  %vm477_vm4 = vmor %vm475_vm3, %vm476_vm2  ;;  %v482_v43 = vor.u32 1.1754944e-38, %v481_v1  ;;  %vm490_vm7 = vweird.f32 %v2553_v6 }
  0xad   : > { %v497_v8 = vor.u32 1.1754944e-38, %v496_v58  ;;  %vm495_vm9 = vcmp.eq.f32.partialorder %v494_v60, 8.507059e+37 }
  0xae   : > { %v473_v20 = vmul.f32 %v2186_v5, %v472_v16  ;;  %v2005_v22 = vmul.f32 -1.702, %v2571_v17 }
  0xb0   : > { %v2188_v23 = vpop.eup %2187  ;;  %v474_v37 = vadd.f32 %v2186_v5, %v473_v20  ;;  %v452_v38 = vmul.f32 1.442695, %v2005_v22 }
  0xb1   : > { %v2190_v42 = vpop.eup %2189  ;;  %v2578_v44 = vadd.f32 1.0, %v2188_v23  ;;  %v406_v45 = vpop.f32.mrf.mxu0 }
  0xb2   : > { %v478_v46 = vsel %vm477_vm4, %v2186_v5, %v474_v37  ;;  %v486_v50 = vmul.f32 %v2190_v42, %v2553_v6  ;;  %2191 = vpow2.f32 %v452_v38  ;;  %2162 = vset.pattern.permute.xlu2 %v2258_v25  ;;  %v407_v55 = vadd.f32 %v2485_v35, %v406_v45 }
  0xb3   : > { %v483_v51 = vsel %vm480_vm5, %v482_v43, %v478_v46  ;;  %2193 = vrcp.f32 %v2578_v44  ;;  %2161 = vset.pattern.permute.xlu1 %v2257_v24  ;;  %848 = vperm.xlu2 %2162, %v2382_v12   ;;  %v2585_v52 = vpop.permute.xlu2 %756  ;;  %vm491_vm6 = vweird.f32 %v2190_v42  ;;  %v511_v43 = vand.u32 2147483648, %v2578_v44 }
  0xb4   : > { %v2588_v53 = vmul.f32 %v483_v51, %v2501_v41  ;;  %v487_v54 = vsub.f32 1.0, %v486_v50  ;;  %988 = vperm.xlu1 %2161, %v2375_v11   ;;  %v2592_v56 = vpop.permute.xlu1 %740  ;;  %v2599_v0 = vmul.f32 %v2493_v36, %v407_v55  ;;  %v2601_v41 = vpop.permute.xlu0 %654  ;;  %vm492_vm8 = vmor %vm490_vm7, %vm491_vm6  ;;  %v509_v51 = vand.u32 2147483647, %v2578_v44 }
  0xb5   : > { %vm505_vm11 = vweird.f32 %v2578_v44 }
  0xb6   : > { %603 = vst.msk [vmem:[#allocation2 + $0x10] sm:$0xff] %vm598_vm1, %v2588_v53  ;;  %v488_v59 = vmul.f32 %v2190_v42, %v487_v54  ;;  %v2006_v5 = vmul.f32 -1.702, %v2599_v0  ;;  %vm510_vm13 = vcmp.eq.f32.partialorder %v509_v51, 8.507059e+37 }
  0xb8   : > { %v2192_v2 = vpop.eup %2191  ;;  %v489_v3 = vadd.f32 %v2190_v42, %v488_v59  ;;  %v454_v21 = vmul.f32 1.442695, %v2006_v5 }
  0xb9   : > { %v2194_v7 = vpop.eup %2193  ;;  %v2605_v9 = vadd.f32 1.0, %v2192_v2  ;;  %v409_v16 = vpop.f32.mrf.mxu0 }
  0xba   : > { %v493_v1 = vsel %vm492_vm8, %v2190_v42, %v489_v3  ;;  %v501_v20 = vmul.f32 %v2194_v7, %v2578_v44  ;;  %v410_v45 = vadd.f32 %v2485_v35, %v409_v16  ;;  %vm506_vm10 = vweird.f32 %v2194_v7  ;;  %v1296_v44 = vld [vmem:[%s3172_s4 + $0x48] sm:$0xff] }
  0xbb   : > { %v498_v22 = vsel %vm495_vm9, %v497_v8, %v493_v1  ;;  %2195 = vrcp.f32 %v2605_v9  ;;  %2164 = vset.pattern.permute.xlu2 %v2260_v27  ;;  %vm507_vm12 = vmor %vm505_vm11, %vm506_vm10  ;;  %1335 = vmatpush.msrb.mxu2 %v1296_v44  ;;  %vm520_vm15 = vweird.f32 %v2605_v9 }
  0xbc   : > { %v2611_v6 = vmul.f32 %v498_v22, %v2518_v49  ;;  %v502_v23 = vsub.f32 1.0, %v501_v20  ;;  %2197 = vpow2.f32 %v454_v21  ;;  %2163 = vset.pattern.permute.xlu1 %v2259_v26  ;;  %940 = vperm.xlu2 %2164, %v2375_v11   ;;  %v2615_v37 = vpop.permute.xlu2 %629  ;;  %v2629_v54 = vmul.f32 %v2493_v36, %v410_v45  ;;  %v2635_v59 = vpop.permute.xlu0 %712 }
  0xbd   : > { %v676_v38 = vld [vmem:[#allocation2 + $0x10] sm:$0xff]  ;;  %892 = vperm.xlu1 %2163, %v2375_v11   ;;  %v2622_v46 = vpop.permute.xlu1 %788 }
  0xbe   : > { %v2617_v42 = vld [vmem:[#allocation2 + $0xf] sm:$0xff]  ;;  %v716_v49 = vmul.f32 %v2575_v19, %v676_v38  ;;  %604 = vst.msk [vmem:[#allocation2 + $0x18] sm:$0xff] %vm598_vm1, %v2611_v6  ;;  %v503_v50 = vmul.f32 %v2194_v7, %v502_v23  ;;  %v512_v19 = vor.u32 1.1754944e-38, %v511_v43  ;;  %v2007_v60 = vmul.f32 -1.702, %v2629_v54 }
  0xbf   : > { %v668_v55 = vmul.f32 %v2617_v42, %v2530_v57  ;;  %v524_v38 = vand.u32 2147483647, %v2605_v9  ;;  %v526_v43 = vand.u32 2147483648, %v2605_v9 }
  0xc0   : > { %v504_v58 = vadd.f32 %v2194_v7, %v503_v50  ;;  %2011 = vmatmul.msk.f32.vlgmr.msra.gmra.mxu1 %vm598_vm1, %v716_v49  ;;  %v456_v20 = vmul.f32 1.442695, %v2007_v60 }
  0xc1   : > { %v2196_v11 = vpop.eup %2195  ;;  %2019 = vmatmul.msk.f32.vlgmr.msra.gmra.mxu2 %vm598_vm1, %v668_v55  ;;  %v412_v2 = vpop.f32.mrf.mxu0  ;;  %vm525_vm3 = vcmp.eq.f32.partialorder %v524_v38, 8.507059e+37 }
  0xc2   : > { %v2198_v3 = vpop.eup %2197  ;;  %v508_v5 = vsel %vm507_vm12, %v2194_v7, %v504_v58  ;;  %v516_v57 = vmul.f32 %v2196_v11, %v2605_v9  ;;  %v413_v8 = vadd.f32 %v2485_v35, %v412_v2  ;;  %vm521_vm14 = vweird.f32 %v2196_v11  ;;  %v1221_v58 = vld [vmem:[%s3172_s4 + $0x38] sm:$0xff] }
  0xc3   : > { %v513_v16 = vsel %vm510_vm13, %v512_v19, %v508_v5  ;;  %v2644_v1 = vadd.f32 1.0, %v2198_v3  ;;  %1260 = vmatpush.msrb.mxu1 %v1221_v58  ;;  %vm522_vm2 = vmor %vm520_vm15, %vm521_vm14  ;;  %v527_v2 = vor.u32 1.1754944e-38, %v526_v43  ;;  %v675_v43 = vld [vmem:[#allocation2 + $0x8] sm:$0xff] }
  0xc4   : > { %v2647_v21 = vmul.f32 %v513_v16, %v2545_v63  ;;  %v517_v22 = vsub.f32 1.0, %v516_v57  ;;  %v2650_v7 = vmul.f32 %v2493_v36, %v413_v8  ;;  %2167 = vset.pattern.permute.xlu2 %v2259_v26 }
  0xc5   : > { %v2653_v23 = vld [vmem:[#allocation2 + $0x17] sm:$0xff]  ;;  %2199 = vrcp.f32 %v2644_v1  ;;  %2166 = vset.pattern.permute.xlu1 %v2258_v25  ;;  %v2661_v63 = vpop.permute.xlu1 %792  ;;  %896 = vperm.xlu2 %2167, %v2382_v12   ;;  %v2671_v55 = vpop.permute.xlu2 %732  ;;  %v539_v58 = vand.u32 2147483647, %v2644_v1  ;;  %vm535_vm5 = vweird.f32 %v2644_v1 }
  0xc6   : > { %v2657_v45 = vld [vmem:[#allocation2 + $0x11] sm:$0xff]  ;;  %605 = vst.msk [vmem:[#allocation2 + $0x20] sm:$0xff] %vm598_vm1, %v2647_v21  ;;  %v518_v50 = vmul.f32 %v2196_v11, %v517_v22  ;;  %2201 = vpow2.f32 %v456_v20  ;;  %852 = vperm.xlu1 %2166, %v2393_v14   ;;  %v2008_v25 = vmul.f32 -1.702, %v2650_v7 }
  0xc7   : > { %v2664_v49 = vld [vmem:[#allocation2 + $0x18] sm:$0xff]  ;;  %v764_v51 = vmul.f32 %v2573_v18, %v2657_v45  ;;  %v669_v18 = vmul.f32 %v2653_v23, %v2466_v31  ;;  %vm540_vm7 = vcmp.eq.f32.partialorder %v539_v58, 8.507059e+37 }
  0xc8   : > { %v519_v19 = vadd.f32 %v2196_v11, %v518_v50  ;;  %v717_v60 = vmul.f32 %v2478_v34, %v2664_v49  ;;  %v458_v3 = vmul.f32 1.442695, %v2008_v25  ;;  %v2686_v34 = vpop.permute.xlu0 %796 }
  0xc9   : > { %2027 = vmatmul.msk.f32.vlgmr.msra.gmra.mxu3 %vm598_vm1, %v764_v51  ;;  %v415_v5 = vpop.f32.mrf.mxu0  ;;  %2020 = vmatmul.msk.f32.gmra.mxu2 %vm598_vm1, %v669_v18 }
  0xca   : > { %v523_v57 = vsel %vm522_vm2, %v2196_v11, %v519_v19  ;;  %2012 = vmatmul.msk.f32.gmra.mxu1 %vm598_vm1, %v717_v60  ;;  %v416_v9 = vadd.f32 %v2485_v35, %v415_v5  ;;  %2203 = vpow2.f32 %v458_v3  ;;  %v541_v19 = vand.u32 2147483648, %v2644_v1 }
  0xcb   : > { %v2200_v44 = vpop.eup %2199  ;;  %v528_v8 = vsel %vm525_vm3, %v527_v2, %v523_v57 }
  0xcc   : > { %v2202_v31 = vpop.eup %2201  ;;  %v2689_v16 = vmul.f32 %v528_v8, %v2571_v17  ;;  %v531_v20 = vmul.f32 %v2200_v44, %v2644_v1  ;;  %v2693_v11 = vmul.f32 %v2493_v36, %v416_v9  ;;  %vm536_vm4 = vweird.f32 %v2200_v44 }
  0xcd   : > { %v2695_v22 = vld [vmem:[#allocation2 + $0x19] sm:$0xff]  ;;  %v2697_v38 = vadd.f32 1.0, %v2202_v31  ;;  %2169 = vset.pattern.permute.xlu2 %v2257_v24  ;;  %vm537_vm6 = vmor %vm535_vm5, %vm536_vm4  ;;  %v542_v8 = vor.u32 1.1754944e-38, %v541_v19 }
  0xce   : > { %606 = vst.msk [vmem:[#allocation2 + $0x28] sm:$0xff] %vm598_vm1, %v2689_v16  ;;  %v532_v35 = vsub.f32 1.0, %v531_v20  ;;  %v765_v17 = vmul.f32 %v2592_v56, %v2695_v22  ;;  %v2704_v50 = vld [vmem:[#allocation2 + $0x1f] sm:$0xff]  ;;  %2168 = vset.pattern.permute.xlu1 %v2260_v27  ;;  %v685_v36 = vpop.permute.xlu1 %684  ;;  %v2707_v51 = vpop.permute.xlu2 %808  ;;  %996 = vperm.xlu2 %2169, %v2393_v14   ;;  %v2009_v60 = vmul.f32 -1.702, %v2693_v11 }
  0xcf   : > { %v2709_v25 = vld [vmem:[#allocation2 + $0x20] sm:$0xff]  ;;  %2205 = vrcp.f32 %v2697_v38  ;;  %944 = vperm.xlu1 %2168, %v2382_v12   ;;  %v715_v18 = vmul.f32 %v685_v36, %v675_v43  ;;  %v670_v5 = vmul.f32 %v2704_v50, %v2447_v28  ;;  %vm550_vm9 = vweird.f32 %v2697_v38 }
  0xd0   : > { %v533_v56 = vmul.f32 %v2200_v44, %v532_v35  ;;  %v718_v2 = vmul.f32 %v2452_v29, %v2709_v25  ;;  %v2204_v3 = vpop.eup %2203  ;;  %v460_v12 = vmul.f32 1.442695, %v2009_v60  ;;  %v619_v29 = vld [vmem:[#allocation2 + $0x7] sm:$0xff]  ;;  %v745_v20 = vpop.permute.xlu0 %744 }
  0xd1   : > { %2028 = vmatmul.msk.f32.gmra.mxu3 %vm598_vm1, %v765_v17  ;;  %v2723_v9 = vadd.f32 1.0, %v2204_v3  ;;  %2010 = vmatmul.msk.f32.vlgmr.msrb.gmra.mxu0 %vm598_vm1, %v715_v18  ;;  %v1295_v60 = vld [vmem:[%s3172_s4 + $0x40] sm:$0xff]  ;;  %v1220_v18 = vld [vmem:[%s3172_s4 + $0x30] sm:$0xff]  ;;  %v554_v3 = vand.u32 2147483647, %v2697_v38 }
  0xd2   : > { %v534_v57 = vadd.f32 %v2200_v44, %v533_v56  ;;  %2013 = vmatmul.msk.f32.gmra.mxu1 %vm598_vm1, %v718_v2  ;;  %2021 = vmatmul.msk.f32.gmra.mxu2 %vm598_vm1, %v670_v5 }
  0xd3   : > { %1185 = vmatpush.msrb.mxu0 %v2551_v4  ;;  %2207 = vrcp.f32 %v2723_v9  ;;  %v667_v4 = vmul.f32 %v2615_v37, %v619_v29  ;;  %v556_v37 = vand.u32 2147483648, %v2697_v38  ;;  %1336 = vmatpush.msrb.mxu2 %v1295_v60  ;;  %vm555_vm11 = vcmp.eq.f32.partialorder %v554_v3, 8.507059e+37 }
  0xd4   : > { %v538_v31 = vsel %vm537_vm6, %v2200_v44, %v534_v57  ;;  %2209 = vpow2.f32 %v460_v12  ;;  %v1445_v57 = vld [vmem:[%s3172_s4 + $0x60] sm:$0xff]  ;;  %1261 = vmatpush.msrb.mxu1 %v1220_v18  ;;  %v569_v60 = vand.u32 2147483647, %v2723_v9  ;;  %vm565_vm13 = vweird.f32 %v2723_v9 }
  0xd5   : > { %v2206_v28 = vpop.eup %2205  ;;  %v543_v1 = vsel %vm540_vm7, %v542_v8, %v538_v31  ;;  %v2731_v43 = vld [vmem:[#allocation2 + $0x21] sm:$0xff]  ;;  %1186 = vmatpush.msrb.mxu0 %v2563_v10 }
  0xd6   : > { %v2735_v35 = vmul.f32 %v543_v1, %v2599_v0  ;;  %v766_v17 = vmul.f32 %v745_v20, %v2731_v43  ;;  %v546_v36 = vmul.f32 %v2206_v28, %v2697_v38  ;;  %v2740_v44 = vld [vmem:[#allocation2 + $0x27] sm:$0xff]  ;;  %2172 = vset.pattern.permute.xlu2 %v2260_v27  ;;  %vm551_vm8 = vweird.f32 %v2206_v28  ;;  %v1371_v20 = vld [vmem:[%s3172_s4 + $0x58] sm:$0xff] }
  0xd7   : > { %v2742_v58 = vld [vmem:[#allocation2 + $0x28] sm:$0xff]  ;;  %2171 = vset.pattern.permute.xlu1 %v2259_v26  ;;  %v2746_v19 = vpop.permute.xlu1 %800  ;;  %v2748_v10 = vpop.permute.xlu2 %876  ;;  %948 = vperm.xlu2 %2172, %v2393_v14   ;;  %v671_v27 = vmul.f32 %v2740_v44, %v2496_v39  ;;  %vm2782_vm10 = vmor %vm550_vm9, %vm551_vm8  ;;  %v557_v38 = vor.u32 1.1754944e-38, %v556_v37  ;;  %v1370_v37 = vld [vmem:[%s3172_s4 + $0x50] sm:$0xff]  ;;  %vm570_vm15 = vcmp.eq.f32.partialorder %v569_v60, 8.507059e+37 }
  0xd8   : > { %607 = vst.msk [vmem:[#allocation2 + $0x30] sm:$0xff] %vm598_vm1, %v2735_v35  ;;  %v547_v0 = vsub.f32 1.0, %v546_v36  ;;  %900 = vperm.xlu1 %2171, %v2393_v14   ;;  %v719_v56 = vmul.f32 %v2459_v30, %v2742_v58  ;;  %v1446_v14 = vld [vmem:[%s3172_s4 + $0x68] sm:$0xff]  ;;  %1410 = vmatpush.msrb.mxu3 %v1371_v20 }
  0xd9   : > { %2029 = vmatmul.msk.f32.gmra.mxu3 %vm598_vm1, %v766_v17  ;;  %v2769_v2 = vpop.eup %2207  ;;  %2018 = vmatmul.msk.f32.vlgmr.msra.gmra.mxu0 %vm598_vm1, %v667_v4  ;;  %v1596_v1 = vld [vmem:[%s3172_s4 + $0x88] sm:$0xff]  ;;  %v1521_v17 = vld [vmem:[%s3172_s4 + $0x78] sm:$0xff]  ;;  %v571_v4 = vand.u32 2147483648, %v2723_v9 }
  0xda   : > { %v548_v30 = vmul.f32 %v2206_v28, %v547_v0  ;;  %v2210_v39 = vpop.eup %2209  ;;  %v561_v5 = vmul.f32 %v2769_v2, %v2723_v9  ;;  %2014 = vmatmul.msk.f32.gmra.mxu1 %vm598_vm1, %v719_v56  ;;  %2022 = vmatmul.msk.f32.gmra.mxu2 %vm598_vm1, %v671_v27  ;;  %v723_v0 = vld [vmem:[#allocation2 + $0x9] sm:$0xff]  ;;  %vm566_vm12 = vweird.f32 %v2769_v2 }
  0xdb   : > { %v2786_v29 = vadd.f32 1.0, %v2210_v39  ;;  %1485 = vmatpush.msra.mxu0 %v1446_v14  ;;  %1635 = vmatpush.msra.mxu2 %v1596_v1  ;;  %v763_v39 = vmul.f32 %v2671_v55, %v723_v0  ;;  %vm567_vm14 = vmor %vm565_vm13, %vm566_vm12  ;;  %v761_v0 = vpop.permute.xlu0 %760 }
  0xdc   : > { %v549_v12 = vadd.f32 %v2206_v28, %v548_v30  ;;  %v562_v31 = vsub.f32 1.0, %v561_v5  ;;  %1560 = vmatpush.msra.mxu1 %v1521_v17  ;;  %1411 = vmatpush.msrb.mxu3 %v1370_v37 }
  0xdd   : > { %2211 = vrcp.f32 %v2786_v29  ;;  %1486 = vmatpush.msra.mxu0 %v1445_v57  ;;  %v586_v9 = vand.u32 2147483648, %v2786_v29  ;;  %vm580_vm2 = vweird.f32 %v2786_v29 }
  0xde   : > { %v553_v36 = vsel %vm2782_vm10, %v2206_v28, %v549_v12  ;;  %v563_v27 = vmul.f32 %v2769_v2, %v562_v31  ;;  %v907_v31 = vmul.f32 %v2748_v10, %v2653_v23 }
  0xdf   : > { %v558_v56 = vsel %vm555_vm11, %v557_v38, %v553_v36  ;;  %v2807_v28 = vld [vmem:[#allocation2 + $0x30] sm:$0xff]  ;;  %v2809_v18 = vpop.permute.xlu1 %804  ;;  %2174 = vset.pattern.permute.xlu2 %v2259_v26  ;;  %v584_v38 = vand.u32 2147483647, %v2786_v29  ;;  %v587_v37 = vor.u32 1.1754944e-38, %v586_v9 }
  0xe0   : > { %v2811_v14 = vld [vmem:[#allocation2 + $0x2f] sm:$0xff]  ;;  %v2816_v3 = vmul.f32 %v558_v56, %v2629_v54  ;;  %v720_v5 = vmul.f32 %v2807_v28, %v2515_v48  ;;  %v977_v57 = vpop.permute.xlu2 %976  ;;  %2173 = vset.pattern.permute.xlu1 %v2257_v24  ;;  %v564_v12 = vadd.f32 %v2769_v2, %v563_v27  ;;  %904 = vperm.xlu2 %2174, %v2400_v15   ;;  %v572_v24 = vor.u32 1.1754944e-38, %v571_v4 }
  0xe1   : > { %v2813_v30 = vld [vmem:[#allocation2 + $0x29] sm:$0xff]  ;;  %v672_v8 = vmul.f32 %v2601_v41, %v2811_v14  ;;  %1000 = vperm.xlu1 %2173, %v2400_v15   ;;  %v2836_v26 = vmul.f32 %v977_v57, %v2731_v43  ;;  %2026 = vmatmul.msk.f32.vlgmr.msrb.gmra.mxu0 %vm598_vm1, %v763_v39  ;;  %vm585_vm5 = vcmp.eq.f32.partialorder %v584_v38, 8.507059e+37 }
  0xe2   : > { %v767_v54 = vmul.f32 %v2542_v62, %v2813_v30  ;;  %608 = vst.msk [vmem:[#allocation2 + $0x38] sm:$0xff] %vm598_vm1, %v2816_v3  ;;  %v568_v48 = vsel %vm567_vm14, %v2769_v2, %v564_v12  ;;  %2015 = vmatmul.msk.f32.gmra.mxu1 %vm598_vm1, %v720_v5  ;;  %v1520_v9 = vld [vmem:[%s3172_s4 + $0x70] sm:$0xff] }
  0xe3   : > { %2023 = vmatmul.msk.f32.gmra.mxu2 %vm598_vm1, %v672_v8  ;;  %v2212_v15 = vpop.eup %2211  ;;  %v573_v62 = vsel %vm570_vm15, %v572_v24, %v568_v48  ;;  %v2890_v48 = vpop.permute.xlu0 %972  ;;  %1561 = vmatpush.msra.mxu1 %v1520_v9 }
  0xe4   : > { %2030 = vmatmul.msk.f32.gmra.mxu3 %vm598_vm1, %v767_v54  ;;  %v2844_v41 = vmul.f32 %v573_v62, %v2650_v7  ;;  %v576_v55 = vmul.f32 %v2212_v15, %v2786_v29  ;;  %vm581_vm3 = vweird.f32 %v2212_v15 }
  0xe5   : > { %vm582_vm4 = vmor %vm580_vm2, %vm581_vm3 }
  0xe6   : > { %609 = vst.msk [vmem:[#allocation2 + $0x40] sm:$0xff] %vm598_vm1, %v2844_v41  ;;  %v577_v2 = vsub.f32 1.0, %v576_v55  ;;  %v1595_v55 = vld [vmem:[%s3172_s4 + $0x80] sm:$0xff] }
  0xe7   : > { %1636 = vmatpush.msra.mxu2 %v1595_v55 }
  0xe8   : > { %v829_v1 = vpop.permute.xlu1 %828  ;;  %v578_v20 = vmul.f32 %v2212_v15, %v577_v2 }
  0xe9   : > { %v2854_v7 = vld [vmem:[#allocation2 + $0x37] sm:$0xff]  ;;  %v929_v4 = vpop.permute.xlu2 %928  ;;  %2058 = vmatmul.msk.f32.vlgmr.msra.gmra.mxu0 %vm598_vm1, %v907_v31  ;;  %v859_v2 = vmul.f32 %v829_v1, %v2657_v45  ;;  %v814_v1 = vmul.f32 %v2661_v63, %v2740_v44 }
  0xea   : > { %v2856_v17 = vld [vmem:[#allocation2 + $0x38] sm:$0xff]  ;;  %v673_v29 = vmul.f32 %v2854_v7, %v2468_v32  ;;  %v579_v27 = vadd.f32 %v2212_v15, %v578_v20  ;;  %v2868_v60 = vmul.f32 %v929_v4, %v2709_v25  ;;  %v813_v20 = vmul.f32 %v2622_v46, %v2704_v50 }
  0xeb   : > { %v2858_v36 = vld [vmem:[#allocation2 + $0x31] sm:$0xff]  ;;  %v721_v56 = vmul.f32 %v2540_v61, %v2856_v17 }
  0xec   : > { %v768_v10 = vmul.f32 %v2567_v13, %v2858_v36  ;;  %2024 = vmatmul.msk.f32.gmra.mxu2 %vm598_vm1, %v673_v29  ;;  %v583_v39 = vsel %vm582_vm4, %v2212_v15, %v579_v27  ;;  %v811_v15 = vmul.f32 %v2498_v40, %v2617_v42  ;;  %v837_v40 = vpop.permute.xlu0 %836  ;;  %v812_v42 = vmul.f32 %v2513_v47, %v2653_v23 }
  0xed   : > { %2016 = vmatmul.msk.f32.gmra.mxu1 %vm598_vm1, %v721_v56  ;;  %v588_v61 = vsel %vm585_vm5, %v587_v37, %v583_v39  ;;  %v2873_v5 = vld [vmem:[#allocation2 + $0x3f] sm:$0xff]  ;;  %v861_v46 = vmul.f32 %v837_v40, %v2731_v43 }
  0xee   : > { %2031 = vmatmul.msk.f32.gmra.mxu3 %vm598_vm1, %v768_v10  ;;  %v2875_v32 = vld [vmem:[#allocation2 + $0x40] sm:$0xff]  ;;  %v2880_v57 = vmul.f32 %v588_v61, %v2693_v11  ;;  %v674_v8 = vmul.f32 %v2873_v5, %v2476_v33  ;;  %v1003_v61 = vmul.f32 %v2890_v48, %v2695_v22 }
  0xef   : > { %v2877_v13 = vld [vmem:[#allocation2 + $0x39] sm:$0xff]  ;;  %v722_v25 = vmul.f32 %v2635_v59, %v2875_v32 }
  0xf0   : > { %v833_v12 = vpop.permute.xlu1 %832  ;;  %610 = vst.msk [vmem:[#allocation2 + $0x48] sm:$0xff] %vm598_vm1, %v2880_v57  ;;  %v769_v54 = vmul.f32 %v2585_v52, %v2877_v13 }
  0xf1   : > { %v860_v23 = vmul.f32 %v833_v12, %v2695_v22 }
  0xf2   : > { %v841_v24 = vpop.permute.xlu2 %840 }
  0xf4   : > { %2025 = vmatmul.msk.f32.gmra.mxu2 %vm598_vm1, %v674_v8  ;;  %v885_v31 = vpop.permute.xlu0 %884 }
  0xf5   : > { %2017 = vmatmul.msk.f32.gmra.mxu1 %vm598_vm1, %v722_v25  ;;  %v909_v47 = vmul.f32 %v885_v31, %v2740_v44  ;;  %v816_v44 = vmul.f32 %v2746_v19, %v2854_v7 }
  0xf6   : > { %2032 = vmatmul.msk.f32.gmra.mxu3 %vm598_vm1, %v769_v54 }
  0xf7   : > { %v2895_v11 = vld [vmem:[#allocation2 + $0x41] sm:$0xff]  ;;  %v826_v12 = vld [vmem:[#allocation2 + $0x49] sm:$0xff] }
  0xf8   : > { %v770_v59 = vmul.f32 %v2895_v11, %v761_v0  ;;  %v862_v0 = vmul.f32 %v841_v24, %v2813_v30  ;;  %v874_v40 = vld [vmem:[#allocation2 + $0x4f] sm:$0xff] }
  0xf9   : > { %v2898_v33 = vpop.permute.xlu1 %924 }
  0xfb   : > { %v985_v62 = vpop.permute.xlu2 %984 }
  0xfc   : > { %2042 = vmatmul.msk.f32.vlgmr.msrb.gmra.mxu2 %vm598_vm1, %v2588_v53  ;;  %v2906_v52 = vmul.f32 %v985_v62, %v2858_v36  ;;  %v937_v19 = vpop.permute.xlu0 %936 }
  0xfd   : > { %2034 = vmatmul.msk.f32.vlgmr.msrb.gmra.mxu1 %vm598_vm1, %v811_v15  ;;  %v958_v9 = vmul.f32 %v937_v19, %v2807_v28 }
  0xfe   : > { %2033 = vmatmul.msk.f32.gmra.mxu3 %vm598_vm1, %v770_v59 }
 0x102   : > { %v881_v53 = vpop.permute.xlu1 %880 }
 0x103   : > { %v908_v38 = vmul.f32 %v881_v53, %v2704_v50 }
 0x104   : > { %2043 = vmatmul.msk.f32.gmra.mxu2 %vm598_vm1, %v2611_v6  ;;  %v889_v6 = vpop.permute.xlu2 %888 }
 0x105   : > { %2035 = vmatmul.msk.f32.gmra.mxu1 %vm598_vm1, %v812_v42  ;;  %2059 = vmatmul.msk.f32.gmra.mxu0 %vm598_vm1, %v908_v38  ;;  %v910_v50 = vmul.f32 %v889_v6, %v2811_v14 }
 0x106   : > { %2050 = vmatmul.msk.f32.vlgmr.msrb.gmra.mxu3 %vm598_vm1, %v859_v2 }
 0x10b   : > { %v2928_v45 = vpop.permute.xlu1 %980 }
 0x10c   : > { %2044 = vmatmul.msk.f32.gmra.mxu2 %vm598_vm1, %v2647_v21  ;;  %v815_v21 = vmul.f32 %v2686_v34, %v2811_v14  ;;  %v1005_v48 = vmul.f32 %v2928_v45, %v2813_v30 }
 0x10d   : > { %2036 = vmatmul.msk.f32.gmra.mxu1 %vm598_vm1, %v813_v20  ;;  %2060 = vmatmul.msk.f32.gmra.mxu0 %vm598_vm1, %v909_v47  ;;  %v849_v43 = vpop.permute.xlu2 %848 }
 0x10e   : > { %2051 = vmatmul.msk.f32.gmra.mxu3 %vm598_vm1, %v860_v23  ;;  %v864_v37 = vmul.f32 %v849_v43, %v2877_v13 }
 0x114   : > { %2045 = vmatmul.msk.f32.gmra.mxu2 %vm598_vm1, %v2689_v16  ;;  %v933_v4 = vpop.permute.xlu1 %932 }
 0x115   : > { %2037 = vmatmul.msk.f32.gmra.mxu1 %vm598_vm1, %v814_v1  ;;  %2061 = vmatmul.msk.f32.gmra.mxu0 %vm598_vm1, %v910_v50  ;;  %v957_v59 = vmul.f32 %v933_v4, %v2742_v58 }
 0x116   : > { %2052 = vmatmul.msk.f32.gmra.mxu3 %vm598_vm1, %v861_v46  ;;  %v941_v14 = vpop.permute.xlu2 %940 }
 0x117   : > { %v959_v2 = vmul.f32 %v941_v14, %v2856_v17 }
 0x11c   : > { %2046 = vmatmul.msk.f32.gmra.mxu2 %vm598_vm1, %v2735_v35  ;;  %v817_v35 = vmul.f32 %v2809_v18, %v2873_v5  ;;  %v993_v18 = vpop.permute.xlu0 %992 }
 0x11d   : > { %2038 = vmatmul.msk.f32.gmra.mxu1 %vm598_vm1, %v815_v21  ;;  %v845_v63 = vpop.permute.xlu1 %844 }
 0x11e   : > { %2053 = vmatmul.msk.f32.gmra.mxu3 %vm598_vm1, %v862_v0  ;;  %v863_v16 = vmul.f32 %v845_v63, %v2858_v36  ;;  %v778_v36 = vld [vmem:[#allocation2 + $0x47] sm:$0xff] }
 0x11f   : > { %v818_v29 = vmul.f32 %v2707_v51, %v778_v36  ;;  %v897_v10 = vpop.permute.xlu2 %896  ;;  %v955_v51 = vmul.f32 %v2898_v33, %v2664_v49 }
 0x124   : > { %2047 = vmatmul.msk.f32.gmra.mxu2 %vm598_vm1, %v2816_v3 }
 0x125   : > { %2039 = vmatmul.msk.f32.gmra.mxu1 %vm598_vm1, %v816_v44 }
 0x126   : > { %2054 = vmatmul.msk.f32.gmra.mxu3 %vm598_vm1, %v863_v16  ;;  %v989_v34 = vpop.permute.xlu1 %988 }
 0x127   : > { %v1007_v38 = vmul.f32 %v989_v34, %v2877_v13  ;;  %v921_v13 = vld [vmem:[#allocation2 + $0x48] sm:$0xff] }
 0x12c   : > { %2048 = vmatmul.msk.f32.gmra.mxu2 %vm598_vm1, %v2844_v41  ;;  %v912_v41 = vmul.f32 %v897_v10, %v2873_v5  ;;  %v857_v5 = vpop.permute.xlu0 %856 }
 0x12d   : > { %2040 = vmatmul.msk.f32.gmra.mxu1 %vm598_vm1, %v817_v35  ;;  %v866_v25 = vmul.f32 %v857_v5, %v826_v12 }
 0x12e   : > { %2055 = vmatmul.msk.f32.gmra.mxu3 %vm598_vm1, %v864_v37 }
 0x12f   : > { %v893_v56 = vpop.permute.xlu1 %892 }
 0x130   : > { %v911_v3 = vmul.f32 %v893_v56, %v2854_v7  ;;  %v997_v7 = vpop.permute.xlu2 %996  ;;  %v1851_v56 = vld [vmem:[%s3175_s7 + $0x8] sm:$0xff] }
 0x131   : > { %v1009_v1 = vmul.f32 %v997_v7, %v826_v12  ;;  %1894 = vmatpush.msra.mxu3 %v1851_v56 }
 0x132   : > { %2062 = vmatmul.msk.f32.gmra.mxu0 %vm598_vm1, %v911_v3 }
 0x134   : > { %2049 = vmatmul.msk.f32.gmra.mxu2 %vm598_vm1, %v2880_v57  ;;  %v953_v50 = vpop.permute.xlu0 %952 }
 0x135   : > { %2041 = vmatmul.msk.f32.gmra.mxu1 %vm598_vm1, %v818_v29 }
 0x138   : > { %v853_v27 = vpop.permute.xlu1 %852  ;;  %v949_v54 = vpop.permute.xlu2 %948 }
 0x139   : > { %v865_v39 = vmul.f32 %v2895_v11, %v853_v27  ;;  %v961_v46 = vmul.f32 %v949_v54, %v921_v13 }
 0x13a   : > { %2063 = vmatmul.msk.f32.gmra.mxu0 %vm598_vm1, %v912_v41 }
 0x13b   : > { %2056 = vmatmul.msk.f32.gmra.mxu3 %vm598_vm1, %v865_v39 }
 0x13c   : > { %2074 = vmatmul.msk.f32.vlgmr.msra.gmra.mxu2 %vm598_vm1, %v1003_v61 }
 0x13d   : > { %2066 = vmatmul.msk.f32.vlgmr.msra.gmra.mxu1 %vm598_vm1, %v955_v51  ;;  %v1059_v57 = vpop.f32.mrf.mxu1 }
 0x140   : > { %v905_v55 = vpop.permute.xlu2 %904 }
 0x141   : > { %v945_v8 = vpop.permute.xlu1 %944  ;;  %v914_v42 = vmul.f32 %v905_v55, %v874_v40 }
 0x142   : > { %v960_v47 = vmul.f32 %v945_v8, %v2875_v32  ;;  %v970_v32 = vld [vmem:[#allocation2 + $0x51] sm:$0xff] }
 0x143   : > { %2057 = vmatmul.msk.f32.gmra.mxu3 %vm598_vm1, %v866_v25 }
 0x144   : > { %2075 = vmatmul.msk.f32.gmra.mxu2 %vm598_vm1, %v2836_v26  ;;  %v1124_v49 = vpop.f32.mrf.mxu2 }
 0x145   : > { %2067 = vmatmul.msk.f32.gmra.mxu1 %vm598_vm1, %v2868_v60  ;;  %v2986_v22 = vadd.f32 %v1124_v49, %v1059_v57 }
 0x147   : > { %v1062_v24 = vpop.f32.mrf.mxu1 }
 0x14a   : > { %v901_v33 = vpop.permute.xlu1 %900 }
 0x14b   : > { %v913_v15 = vmul.f32 %v901_v33, %v778_v36 }
 0x14c   : > { %2076 = vmatmul.msk.f32.gmra.mxu2 %vm598_vm1, %v1005_v48  ;;  %v1127_v60 = vpop.f32.mrf.mxu2  ;;  %v1191_v23 = vpop.f32.mrf.mxu3 }
 0x14d   : > { %2068 = vmatmul.msk.f32.gmra.mxu1 %vm598_vm1, %v957_v59  ;;  %2064 = vmatmul.msk.f32.gmra.mxu0 %vm598_vm1, %v913_v15  ;;  %v2994_v26 = vadd.f32 %v1127_v60, %v1062_v24 }
 0x14e   : > { %v1056_v39 = vpop.f32.mrf.mxu0 }
 0x14f   : > { %v1065_v62 = vpop.f32.mrf.mxu1 }
 0x153   : > { %v1001_v4 = vpop.permute.xlu1 %1000 }
 0x154   : > { %2077 = vmatmul.msk.f32.gmra.mxu2 %vm598_vm1, %v2906_v52  ;;  %v1008_v52 = vmul.f32 %v993_v18, %v2895_v11  ;;  %v922_v11 = vld [vmem:[#allocation2 + $0x50] sm:$0xff]  ;;  %v1194_v21 = vpop.f32.mrf.mxu3  ;;  %v1010_v16 = vmul.f32 %v1001_v4, %v970_v32 }
 0x155   : > { %2069 = vmatmul.msk.f32.gmra.mxu1 %vm598_vm1, %v958_v9  ;;  %2065 = vmatmul.msk.f32.gmra.mxu0 %vm598_vm1, %v914_v42  ;;  %v1130_v58 = vpop.f32.mrf.mxu2  ;;  %v962_v43 = vmul.f32 %v953_v50, %v922_v11  ;;  %v1214_v50 = vadd.f32 %v1194_v21, %v2994_v26 }
 0x156   : > { %v3001_v30 = vadd.f32 %v1130_v58, %v1065_v62  ;;  %v1121_v57 = vpop.f32.mrf.mxu0 }
 0x157   : > { %v1068_v53 = vpop.f32.mrf.mxu1  ;;  %v1122_v48 = vadd.f32 %v1121_v57, %v1056_v39 }
 0x15c   : > { %2078 = vmatmul.msk.f32.gmra.mxu2 %vm598_vm1, %v1007_v38  ;;  %v3023_v35 = vpop.f32.mrf.mxu3 }
 0x15d   : > { %2070 = vmatmul.msk.f32.gmra.mxu1 %vm598_vm1, %v959_v2  ;;  %v1133_v28 = vpop.f32.mrf.mxu2  ;;  %v1213_v2 = vadd.f32 %v1191_v23, %v2986_v22  ;;  %v1850_v22 = vld [vmem:[%s3175_s7] sm:$0xff] }
 0x15e   : > { %v3007_v31 = vadd.f32 %v1133_v28, %v1068_v53  ;;  %v1188_v8 = vpop.f32.mrf.mxu0  ;;  %1895 = vmatpush.msra.mxu3 %v1850_v22 }
 0x15f   : > { %v1071_v20 = vpop.f32.mrf.mxu1  ;;  %v1212_v60 = vadd.f32 %v1188_v8, %v1122_v48 }
 0x164   : > { %2079 = vmatmul.msk.f32.gmra.mxu2 %vm598_vm1, %v1008_v52 }
 0x165   : > { %2071 = vmatmul.msk.f32.gmra.mxu1 %vm598_vm1, %v960_v47  ;;  %v3056_v47 = vld [vmem:[%s3174_s6] ss:$0 sm:$0xff] }
 0x166   : > { %v1136_v17 = vpop.f32.mrf.mxu2  ;;  %v1488_v33 = vpop.f32.mrf.mxu0 }
 0x167   : > { %v3013_v45 = vadd.f32 %v1136_v17, %v1071_v20  ;;  %v3028_v3 = vpop.f32.mrf.mxu3 }
 0x16a   : > { %v1074_v6 = vpop.f32.mrf.mxu1 }
 0x16c   : > { %2080 = vmatmul.msk.f32.gmra.mxu2 %vm598_vm1, %v1009_v1 }
 0x16d   : > { %2072 = vmatmul.msk.f32.gmra.mxu1 %vm598_vm1, %v961_v46 }
 0x16f   : > { %v1139_v0 = vpop.f32.mrf.mxu2 }
 0x170   : > { %v3017_v63 = vadd.f32 %v1139_v0, %v1074_v6 }
 0x171   : > { %v3030_v18 = vpop.f32.mrf.mxu3 }
 0x172   : > { %v1077_v44 = vpop.f32.mrf.mxu1 }
 0x174   : > { %2081 = vmatmul.msk.f32.gmra.mxu2 %vm598_vm1, %v1010_v16 }
 0x175   : > { %2073 = vmatmul.msk.f32.gmra.mxu1 %vm598_vm1, %v962_v43 }
 0x177   : > { %v1142_v34 = vpop.f32.mrf.mxu2 }
 0x178   : > { %v3021_v14 = vadd.f32 %v1142_v34, %v1077_v44 }
 0x179   : > { %v3032_v61 = vpop.f32.mrf.mxu3 }
 0x17a   : > { %v1263_v37 = vpop.f32.mrf.mxu1 }
 0x17b   : > { %v1287_v62 = vadd.f32 %v1263_v37, %v1212_v60 }
 0x17f   : > { %v1338_v19 = vpop.f32.mrf.mxu2 }
 0x180   : > { %v1362_v9 = vadd.f32 %v1338_v19, %v1287_v62 }
 0x181   : > { %v3038_v12 = vpop.f32.mrf.mxu3 }
 0x182   : > { %v1266_v36 = vpop.f32.mrf.mxu1  ;;  %v1491_v58 = vpop.f32.mrf.mxu0 }
 0x183   : > { %v1288_v38 = vadd.f32 %v1266_v36, %v1213_v2  ;;  %v1215_v36 = vadd.f32 %v3023_v35, %v3001_v30 }
 0x187   : > { %v1341_v29 = vpop.f32.mrf.mxu2 }
 0x188   : > { %v1363_v20 = vadd.f32 %v1341_v29, %v1288_v38 }
 0x189   : > { %v1413_v24 = vpop.f32.mrf.mxu3 }
 0x18a   : > { %v1269_v10 = vpop.f32.mrf.mxu1  ;;  %v1437_v42 = vadd.f32 %v1413_v24, %v1362_v9  ;;  %v1494_v23 = vpop.f32.mrf.mxu0 }
 0x18b   : > { %v1289_v4 = vadd.f32 %v1269_v10, %v1214_v50 }
 0x18c   : > { %v1512_v28 = vadd.f32 %v1488_v33, %v1437_v42 }
 0x18f   : > { %v1344_v41 = vpop.f32.mrf.mxu2 }
 0x190   : > { %v1364_v43 = vadd.f32 %v1344_v41, %v1289_v4 }
 0x191   : > { %v1416_v55 = vpop.f32.mrf.mxu3 }
 0x192   : > { %v1272_v27 = vpop.f32.mrf.mxu1  ;;  %v1438_v6 = vadd.f32 %v1416_v55, %v1363_v20  ;;  %v1497_v57 = vpop.f32.mrf.mxu0 }
 0x193   : > { %v1290_v29 = vadd.f32 %v1272_v27, %v1215_v36  ;;  %v1216_v27 = vadd.f32 %v3028_v3, %v3007_v31 }
 0x194   : > { %v1513_v0 = vadd.f32 %v1491_v58, %v1438_v6 }
 0x197   : > { %v1347_v51 = vpop.f32.mrf.mxu2 }
 0x198   : > { %v1365_v8 = vadd.f32 %v1347_v51, %v1290_v29 }
 0x199   : > { %v1419_v17 = vpop.f32.mrf.mxu3 }
 0x19a   : > { %v3034_v7 = vpop.f32.mrf.mxu1  ;;  %v1439_v37 = vadd.f32 %v1419_v17, %v1364_v43 }
 0x19b   : > { %v1291_v2 = vadd.f32 %v3034_v7, %v1216_v27  ;;  %v1217_v7 = vadd.f32 %v3030_v18, %v3013_v45 }
 0x19c   : > { %v1514_v39 = vadd.f32 %v1494_v23, %v1439_v37 }
 0x19f   : > { %v3036_v5 = vpop.f32.mrf.mxu2 }
 0x1a1   : > { %v1422_v21 = vpop.f32.mrf.mxu3 }
 0x1a2   : > { %v3040_v25 = vpop.f32.mrf.mxu1  ;;  %v1440_v62 = vadd.f32 %v1422_v21, %v1365_v8 }
 0x1a4   : > { %v1515_v58 = vadd.f32 %v1497_v57, %v1440_v62 }
 0x1a7   : > { %v3042_v49 = vpop.f32.mrf.mxu2 }
 0x1a9   : > { %v1425_v35 = vpop.f32.mrf.mxu3 }
 0x1aa   : > { %v3044_v54 = vpop.f32.mrf.mxu1 }
 0x1af   : > { %v3046_v59 = vpop.f32.mrf.mxu2  ;;  %v1500_v51 = vpop.f32.mrf.mxu0 }
 0x1b1   : > { %v1428_v43 = vpop.f32.mrf.mxu3 }
 0x1b2   : > { %v3048_v15 = vpop.f32.mrf.mxu1 }
 0x1b7   : > { %v3050_v40 = vpop.f32.mrf.mxu2 }
 0x1ba   : > { %v1563_v53 = vpop.f32.mrf.mxu1 }
 0x1bb   : > { %v1587_v52 = vadd.f32 %v1563_v53, %v1512_v28 }
 0x1bf   : > { %v1638_v13 = vpop.f32.mrf.mxu2 }
 0x1c0   : > { %v1662_v1 = vadd.f32 %v1638_v13, %v1587_v52  ;;  %v1366_v13 = vadd.f32 %v3036_v5, %v1291_v2 }
 0x1c2   : > { %v1566_v46 = vpop.f32.mrf.mxu1  ;;  %v3060_v11 = vmul.f32 %v3056_v47, %v1662_v1  ;;  %v1441_v3 = vadd.f32 %v1425_v35, %v1366_v13  ;;  %v1431_v35 = vpop.f32.mrf.mxu3 }
 0x1c3   : > { %v1588_v44 = vadd.f32 %v1566_v46, %v1513_v0  ;;  %v1292_v0 = vadd.f32 %v3040_v25, %v1217_v7 }
 0x1c4   : > { %v2082_v32 = vmul.f32 -1.702, %v3060_v11  ;;  %v1516_v4 = vadd.f32 %v1500_v51, %v1441_v3  ;;  %v1219_v3 = vadd.f32 %v3038_v12, %v3021_v14 }
 0x1c5   : > { %v1367_v21 = vadd.f32 %v3042_v49, %v1292_v0 }
 0x1c6   : > { %v1698_v16 = vmul.f32 1.442695, %v2082_v32 }
 0x1c7   : > { %v1641_v34 = vpop.f32.mrf.mxu2 }
 0x1c8   : > { %2213 = vpow2.f32 %v1698_v16  ;;  %v1663_v26 = vadd.f32 %v1641_v34, %v1588_v44 }
 0x1ca   : > { %v1569_v19 = vpop.f32.mrf.mxu1  ;;  %v3069_v56 = vmul.f32 %v3056_v47, %v1663_v26 }
 0x1cb   : > { %v1589_v48 = vadd.f32 %v1569_v19, %v1514_v39  ;;  %v1503_v19 = vpop.f32.mrf.mxu0 }
 0x1cc   : > { %v2083_v10 = vmul.f32 -1.702, %v3069_v56 }
 0x1ce   : > { %v2214_v41 = vpop.eup %2213  ;;  %v1700_v24 = vmul.f32 1.442695, %v2083_v10 }
 0x1cf   : > { %v1714_v33 = vadd.f32 1.0, %v2214_v41  ;;  %v1644_v60 = vpop.f32.mrf.mxu2  ;;  %v1442_v41 = vadd.f32 %v1428_v43, %v1367_v21 }
 0x1d0   : > { %2215 = vpow2.f32 %v1700_v24  ;;  %v1664_v55 = vadd.f32 %v1644_v60, %v1589_v48  ;;  %v1218_v48 = vadd.f32 %v3032_v61, %v3017_v63 }
 0x1d1   : > { %2217 = vrcp.f32 %v1714_v33  ;;  %v1731_v22 = vand.u32 2147483647, %v1714_v33  ;;  %v1733_v23 = vand.u32 2147483648, %v1714_v33  ;;  %vm1727_vm7 = vweird.f32 %v1714_v33 }
 0x1d2   : > { %v1572_v9 = vpop.f32.mrf.mxu1  ;;  %v3073_v30 = vmul.f32 %v3056_v47, %v1664_v55  ;;  %v1517_v62 = vadd.f32 %v1503_v19, %v1442_v41 }
 0x1d3   : > { %v1590_v28 = vadd.f32 %v1572_v9, %v1515_v58  ;;  %vm1732_vm9 = vcmp.eq.f32.partialorder %v1731_v22, 8.507059e+37  ;;  %v1734_v45 = vor.u32 1.1754944e-38, %v1733_v23 }
 0x1d4   : > { %v2084_v42 = vmul.f32 -1.702, %v3073_v30 }
 0x1d6   : > { %v2216_v53 = vpop.eup %2215  ;;  %v1702_v38 = vmul.f32 1.442695, %v2084_v42 }
 0x1d7   : > { %v2218_v20 = vpop.eup %2217  ;;  %v3079_v52 = vadd.f32 1.0, %v2216_v53  ;;  %v1647_v17 = vpop.f32.mrf.mxu2 }
 0x1d8   : > { %v1723_v6 = vmul.f32 %v2218_v20, %v1714_v33  ;;  %2219 = vpow2.f32 %v1702_v38  ;;  %v1665_v1 = vadd.f32 %v1647_v17, %v1590_v28  ;;  %vm1728_vm6 = vweird.f32 %v2218_v20  ;;  %v1506_v53 = vpop.f32.mrf.mxu0 }
 0x1d9   : > { %2221 = vrcp.f32 %v3079_v52  ;;  %vm1729_vm8 = vmor %vm1727_vm7, %vm1728_vm6  ;;  %v1746_v33 = vand.u32 2147483647, %v3079_v52  ;;  %v1748_v60 = vand.u32 2147483648, %v3079_v52  ;;  %vm1742_vm11 = vweird.f32 %v3079_v52 }
 0x1da   : > { %v1575_v31 = vpop.f32.mrf.mxu1  ;;  %v1724_v46 = vsub.f32 1.0, %v1723_v6  ;;  %v3084_v50 = vmul.f32 %v3056_v47, %v1665_v1 }
 0x1db   : > { %v1591_v37 = vadd.f32 %v1575_v31, %v1516_v4  ;;  %vm1747_vm13 = vcmp.eq.f32.partialorder %v1746_v33, 8.507059e+37  ;;  %v1749_v28 = vor.u32 1.1754944e-38, %v1748_v60 }
 0x1dc   : > { %v1725_v32 = vmul.f32 %v2218_v20, %v1724_v46  ;;  %v2085_v5 = vmul.f32 -1.702, %v3084_v50 }
 0x1de   : > { %v2220_v16 = vpop.eup %2219  ;;  %v1726_v44 = vadd.f32 %v2218_v20, %v1725_v32  ;;  %v1704_v34 = vmul.f32 1.442695, %v2085_v5  ;;  %v1294_v32 = vadd.f32 %v3048_v15, %v1219_v3 }
 0x1df   : > { %v2222_v26 = vpop.eup %2221  ;;  %v3091_v18 = vadd.f32 1.0, %v2220_v16  ;;  %v1650_v36 = vpop.f32.mrf.mxu2 }
 0x1e0   : > { %v1730_v29 = vsel %vm1729_vm8, %v2218_v20, %v1726_v44  ;;  %2223 = vpow2.f32 %v1704_v34  ;;  %v1666_v10 = vadd.f32 %v1650_v36, %v1591_v37  ;;  %v1738_v25 = vmul.f32 %v2222_v26, %v3079_v52  ;;  %v1434_v16 = vpop.f32.mrf.mxu3  ;;  %v1509_v19 = vpop.f32.mrf.mxu0 }
 0x1e1   : > { %v1735_v39 = vsel %vm1732_vm9, %v1734_v45, %v1730_v29  ;;  %2225 = vrcp.f32 %v3091_v18  ;;  %vm1743_vm10 = vweird.f32 %v2222_v26  ;;  %v1761_v46 = vand.u32 2147483647, %v3091_v18 }
 0x1e2   : > { %v1578_v57 = vpop.f32.mrf.mxu1  ;;  %v1842_v8 = vmul.f32 %v1735_v39, %v3060_v11  ;;  %v3097_v49 = vmul.f32 %v3056_v47, %v1666_v10  ;;  %v1739_v24 = vsub.f32 1.0, %v1738_v25  ;;  %v1293_v11 = vadd.f32 %v3044_v54, %v1218_v48  ;;  %vm1744_vm12 = vmor %vm1742_vm11, %vm1743_vm10 }
 0x1e3   : > { %v1592_v58 = vadd.f32 %v1578_v57, %v1517_v62  ;;  %v1763_v7 = vand.u32 2147483648, %v3091_v18  ;;  %vm1757_vm15 = vweird.f32 %v3091_v18  ;;  %v1369_v12 = vadd.f32 %v3050_v40, %v1294_v32 }
 0x1e4   : > { %v2086_v55 = vmul.f32 -1.702, %v3097_v49  ;;  %2090 = vmatmul.msk.f32.vlgmr.msra.gmra.mxu3 %vm598_vm1, %v1842_v8  ;;  %v1740_v9 = vmul.f32 %v2222_v26, %v1739_v24  ;;  %v1368_v61 = vadd.f32 %v3046_v59, %v1293_v11  ;;  %vm1762_vm3 = vcmp.eq.f32.partialorder %v1761_v46, 8.507059e+37 }
 0x1e5   : > { %v1764_v37 = vor.u32 1.1754944e-38, %v1763_v7  ;;  %v1444_v36 = vadd.f32 %v1434_v16, %v1369_v12 }
 0x1e6   : > { %v2224_v27 = vpop.eup %2223  ;;  %v1706_v42 = vmul.f32 1.442695, %v2086_v55  ;;  %v1741_v51 = vadd.f32 %v2222_v26, %v1740_v9  ;;  %v1443_v52 = vadd.f32 %v1431_v35, %v1368_v61 }
 0x1e7   : > { %v2226_v63 = vpop.eup %2225  ;;  %v3108_v2 = vadd.f32 1.0, %v2224_v27  ;;  %v1653_v38 = vpop.f32.mrf.mxu2  ;;  %v1519_v57 = vadd.f32 %v1509_v19, %v1444_v36 }
 0x1e8   : > { %2227 = vpow2.f32 %v1706_v42  ;;  %v1667_v20 = vadd.f32 %v1653_v38, %v1592_v58  ;;  %v1745_v54 = vsel %vm1744_vm12, %v2222_v26, %v1741_v51  ;;  %v1753_v17 = vmul.f32 %v2226_v63, %v3091_v18 }
 0x1e9   : > { %2229 = vrcp.f32 %v3108_v2  ;;  %v1750_v6 = vsel %vm1747_vm13, %v1749_v28, %v1745_v54  ;;  %v1518_v22 = vadd.f32 %v1506_v53, %v1443_v52  ;;  %vm1758_vm14 = vweird.f32 %v2226_v63 }
 0x1ea   : > { %v1581_v13 = vpop.f32.mrf.mxu1  ;;  %v3113_v1 = vmul.f32 %v3056_v47, %v1667_v20  ;;  %v1843_v59 = vmul.f32 %v1750_v6, %v3069_v56  ;;  %v1754_v31 = vsub.f32 1.0, %v1753_v17  ;;  %vm1759_vm2 = vmor %vm1757_vm15, %vm1758_vm14  ;;  %v1776_v25 = vand.u32 2147483647, %v3108_v2 }
 0x1eb   : > { %v1593_v56 = vadd.f32 %v1581_v13, %v1518_v22  ;;  %v1778_v39 = vand.u32 2147483648, %v3108_v2  ;;  %vm1772_vm5 = vweird.f32 %v3108_v2 }
 0x1ec   : > { %v2087_v23 = vmul.f32 -1.702, %v3113_v1  ;;  %2091 = vmatmul.msk.f32.gmra.mxu3 %vm598_vm1, %v1843_v59  ;;  %v1755_v4 = vmul.f32 %v2226_v63, %v1754_v31  ;;  %vm1777_vm7 = vcmp.eq.f32.partialorder %v1776_v25, 8.507059e+37 }
 0x1ed   : > { %v1779_v9 = vor.u32 1.1754944e-38, %v1778_v39 }
 0x1ee   : > { %v2228_v5 = vpop.eup %2227  ;;  %v1708_v0 = vmul.f32 1.442695, %v2087_v23  ;;  %v1756_v43 = vadd.f32 %v2226_v63, %v1755_v4 }
 0x1ef   : > { %v2230_v14 = vpop.eup %2229  ;;  %v1718_v44 = vadd.f32 1.0, %v2228_v5  ;;  %v1656_v34 = vpop.f32.mrf.mxu2 }
 0x1f0   : > { %2231 = vpow2.f32 %v1708_v0  ;;  %v1668_v26 = vadd.f32 %v1656_v34, %v1593_v56  ;;  %v1760_v21 = vsel %vm1759_vm2, %v2226_v63, %v1756_v43  ;;  %v1768_v15 = vmul.f32 %v2230_v14, %v3108_v2 }
 0x1f1   : > { %2233 = vrcp.f32 %v1718_v44  ;;  %v1765_v45 = vsel %vm1762_vm3, %v1764_v37, %v1760_v21  ;;  %vm1773_vm4 = vweird.f32 %v2230_v14  ;;  %v1793_v61 = vand.u32 2147483648, %v1718_v44 }
 0x1f2   : > { %v3127_v18 = vmul.f32 %v3056_v47, %v1668_v26  ;;  %v1844_v40 = vmul.f32 %v1765_v45, %v3073_v30  ;;  %v1769_v29 = vsub.f32 1.0, %v1768_v15  ;;  %v1584_v10 = vpop.f32.mrf.mxu1  ;;  %vm1774_vm6 = vmor %vm1772_vm5, %vm1773_vm4  ;;  %v1791_v38 = vand.u32 2147483647, %v1718_v44 }
 0x1f3   : > { %v1594_v33 = vadd.f32 %v1584_v10, %v1519_v57  ;;  %vm1787_vm9 = vweird.f32 %v1718_v44 }
 0x1f4   : > { %v2088_v41 = vmul.f32 -1.702, %v3127_v18  ;;  %2092 = vmatmul.msk.f32.gmra.mxu3 %vm598_vm1, %v1844_v40  ;;  %v1770_v8 = vmul.f32 %v2230_v14, %v1769_v29  ;;  %vm1792_vm11 = vcmp.eq.f32.partialorder %v1791_v38, 8.507059e+37 }
 0x1f6   : > { %v2232_v24 = vpop.eup %2231  ;;  %v1710_v48 = vmul.f32 1.442695, %v2088_v41  ;;  %v1771_v60 = vadd.f32 %v2230_v14, %v1770_v8 }
 0x1f7   : > { %v2234_v30 = vpop.eup %2233  ;;  %v1719_v62 = vadd.f32 1.0, %v2232_v24  ;;  %v1659_v55 = vpop.f32.mrf.mxu2 }
 0x1f8   : > { %2235 = vpow2.f32 %v1710_v48  ;;  %v1669_v11 = vadd.f32 %v1659_v55, %v1594_v33  ;;  %v1775_v35 = vsel %vm1774_vm6, %v2230_v14, %v1771_v60  ;;  %v1783_v27 = vmul.f32 %v2234_v30, %v1718_v44 }
 0x1f9   : > { %2237 = vrcp.f32 %v1719_v62  ;;  %v1780_v42 = vsel %vm1777_vm7, %v1779_v9, %v1775_v35  ;;  %vm1788_vm8 = vweird.f32 %v2234_v30  ;;  %v1808_v3 = vand.u32 2147483648, %v1719_v62 }
 0x1fa   : > { %v3136_v58 = vmul.f32 %v3056_v47, %v1669_v11  ;;  %v1845_v51 = vmul.f32 %v1780_v42, %v3084_v50  ;;  %v1784_v63 = vsub.f32 1.0, %v1783_v27  ;;  %vm1789_vm10 = vmor %vm1787_vm9, %vm1788_vm8  ;;  %v1794_v47 = vor.u32 1.1754944e-38, %v1793_v61 }
 0x1fb   : > { %v1806_v7 = vand.u32 2147483647, %v1719_v62  ;;  %vm1802_vm13 = vweird.f32 %v1719_v62  ;;  %v1809_v5 = vor.u32 1.1754944e-38, %v1808_v3 }
 0x1fc   : > { %v2089_v53 = vmul.f32 -1.702, %v3136_v58  ;;  %2093 = vmatmul.msk.f32.gmra.mxu3 %vm598_vm1, %v1845_v51  ;;  %v1785_v2 = vmul.f32 %v2234_v30, %v1784_v63 }
 0x1fd   : > { %vm1807_vm15 = vcmp.eq.f32.partialorder %v1806_v7, 8.507059e+37 }
 0x1fe   : > { %v2236_v28 = vpop.eup %2235  ;;  %v1712_v20 = vmul.f32 1.442695, %v2089_v53  ;;  %v1786_v54 = vadd.f32 %v2234_v30, %v1785_v2 }
 0x1ff   : > { %v2238_v17 = vpop.eup %2237  ;;  %v1720_v13 = vadd.f32 1.0, %v2236_v28 }
 0x200   : > { %2239 = vpow2.f32 %v1712_v20  ;;  %v1790_v6 = vsel %vm1789_vm10, %v2234_v30, %v1786_v54  ;;  %v1798_v50 = vmul.f32 %v2238_v17, %v1719_v62  ;;  %vm1803_vm12 = vweird.f32 %v2238_v17 }
 0x201   : > { %2241 = vrcp.f32 %v1720_v13  ;;  %v1795_v52 = vsel %vm1792_vm11, %v1794_v47, %v1790_v6  ;;  %vm1804_vm14 = vmor %vm1802_vm13, %vm1803_vm12  ;;  %v1823_v12 = vand.u32 2147483648, %v1720_v13  ;;  %v1821_v44 = vand.u32 2147483647, %v1720_v13 }
 0x202   : > { %v1846_v59 = vmul.f32 %v1795_v52, %v3097_v49  ;;  %v1799_v31 = vsub.f32 1.0, %v1798_v50  ;;  %vm1817_vm3 = vweird.f32 %v1720_v13 }
 0x203   : > { %v1824_v26 = vor.u32 1.1754944e-38, %v1823_v12  ;;  %vm1822_vm5 = vcmp.eq.f32.partialorder %v1821_v44, 8.507059e+37 }
 0x204   : > { %2094 = vmatmul.msk.f32.gmra.mxu3 %vm598_vm1, %v1846_v59  ;;  %v1800_v46 = vmul.f32 %v2238_v17, %v1799_v31 }
 0x206   : > { %v2240_v22 = vpop.eup %2239  ;;  %v1801_v23 = vadd.f32 %v2238_v17, %v1800_v46 }
 0x207   : > { %v2242_v4 = vpop.eup %2241  ;;  %v1721_v32 = vadd.f32 1.0, %v2240_v22 }
 0x208   : > { %v1805_v0 = vsel %vm1804_vm14, %v2238_v17, %v1801_v23  ;;  %v1813_v56 = vmul.f32 %v2242_v4, %v1720_v13  ;;  %vm1818_vm2 = vweird.f32 %v2242_v4 }
 0x209   : > { %2243 = vrcp.f32 %v1721_v32  ;;  %v1810_v43 = vsel %vm1807_vm15, %v1809_v5, %v1805_v0  ;;  %vm1819_vm4 = vmor %vm1817_vm3, %vm1818_vm2  ;;  %v1836_v29 = vand.u32 2147483647, %v1721_v32  ;;  %vm1832_vm7 = vweird.f32 %v1721_v32 }
 0x20a   : > { %v1847_v49 = vmul.f32 %v1810_v43, %v3113_v1  ;;  %v1814_v14 = vsub.f32 1.0, %v1813_v56  ;;  %v1838_v1 = vand.u32 2147483648, %v1721_v32 }
 0x20b   : > { %vm1837_vm9 = vcmp.eq.f32.partialorder %v1836_v29, 8.507059e+37 }
 0x20c   : > { %2095 = vmatmul.msk.f32.gmra.mxu3 %vm598_vm1, %v1847_v49  ;;  %v1815_v16 = vmul.f32 %v2242_v4, %v1814_v14  ;;  %v1839_v25 = vor.u32 1.1754944e-38, %v1838_v1 }
 0x20e   : > { %v1816_v34 = vadd.f32 %v2242_v4, %v1815_v16 }
 0x20f   : > { %v2244_v37 = vpop.eup %2243 }
 0x210   : > { %v1820_v21 = vsel %vm1819_vm4, %v2242_v4, %v1816_v34  ;;  %v1828_v15 = vmul.f32 %v2244_v37, %v1721_v32  ;;  %vm1833_vm6 = vweird.f32 %v2244_v37 }
 0x211   : > { %v1825_v19 = vsel %vm1822_vm5, %v1824_v26, %v1820_v21  ;;  %vm1834_vm8 = vmor %vm1832_vm7, %vm1833_vm6 }
 0x212   : > { %v1848_v45 = vmul.f32 %v1825_v19, %v3127_v18  ;;  %v1829_v36 = vsub.f32 1.0, %v1828_v15  ;;  %v2180_v18 = vld [vmem:[%s3176_s8] ss:$0 sm:$0xff] }
 0x214   : > { %2096 = vmatmul.msk.f32.gmra.mxu3 %vm598_vm1, %v1848_v45  ;;  %v1830_v40 = vmul.f32 %v2244_v37, %v1829_v36 }
 0x216   : > { %v1831_v10 = vadd.f32 %v2244_v37, %v1830_v40 }
 0x218   : > { %v1835_v39 = vsel %vm1834_vm8, %v2244_v37, %v1831_v10 }
 0x219   : > { %v1840_v57 = vsel %vm1837_vm9, %v1839_v25, %v1835_v39 }
 0x21a   : > { %v1849_v41 = vmul.f32 %v1840_v57, %v3136_v58 }
 0x21c   : > { %2097 = vmatmul.msk.f32.gmra.mxu3 %vm598_vm1, %v1849_v41 }
 0x267   : > { %v1897_v8 = vpop.f32.mrf.mxu3 }
 0x268   : > { %v1898_v24 = vadd.f32 %v2180_v18, %v1897_v8 }
 0x26a   : > { %1921 = vst.msk [vmem:[%s334_s16] sm:$0xff] %vm352_vm0, %v1898_v24 }
 0x26f   : > { %v1900_v48 = vpop.f32.mrf.mxu3 }
 0x270   : > { %v1901_v33 = vadd.f32 %v2180_v18, %v1900_v48 }
 0x272   : > { %1922 = vst.msk [vmem:[%s334_s16 + $0x8] sm:$0xff] %vm352_vm0, %v1901_v33 }
 0x277   : > { %v1903_v60 = vpop.f32.mrf.mxu3 }
 0x278   : > { %v1904_v30 = vadd.f32 %v2180_v18, %v1903_v60 }
 0x27a   : > { %1923 = vst.msk [vmem:[%s334_s16 + $0x10] sm:$0xff] %vm352_vm0, %v1904_v30 }
 0x27f   : > { %v1906_v62 = vpop.f32.mrf.mxu3 }
 0x280   : > { %v1907_v55 = vadd.f32 %v2180_v18, %v1906_v62 }
 0x282   : > { %1924 = vst.msk [vmem:[%s334_s16 + $0x18] sm:$0xff] %vm352_vm0, %v1907_v55 }
 0x287   : > { %v1909_v9 = vpop.f32.mrf.mxu3 }
 0x288   : > { %v1910_v11 = vadd.f32 %v2180_v18, %v1909_v9 }
 0x28a   : > { %1925 = vst.msk [vmem:[%s334_s16 + $0x20] sm:$0xff] %vm352_vm0, %v1910_v11 }
 0x28f   : > { %v1912_v35 = vpop.f32.mrf.mxu3 }
 0x290   : > { %v1913_v27 = vadd.f32 %v2180_v18, %v1912_v35 }
 0x292   : > { %1926 = vst.msk [vmem:[%s334_s16 + $0x28] sm:$0xff] %vm352_vm0, %v1913_v27 }
 0x297   : > { %v1915_v42 = vpop.f32.mrf.mxu3 }
 0x298   : > { %v1916_v58 = vadd.f32 %v2180_v18, %v1915_v42 }
 0x29a   : > { %1927 = vst.msk [vmem:[%s334_s16 + $0x30] sm:$0xff] %vm352_vm0, %v1916_v58 }
 0x29f   : > { %v1918_v51 = vpop.f32.mrf.mxu3 }
 0x2a0   : > { %v1919_v63 = vadd.f32 %v2180_v18, %v1918_v51 }
 0x2a2   : > { %1928 = vst.msk [vmem:[%s334_s16 + $0x38] sm:$0xff] %vm352_vm0, %v1919_v63 }
 0x2a3 PF: > { %s19_s30 = sadd.s32 1, %s2251_s30  }
 0x2a4   : > { %p16_p4 = scmp.ge.s32.totalorder %s19_s30, 4  }
 0x2a6   :  { %18 = sbr.rel (!%p16_p4) target bundleno = 1 (0x1), region = 86 }

</bundles_post_ra>
